<compile_context>
chip_gen: v6e
topology: v6e:2x2x1
jax: 0.10.0
libtpu: 0.0.40
codegen_flags: <defaults>
</compile_context>

<pallas_src>
import numpy as np

import jax
import jax.numpy as jnp
from jax.experimental import pallas as pl
from jax.experimental.pallas import tpu as pltpu


# ----------------------------------------------------------------------------
# Fused Pallas kernel: conv1_1+conv1_2 -> conv2 -> conv3 -> conv4 -> sigmoid
# ----------------------------------------------------------------------------
def _fused_kernel(p1_ref, w1_ref, w2_ref, w3_ref, w4_ref, g2_ref, g3_ref, o_ref):
    lrelu = lambda t: jnp.where(t >= 0, t, 0.2 * t)

    # ---- layer 1: fused conv1_1 / conv1_2 (4x4, stride 2, pad 1) -----------
    a1 = jnp.dot(p1_ref[0], w1_ref[...], preferred_element_type=jnp.float32)
    a1 = lrelu(a1).astype(jnp.bfloat16)                 # (S1*S1, ndf)

    n_tap = g2_ref.shape[0]                              # 16 taps (kh, kw)
    c1 = w1_ref.shape[1]                                 # ndf
    c2 = w2_ref.shape[1]                                 # 2*ndf
    c3 = w3_ref.shape[1]                                 # 4*ndf
    m2 = g2_ref.shape[1]                                 # S2*S2
    m3 = g3_ref.shape[1]                                 # S3*S3

    # ---- layer 2: conv2 via in-kernel gather (MXU) + matmul ----------------
    acc2 = jnp.zeros((m2, c2), jnp.float32)
    for t in range(n_tap):
        patch = jnp.dot(g2_ref[t], a1, preferred_element_type=jnp.float32)
        patch = patch.astype(jnp.bfloat16)               # exact 0/1 selection
        acc2 = acc2 + jnp.dot(patch, w2_ref[t * c1:(t + 1) * c1, :],
                              preferred_element_type=jnp.float32)
    a2 = lrelu(acc2).astype(jnp.bfloat16)                # (S2*S2, 2*ndf)

    # ---- layer 3: conv3 via in-kernel gather + matmul ----------------------
    acc3 = jnp.zeros((m3, c3), jnp.float32)
    for t in range(n_tap):
        patch = jnp.dot(g3_ref[t], a2, preferred_element_type=jnp.float32)
        patch = patch.astype(jnp.bfloat16)
        acc3 = acc3 + jnp.dot(patch, w3_ref[t * c2:(t + 1) * c2, :],
                              preferred_element_type=jnp.float32)
    a3 = lrelu(acc3)                                     # (S3*S3, 4*ndf) f32

    # ---- layer 4: conv4 == full dot over the 4x4x(4*ndf) map; sigmoid ------
    logit = jnp.sum(a3 * w4_ref[...], keepdims=True)     # (1, 1)
    sig = pl.reciprocal(1.0 + jnp.exp(-logit), approx=True)
    o_ref[0] = sig.astype(o_ref.dtype)


# ----------------------------------------------------------------------------
# Host-side helpers (tiny, run once per call under jit)
# ----------------------------------------------------------------------------
def _im2col(x_nhwc, k, stride):
    """(N,H,W,C) -> (N, Ho*Wo, k*k*C); per-row column order is (kh, kw, ci)."""
    N, H, W, C = x_nhwc.shape
    Ho = (H - k) // stride + 1
    Wo = (W - k) // stride + 1
    cols = []
    for kh in range(k):
        for kw in range(k):
            cols.append(
                jax.lax.slice(
                    x_nhwc,
                    (0, kh, kw, 0),
                    (N, kh + (Ho - 1) * stride + 1, kw + (Wo - 1) * stride + 1, C),
                    (1, stride, stride, 1)))
    patches = jnp.stack(cols, axis=3)                    # (N, Ho, Wo, k*k, C)
    return patches.reshape(N, Ho * Wo, k * k * C)


def _gather_mats(s_in, s_out, k=4, stride=2, pad=1):
    """Constant 0/1 gather matrices: G[t, m_out, m_in] selects the input pixel
    feeding output position m_out at tap t = kh*k+kw; zero rows = zero padding."""
    G = np.zeros((k * k, s_out * s_out, s_in * s_in), np.float32)
    for kh in range(k):
        for kw in range(k):
            t = kh * k + kw
            for ho in range(s_out):
                hi = stride * ho + kh - pad
                if hi < 0 or hi >= s_in:
                    continue
                for wo in range(s_out):
                    wi = stride * wo + kw - pad
                    if wi < 0 or wi >= s_in:
                        continue
                    G[t, ho * s_out + wo, hi * s_in + wi] = 1.0
    return jnp.asarray(G, jnp.bfloat16)


# ----------------------------------------------------------------------------
# Parameter setup: spectral normalization via power iteration
# TODO(synk): PyTorch's spectral_norm keeps a persistent `u` and runs a single
# power iteration per forward; here we use a converged power iteration at init
# (matches eval-time behaviour, not a mid-training transient sigma).
# ----------------------------------------------------------------------------
def spectral_normalize(w_oihw, n_iter=30, eps=1e-12):
    cout = w_oihw.shape[0]
    w_mat = w_oihw.reshape(cout, -1)
    u = jnp.ones((cout,), w_oihw.dtype) / jnp.sqrt(jnp.float32(cout))
    v = None
    for _ in range(n_iter):
        v = w_mat.T @ u
        v = v / (jnp.linalg.norm(v) + eps)
        u = w_mat @ v
        u = u / (jnp.linalg.norm(u) + eps)
    sigma = u @ (w_mat @ v)
    return w_oihw / sigma


def init_params(key, input_nc, num_classes, ndf):
    ndf = ndf + 1 if ndf % 2 == 1 else ndf
    ks = jax.random.split(key, 5)

    def conv_w(k, cout, cin):
        return 0.02 * jax.random.normal(k, (cout, cin, 4, 4), jnp.float32)

    return {
        "w1_1": spectral_normalize(conv_w(ks[0], ndf // 2, input_nc)),
        "w1_2": spectral_normalize(conv_w(ks[1], ndf // 2, num_classes)),
        "w2": spectral_normalize(conv_w(ks[2], ndf * 2, ndf)),
        "w3": spectral_normalize(conv_w(ks[3], ndf * 4, ndf * 2)),
        "w4": spectral_normalize(conv_w(ks[4], 1, ndf * 4)),
    }


# ----------------------------------------------------------------------------
# Forward pass (mirrors cDCGANDiscriminator.forward; NCHW in / NCHW out)
# ----------------------------------------------------------------------------
@jax.jit
def cdcgan_discriminator_forward(params, input_nchw, label_nchw):
    N, cin1, H, W = input_nchw.shape
    cin2 = label_nchw.shape[1]
    assert H == 32 and W == 32, "1x1 PatchGAN output requires 32x32 inputs"
    ndf2 = params["w1_1"].shape[0]
    ndf = 2 * ndf2

    # combine input & label channels, NCHW -> NHWC, pad channels to mult of 8
    x = jnp.concatenate([input_nchw, label_nchw], axis=1)
    x = jnp.transpose(x, (0, 2, 3, 1))                       # (N,32,32,cin1+cin2)
    c_comb = cin1 + cin2
    c_pad = (-c_comb) % 8
    x = jnp.pad(x, ((0, 0), (1, 1), (1, 1), (0, c_pad)))     # spatial pad=1
    patches1 = _im2col(x, 4, 2).astype(jnp.bfloat16)         # (N, 256, 16*cpt)

    # weights as matmul matrices (row order (kh, kw, ci)), bf16 for the MXU
    cpt = c_comb + c_pad
    w11 = jnp.transpose(params["w1_1"], (2, 3, 1, 0))        # (4,4,cin1,ndf2)
    w12 = jnp.transpose(params["w1_2"], (2, 3, 1, 0))        # (4,4,cin2,ndf2)
    w1c = jnp.zeros((4, 4, cpt, ndf), jnp.float32)
    w1c = w1c.at[:, :, :cin1, :ndf2].set(w11)                # conv1_1 -> ch [0,ndf2)
    w1c = w1c.at[:, :, cin1:c_comb, ndf2:].set(w12)          # conv1_2 -> ch [ndf2,ndf)
    w1m = w1c.reshape(16 * cpt, ndf).astype(jnp.bfloat16)
    w2m = jnp.transpose(params["w2"], (2, 3, 1, 0)).reshape(
        16 * ndf, 2 * ndf).astype(jnp.bfloat16)
    w3m = jnp.transpose(params["w3"], (2, 3, 1, 0)).reshape(
        16 * 2 * ndf, 4 * ndf).astype(jnp.bfloat16)
    w4m = jnp.transpose(params["w4"], (2, 3, 1, 0))[..., 0].reshape(16, 4 * ndf)

    # constant gather matrices for in-kernel im2col of conv2 / conv3
    s1, s2, s3 = H // 2, H // 4, H // 8                      # 16, 8, 4
    g2 = _gather_mats(s1, s2)                                # (16, 64, 256)
    g3 = _gather_mats(s2, s3)                                # (16, 16, 64)

    m1, k1 = patches1.shape[1], patches1.shape[2]
    out = pl.pallas_call(
        _fused_kernel,
        out_shape=jax.ShapeDtypeStruct((N, 1, 1), jnp.float32),
        grid=(N,),
        in_specs=[
            pl.BlockSpec((1, m1, k1), lambda n: (n, 0, 0)),
            pl.BlockSpec(w1m.shape, lambda n: (0, 0)),
            pl.BlockSpec(w2m.shape, lambda n: (0, 0)),
            pl.BlockSpec(w3m.shape, lambda n: (0, 0)),
            pl.BlockSpec(w4m.shape, lambda n: (0, 0)),
            pl.BlockSpec(g2.shape, lambda n: (0, 0, 0)),
            pl.BlockSpec(g3.shape, lambda n: (0, 0, 0)),
        ],
        out_specs=pl.BlockSpec((1, 1, 1), lambda n: (n, 0, 0)),
        compiler_params=pltpu.CompilerParams(dimension_semantics=("parallel",)),
    )(patches1, w1m, w2m, w3m, w4m, g2, g3)
    return out.reshape(N, 1, 1, 1)


# ----------------------------------------------------------------------------
# Pure-JAX reference (lax conv) for a sanity check
# ----------------------------------------------------------------------------
def _ref_conv(x_nchw, w, stride, padding):
    return jax.lax.conv_general_dilated(
        x_nchw, w, (stride, stride), [(padding, padding), (padding, padding)],
        dimension_numbers=("NCHW", "OIHW", "NCHW"),
    )


def _ref_forward(params, input_nchw, label_nchw):
    lrelu = lambda t: jnp.where(t >= 0, t, 0.2 * t)
    x = lrelu(_ref_conv(input_nchw, params["w1_1"], 2, 1))
    y = lrelu(_ref_conv(label_nchw, params["w1_2"], 2, 1))
    h = jnp.concatenate([x, y], axis=1)
    h = lrelu(_ref_conv(h, params["w2"], 2, 1))
    h = lrelu(_ref_conv(h, params["w3"], 2, 1))
    h = jax.nn.sigmoid(_ref_conv(h, params["w4"], 1, 0))
    return h


if __name__ == "__main__":
    key = jax.random.PRNGKey(0)
    k_param, k_x, k_lbl = jax.random.split(key, 3)

    # DCGAN-consistent small shapes: 32x32 so conv4 (k=4, s=1, p=0) emits 1x1.
    N, input_nc, num_classes, ndf, H, W = 2, 3, 4, 8, 32, 32

    params = init_params(k_param, input_nc, num_classes, ndf)
    x = jax.random.normal(k_x, (N, input_nc, H, W), jnp.float32)
    label = jax.random.normal(k_lbl, (N, num_classes, H, W), jnp.float32)

    out = cdcgan_discriminator_forward(params, x, label)
    out = jax.block_until_ready(out)
    assert out.shape == (N, 1, 1, 1), out.shape

    ref = _ref_forward(params, x, label)
    assert jnp.allclose(out, ref, rtol=3e-2, atol=3e-2), (out, ref)

    print("KERNEL_OK")
</pallas_src>

<mosaic_0001>
module attributes {stable_mosaic.version = 11 : i64} {
  func.func @_fused_kernel(%arg0: i32, %arg1: memref<1x256x128xbf16, #tpu.memory_space<vmem>>, %arg2: memref<128x8xbf16, #tpu.memory_space<vmem>>, %arg3: memref<128x16xbf16, #tpu.memory_space<vmem>>, %arg4: memref<256x32xbf16, #tpu.memory_space<vmem>>, %arg5: memref<16x32xf32, #tpu.memory_space<vmem>>, %arg6: memref<16x64x256xbf16, #tpu.memory_space<vmem>>, %arg7: memref<16x16x64xbf16, #tpu.memory_space<vmem>>, %arg8: memref<1x1x1xf32, #tpu.memory_space<vmem>>) attributes {dimension_semantics = [#tpu.dimension_semantics<parallel>], iteration_bounds = array<i64: 2>, scalar_prefetch = 0 : i64, scratch_operands = 0 : i64, tpu.core_type = #tpu.core_type<tc>, window_params = [{transform_indices = @transform_0, window_bounds = array<i64: 1, 256, 128>}, {pipeline_mode = #tpu.pipeline_mode<synchronous>, transform_indices = @transform_1, window_bounds = array<i64: 128, 8>}, {pipeline_mode = #tpu.pipeline_mode<synchronous>, transform_indices = @transform_2, window_bounds = array<i64: 128, 16>}, {pipeline_mode = #tpu.pipeline_mode<synchronous>, transform_indices = @transform_3, window_bounds = array<i64: 256, 32>}, {pipeline_mode = #tpu.pipeline_mode<synchronous>, transform_indices = @transform_4, window_bounds = array<i64: 16, 32>}, {pipeline_mode = #tpu.pipeline_mode<synchronous>, transform_indices = @transform_5, window_bounds = array<i64: 16, 64, 256>}, {pipeline_mode = #tpu.pipeline_mode<synchronous>, transform_indices = @transform_6, window_bounds = array<i64: 16, 16, 64>}, {transform_indices = @transform_7, window_bounds = array<i64: 1, 1, 1>}]} {
    %c0 = arith.constant 0 : index
    %c0_0 = arith.constant 0 : index
    %c0_1 = arith.constant 0 : index
    %0 = vector.load %arg1[%c0, %c0_0, %c0_1] : memref<1x256x128xbf16, #tpu.memory_space<vmem>>, vector<1x256x128xbf16>
    %1 = vector.shape_cast %0 : vector<1x256x128xbf16> to vector<256x128xbf16>
    %c0_2 = arith.constant 0 : index
    %c0_3 = arith.constant 0 : index
    %2 = vector.load %arg2[%c0_2, %c0_3] : memref<128x8xbf16, #tpu.memory_space<vmem>>, vector<128x8xbf16>
    %cst = arith.constant dense<0.000000e+00> : vector<256x8xf32>
    %3 = tpu.matmul %1, %2, %cst {dimension_numbers = #tpu.dot_dimension_numbers<[1], [0], [0], [1], [0, 0, 1, 1], [], []>} : vector<256x128xbf16>, vector<128x8xbf16>, vector<256x8xf32> -> vector<256x8xf32>
    %cst_4 = arith.constant 0.000000e+00 : f32
    %4 = vector.broadcast %cst_4 : f32 to vector<256x8xf32>
    %5 = arith.cmpf oge, %3, %4 : vector<256x8xf32>
    %cst_5 = arith.constant 2.000000e-01 : f32
    %6 = vector.broadcast %cst_5 : f32 to vector<256x8xf32>
    %7 = arith.mulf %6, %3 : vector<256x8xf32>
    %8 = arith.select %5, %3, %7 : vector<256x8xi1>, vector<256x8xf32>
    %9 = arith.truncf %8 : vector<256x8xf32> to vector<256x8xbf16>
    %cst_6 = arith.constant 0.000000e+00 : f32
    %10 = vector.broadcast %cst_6 : f32 to vector<64x16xf32>
    %c0_7 = arith.constant 0 : index
    %c0_8 = arith.constant 0 : index
    %c0_9 = arith.constant 0 : index
    %11 = vector.load %arg6[%c0_7, %c0_8, %c0_9] : memref<16x64x256xbf16, #tpu.memory_space<vmem>>, vector<1x64x256xbf16>
    %12 = vector.shape_cast %11 : vector<1x64x256xbf16> to vector<64x256xbf16>
    %cst_10 = arith.constant dense<0.000000e+00> : vector<64x8xf32>
    %13 = tpu.matmul %12, %9, %cst_10 {dimension_numbers = #tpu.dot_dimension_numbers<[1], [0], [0], [1], [0, 0, 1, 1], [], []>} : vector<64x256xbf16>, vector<256x8xbf16>, vector<64x8xf32> -> vector<64x8xf32>
    %14 = arith.truncf %13 : vector<64x8xf32> to vector<64x8xbf16>
    %c0_11 = arith.constant 0 : index
    %c0_12 = arith.constant 0 : index
    %15 = vector.load %arg3[%c0_11, %c0_12] : memref<128x16xbf16, #tpu.memory_space<vmem>>, vector<8x16xbf16>
    %cst_13 = arith.constant dense<0.000000e+00> : vector<64x16xf32>
    %16 = tpu.matmul %14, %15, %cst_13 {dimension_numbers = #tpu.dot_dimension_numbers<[1], [0], [0], [1], [0, 0, 1, 1], [], []>} : vector<64x8xbf16>, vector<8x16xbf16>, vector<64x16xf32> -> vector<64x16xf32>
    %17 = arith.addf %10, %16 : vector<64x16xf32>
    %c1 = arith.constant 1 : index
    %c0_14 = arith.constant 0 : index
    %c0_15 = arith.constant 0 : index
    %18 = vector.load %arg6[%c1, %c0_14, %c0_15] : memref<16x64x256xbf16, #tpu.memory_space<vmem>>, vector<1x64x256xbf16>
    %19 = vector.shape_cast %18 : vector<1x64x256xbf16> to vector<64x256xbf16>
    %cst_16 = arith.constant dense<0.000000e+00> : vector<64x8xf32>
    %20 = tpu.matmul %19, %9, %cst_16 {dimension_numbers = #tpu.dot_dimension_numbers<[1], [0], [0], [1], [0, 0, 1, 1], [], []>} : vector<64x256xbf16>, vector<256x8xbf16>, vector<64x8xf32> -> vector<64x8xf32>
    %21 = arith.truncf %20 : vector<64x8xf32> to vector<64x8xbf16>
    %c8 = arith.constant 8 : index
    %c0_17 = arith.constant 0 : index
    %22 = vector.load %arg3[%c8, %c0_17] : memref<128x16xbf16, #tpu.memory_space<vmem>>, vector<8x16xbf16>
    %cst_18 = arith.constant dense<0.000000e+00> : vector<64x16xf32>
    %23 = tpu.matmul %21, %22, %cst_18 {dimension_numbers = #tpu.dot_dimension_numbers<[1], [0], [0], [1], [0, 0, 1, 1], [], []>} : vector<64x8xbf16>, vector<8x16xbf16>, vector<64x16xf32> -> vector<64x16xf32>
    %24 = arith.addf %17, %23 : vector<64x16xf32>
    %c2 = arith.constant 2 : index
    %c0_19 = arith.constant 0 : index
    %c0_20 = arith.constant 0 : index
    %25 = vector.load %arg6[%c2, %c0_19, %c0_20] : memref<16x64x256xbf16, #tpu.memory_space<vmem>>, vector<1x64x256xbf16>
    %26 = vector.shape_cast %25 : vector<1x64x256xbf16> to vector<64x256xbf16>
    %cst_21 = arith.constant dense<0.000000e+00> : vector<64x8xf32>
    %27 = tpu.matmul %26, %9, %cst_21 {dimension_numbers = #tpu.dot_dimension_numbers<[1], [0], [0], [1], [0, 0, 1, 1], [], []>} : vector<64x256xbf16>, vector<256x8xbf16>, vector<64x8xf32> -> vector<64x8xf32>
    %28 = arith.truncf %27 : vector<64x8xf32> to vector<64x8xbf16>
    %c16 = arith.constant 16 : index
    %c0_22 = arith.constant 0 : index
    %29 = vector.load %arg3[%c16, %c0_22] : memref<128x16xbf16, #tpu.memory_space<vmem>>, vector<8x16xbf16>
    %cst_23 = arith.constant dense<0.000000e+00> : vector<64x16xf32>
    %30 = tpu.matmul %28, %29, %cst_23 {dimension_numbers = #tpu.dot_dimension_numbers<[1], [0], [0], [1], [0, 0, 1, 1], [], []>} : vector<64x8xbf16>, vector<8x16xbf16>, vector<64x16xf32> -> vector<64x16xf32>
    %31 = arith.addf %24, %30 : vector<64x16xf32>
    %c3 = arith.constant 3 : index
    %c0_24 = arith.constant 0 : index
    %c0_25 = arith.constant 0 : index
    %32 = vector.load %arg6[%c3, %c0_24, %c0_25] : memref<16x64x256xbf16, #tpu.memory_space<vmem>>, vector<1x64x256xbf16>
    %33 = vector.shape_cast %32 : vector<1x64x256xbf16> to vector<64x256xbf16>
    %cst_26 = arith.constant dense<0.000000e+00> : vector<64x8xf32>
    %34 = tpu.matmul %33, %9, %cst_26 {dimension_numbers = #tpu.dot_dimension_numbers<[1], [0], [0], [1], [0, 0, 1, 1], [], []>} : vector<64x256xbf16>, vector<256x8xbf16>, vector<64x8xf32> -> vector<64x8xf32>
    %35 = arith.truncf %34 : vector<64x8xf32> to vector<64x8xbf16>
    %c24 = arith.constant 24 : index
    %c0_27 = arith.constant 0 : index
    %36 = vector.load %arg3[%c24, %c0_27] : memref<128x16xbf16, #tpu.memory_space<vmem>>, vector<8x16xbf16>
    %cst_28 = arith.constant dense<0.000000e+00> : vector<64x16xf32>
    %37 = tpu.matmul %35, %36, %cst_28 {dimension_numbers = #tpu.dot_dimension_numbers<[1], [0], [0], [1], [0, 0, 1, 1], [], []>} : vector<64x8xbf16>, vector<8x16xbf16>, vector<64x16xf32> -> vector<64x16xf32>
    %38 = arith.addf %31, %37 : vector<64x16xf32>
    %c4 = arith.constant 4 : index
    %c0_29 = arith.constant 0 : index
    %c0_30 = arith.constant 0 : index
    %39 = vector.load %arg6[%c4, %c0_29, %c0_30] : memref<16x64x256xbf16, #tpu.memory_space<vmem>>, vector<1x64x256xbf16>
    %40 = vector.shape_cast %39 : vector<1x64x256xbf16> to vector<64x256xbf16>
    %cst_31 = arith.constant dense<0.000000e+00> : vector<64x8xf32>
    %41 = tpu.matmul %40, %9, %cst_31 {dimension_numbers = #tpu.dot_dimension_numbers<[1], [0], [0], [1], [0, 0, 1, 1], [], []>} : vector<64x256xbf16>, vector<256x8xbf16>, vector<64x8xf32> -> vector<64x8xf32>
    %42 = arith.truncf %41 : vector<64x8xf32> to vector<64x8xbf16>
    %c32 = arith.constant 32 : index
    %c0_32 = arith.constant 0 : index
    %43 = vector.load %arg3[%c32, %c0_32] : memref<128x16xbf16, #tpu.memory_space<vmem>>, vector<8x16xbf16>
    %cst_33 = arith.constant dense<0.000000e+00> : vector<64x16xf32>
    %44 = tpu.matmul %42, %43, %cst_33 {dimension_numbers = #tpu.dot_dimension_numbers<[1], [0], [0], [1], [0, 0, 1, 1], [], []>} : vector<64x8xbf16>, vector<8x16xbf16>, vector<64x16xf32> -> vector<64x16xf32>
    %45 = arith.addf %38, %44 : vector<64x16xf32>
    %c5 = arith.constant 5 : index
    %c0_34 = arith.constant 0 : index
    %c0_35 = arith.constant 0 : index
    %46 = vector.load %arg6[%c5, %c0_34, %c0_35] : memref<16x64x256xbf16, #tpu.memory_space<vmem>>, vector<1x64x256xbf16>
    %47 = vector.shape_cast %46 : vector<1x64x256xbf16> to vector<64x256xbf16>
    %cst_36 = arith.constant dense<0.000000e+00> : vector<64x8xf32>
    %48 = tpu.matmul %47, %9, %cst_36 {dimension_numbers = #tpu.dot_dimension_numbers<[1], [0], [0], [1], [0, 0, 1, 1], [], []>} : vector<64x256xbf16>, vector<256x8xbf16>, vector<64x8xf32> -> vector<64x8xf32>
    %49 = arith.truncf %48 : vector<64x8xf32> to vector<64x8xbf16>
    %c40 = arith.constant 40 : index
    %c0_37 = arith.constant 0 : index
    %50 = vector.load %arg3[%c40, %c0_37] : memref<128x16xbf16, #tpu.memory_space<vmem>>, vector<8x16xbf16>
    %cst_38 = arith.constant dense<0.000000e+00> : vector<64x16xf32>
    %51 = tpu.matmul %49, %50, %cst_38 {dimension_numbers = #tpu.dot_dimension_numbers<[1], [0], [0], [1], [0, 0, 1, 1], [], []>} : vector<64x8xbf16>, vector<8x16xbf16>, vector<64x16xf32> -> vector<64x16xf32>
    %52 = arith.addf %45, %51 : vector<64x16xf32>
    %c6 = arith.constant 6 : index
    %c0_39 = arith.constant 0 : index
    %c0_40 = arith.constant 0 : index
    %53 = vector.load %arg6[%c6, %c0_39, %c0_40] : memref<16x64x256xbf16, #tpu.memory_space<vmem>>, vector<1x64x256xbf16>
    %54 = vector.shape_cast %53 : vector<1x64x256xbf16> to vector<64x256xbf16>
    %cst_41 = arith.constant dense<0.000000e+00> : vector<64x8xf32>
    %55 = tpu.matmul %54, %9, %cst_41 {dimension_numbers = #tpu.dot_dimension_numbers<[1], [0], [0], [1], [0, 0, 1, 1], [], []>} : vector<64x256xbf16>, vector<256x8xbf16>, vector<64x8xf32> -> vector<64x8xf32>
    %56 = arith.truncf %55 : vector<64x8xf32> to vector<64x8xbf16>
    %c48 = arith.constant 48 : index
    %c0_42 = arith.constant 0 : index
    %57 = vector.load %arg3[%c48, %c0_42] : memref<128x16xbf16, #tpu.memory_space<vmem>>, vector<8x16xbf16>
    %cst_43 = arith.constant dense<0.000000e+00> : vector<64x16xf32>
    %58 = tpu.matmul %56, %57, %cst_43 {dimension_numbers = #tpu.dot_dimension_numbers<[1], [0], [0], [1], [0, 0, 1, 1], [], []>} : vector<64x8xbf16>, vector<8x16xbf16>, vector<64x16xf32> -> vector<64x16xf32>
    %59 = arith.addf %52, %58 : vector<64x16xf32>
    %c7 = arith.constant 7 : index
    %c0_44 = arith.constant 0 : index
    %c0_45 = arith.constant 0 : index
    %60 = vector.load %arg6[%c7, %c0_44, %c0_45] : memref<16x64x256xbf16, #tpu.memory_space<vmem>>, vector<1x64x256xbf16>
    %61 = vector.shape_cast %60 : vector<1x64x256xbf16> to vector<64x256xbf16>
    %cst_46 = arith.constant dense<0.000000e+00> : vector<64x8xf32>
    %62 = tpu.matmul %61, %9, %cst_46 {dimension_numbers = #tpu.dot_dimension_numbers<[1], [0], [0], [1], [0, 0, 1, 1], [], []>} : vector<64x256xbf16>, vector<256x8xbf16>, vector<64x8xf32> -> vector<64x8xf32>
    %63 = arith.truncf %62 : vector<64x8xf32> to vector<64x8xbf16>
    %c56 = arith.constant 56 : index
    %c0_47 = arith.constant 0 : index
    %64 = vector.load %arg3[%c56, %c0_47] : memref<128x16xbf16, #tpu.memory_space<vmem>>, vector<8x16xbf16>
    %cst_48 = arith.constant dense<0.000000e+00> : vector<64x16xf32>
    %65 = tpu.matmul %63, %64, %cst_48 {dimension_numbers = #tpu.dot_dimension_numbers<[1], [0], [0], [1], [0, 0, 1, 1], [], []>} : vector<64x8xbf16>, vector<8x16xbf16>, vector<64x16xf32> -> vector<64x16xf32>
    %66 = arith.addf %59, %65 : vector<64x16xf32>
    %c8_49 = arith.constant 8 : index
    %c0_50 = arith.constant 0 : index
    %c0_51 = arith.constant 0 : index
    %67 = vector.load %arg6[%c8_49, %c0_50, %c0_51] : memref<16x64x256xbf16, #tpu.memory_space<vmem>>, vector<1x64x256xbf16>
    %68 = vector.shape_cast %67 : vector<1x64x256xbf16> to vector<64x256xbf16>
    %cst_52 = arith.constant dense<0.000000e+00> : vector<64x8xf32>
    %69 = tpu.matmul %68, %9, %cst_52 {dimension_numbers = #tpu.dot_dimension_numbers<[1], [0], [0], [1], [0, 0, 1, 1], [], []>} : vector<64x256xbf16>, vector<256x8xbf16>, vector<64x8xf32> -> vector<64x8xf32>
    %70 = arith.truncf %69 : vector<64x8xf32> to vector<64x8xbf16>
    %c64 = arith.constant 64 : index
    %c0_53 = arith.constant 0 : index
    %71 = vector.load %arg3[%c64, %c0_53] : memref<128x16xbf16, #tpu.memory_space<vmem>>, vector<8x16xbf16>
    %cst_54 = arith.constant dense<0.000000e+00> : vector<64x16xf32>
    %72 = tpu.matmul %70, %71, %cst_54 {dimension_numbers = #tpu.dot_dimension_numbers<[1], [0], [0], [1], [0, 0, 1, 1], [], []>} : vector<64x8xbf16>, vector<8x16xbf16>, vector<64x16xf32> -> vector<64x16xf32>
    %73 = arith.addf %66, %72 : vector<64x16xf32>
    %c9 = arith.constant 9 : index
    %c0_55 = arith.constant 0 : index
    %c0_56 = arith.constant 0 : index
    %74 = vector.load %arg6[%c9, %c0_55, %c0_56] : memref<16x64x256xbf16, #tpu.memory_space<vmem>>, vector<1x64x256xbf16>
    %75 = vector.shape_cast %74 : vector<1x64x256xbf16> to vector<64x256xbf16>
    %cst_57 = arith.constant dense<0.000000e+00> : vector<64x8xf32>
    %76 = tpu.matmul %75, %9, %cst_57 {dimension_numbers = #tpu.dot_dimension_numbers<[1], [0], [0], [1], [0, 0, 1, 1], [], []>} : vector<64x256xbf16>, vector<256x8xbf16>, vector<64x8xf32> -> vector<64x8xf32>
    %77 = arith.truncf %76 : vector<64x8xf32> to vector<64x8xbf16>
    %c72 = arith.constant 72 : index
    %c0_58 = arith.constant 0 : index
    %78 = vector.load %arg3[%c72, %c0_58] : memref<128x16xbf16, #tpu.memory_space<vmem>>, vector<8x16xbf16>
    %cst_59 = arith.constant dense<0.000000e+00> : vector<64x16xf32>
    %79 = tpu.matmul %77, %78, %cst_59 {dimension_numbers = #tpu.dot_dimension_numbers<[1], [0], [0], [1], [0, 0, 1, 1], [], []>} : vector<64x8xbf16>, vector<8x16xbf16>, vector<64x16xf32> -> vector<64x16xf32>
    %80 = arith.addf %73, %79 : vector<64x16xf32>
    %c10 = arith.constant 10 : index
    %c0_60 = arith.constant 0 : index
    %c0_61 = arith.constant 0 : index
    %81 = vector.load %arg6[%c10, %c0_60, %c0_61] : memref<16x64x256xbf16, #tpu.memory_space<vmem>>, vector<1x64x256xbf16>
    %82 = vector.shape_cast %81 : vector<1x64x256xbf16> to vector<64x256xbf16>
    %cst_62 = arith.constant dense<0.000000e+00> : vector<64x8xf32>
    %83 = tpu.matmul %82, %9, %cst_62 {dimension_numbers = #tpu.dot_dimension_numbers<[1], [0], [0], [1], [0, 0, 1, 1], [], []>} : vector<64x256xbf16>, vector<256x8xbf16>, vector<64x8xf32> -> vector<64x8xf32>
    %84 = arith.truncf %83 : vector<64x8xf32> to vector<64x8xbf16>
    %c80 = arith.constant 80 : index
    %c0_63 = arith.constant 0 : index
    %85 = vector.load %arg3[%c80, %c0_63] : memref<128x16xbf16, #tpu.memory_space<vmem>>, vector<8x16xbf16>
    %cst_64 = arith.constant dense<0.000000e+00> : vector<64x16xf32>
    %86 = tpu.matmul %84, %85, %cst_64 {dimension_numbers = #tpu.dot_dimension_numbers<[1], [0], [0], [1], [0, 0, 1, 1], [], []>} : vector<64x8xbf16>, vector<8x16xbf16>, vector<64x16xf32> -> vector<64x16xf32>
    %87 = arith.addf %80, %86 : vector<64x16xf32>
    %c11 = arith.constant 11 : index
    %c0_65 = arith.constant 0 : index
    %c0_66 = arith.constant 0 : index
    %88 = vector.load %arg6[%c11, %c0_65, %c0_66] : memref<16x64x256xbf16, #tpu.memory_space<vmem>>, vector<1x64x256xbf16>
    %89 = vector.shape_cast %88 : vector<1x64x256xbf16> to vector<64x256xbf16>
    %cst_67 = arith.constant dense<0.000000e+00> : vector<64x8xf32>
    %90 = tpu.matmul %89, %9, %cst_67 {dimension_numbers = #tpu.dot_dimension_numbers<[1], [0], [0], [1], [0, 0, 1, 1], [], []>} : vector<64x256xbf16>, vector<256x8xbf16>, vector<64x8xf32> -> vector<64x8xf32>
    %91 = arith.truncf %90 : vector<64x8xf32> to vector<64x8xbf16>
    %c88 = arith.constant 88 : index
    %c0_68 = arith.constant 0 : index
    %92 = vector.load %arg3[%c88, %c0_68] : memref<128x16xbf16, #tpu.memory_space<vmem>>, vector<8x16xbf16>
    %cst_69 = arith.constant dense<0.000000e+00> : vector<64x16xf32>
    %93 = tpu.matmul %91, %92, %cst_69 {dimension_numbers = #tpu.dot_dimension_numbers<[1], [0], [0], [1], [0, 0, 1, 1], [], []>} : vector<64x8xbf16>, vector<8x16xbf16>, vector<64x16xf32> -> vector<64x16xf32>
    %94 = arith.addf %87, %93 : vector<64x16xf32>
    %c12 = arith.constant 12 : index
    %c0_70 = arith.constant 0 : index
    %c0_71 = arith.constant 0 : index
    %95 = vector.load %arg6[%c12, %c0_70, %c0_71] : memref<16x64x256xbf16, #tpu.memory_space<vmem>>, vector<1x64x256xbf16>
    %96 = vector.shape_cast %95 : vector<1x64x256xbf16> to vector<64x256xbf16>
    %cst_72 = arith.constant dense<0.000000e+00> : vector<64x8xf32>
    %97 = tpu.matmul %96, %9, %cst_72 {dimension_numbers = #tpu.dot_dimension_numbers<[1], [0], [0], [1], [0, 0, 1, 1], [], []>} : vector<64x256xbf16>, vector<256x8xbf16>, vector<64x8xf32> -> vector<64x8xf32>
    %98 = arith.truncf %97 : vector<64x8xf32> to vector<64x8xbf16>
    %c96 = arith.constant 96 : index
    %c0_73 = arith.constant 0 : index
    %99 = vector.load %arg3[%c96, %c0_73] : memref<128x16xbf16, #tpu.memory_space<vmem>>, vector<8x16xbf16>
    %cst_74 = arith.constant dense<0.000000e+00> : vector<64x16xf32>
    %100 = tpu.matmul %98, %99, %cst_74 {dimension_numbers = #tpu.dot_dimension_numbers<[1], [0], [0], [1], [0, 0, 1, 1], [], []>} : vector<64x8xbf16>, vector<8x16xbf16>, vector<64x16xf32> -> vector<64x16xf32>
    %101 = arith.addf %94, %100 : vector<64x16xf32>
    %c13 = arith.constant 13 : index
    %c0_75 = arith.constant 0 : index
    %c0_76 = arith.constant 0 : index
    %102 = vector.load %arg6[%c13, %c0_75, %c0_76] : memref<16x64x256xbf16, #tpu.memory_space<vmem>>, vector<1x64x256xbf16>
    %103 = vector.shape_cast %102 : vector<1x64x256xbf16> to vector<64x256xbf16>
    %cst_77 = arith.constant dense<0.000000e+00> : vector<64x8xf32>
    %104 = tpu.matmul %103, %9, %cst_77 {dimension_numbers = #tpu.dot_dimension_numbers<[1], [0], [0], [1], [0, 0, 1, 1], [], []>} : vector<64x256xbf16>, vector<256x8xbf16>, vector<64x8xf32> -> vector<64x8xf32>
    %105 = arith.truncf %104 : vector<64x8xf32> to vector<64x8xbf16>
    %c104 = arith.constant 104 : index
    %c0_78 = arith.constant 0 : index
    %106 = vector.load %arg3[%c104, %c0_78] : memref<128x16xbf16, #tpu.memory_space<vmem>>, vector<8x16xbf16>
    %cst_79 = arith.constant dense<0.000000e+00> : vector<64x16xf32>
    %107 = tpu.matmul %105, %106, %cst_79 {dimension_numbers = #tpu.dot_dimension_numbers<[1], [0], [0], [1], [0, 0, 1, 1], [], []>} : vector<64x8xbf16>, vector<8x16xbf16>, vector<64x16xf32> -> vector<64x16xf32>
    %108 = arith.addf %101, %107 : vector<64x16xf32>
    %c14 = arith.constant 14 : index
    %c0_80 = arith.constant 0 : index
    %c0_81 = arith.constant 0 : index
    %109 = vector.load %arg6[%c14, %c0_80, %c0_81] : memref<16x64x256xbf16, #tpu.memory_space<vmem>>, vector<1x64x256xbf16>
    %110 = vector.shape_cast %109 : vector<1x64x256xbf16> to vector<64x256xbf16>
    %cst_82 = arith.constant dense<0.000000e+00> : vector<64x8xf32>
    %111 = tpu.matmul %110, %9, %cst_82 {dimension_numbers = #tpu.dot_dimension_numbers<[1], [0], [0], [1], [0, 0, 1, 1], [], []>} : vector<64x256xbf16>, vector<256x8xbf16>, vector<64x8xf32> -> vector<64x8xf32>
    %112 = arith.truncf %111 : vector<64x8xf32> to vector<64x8xbf16>
    %c112 = arith.constant 112 : index
    %c0_83 = arith.constant 0 : index
    %113 = vector.load %arg3[%c112, %c0_83] : memref<128x16xbf16, #tpu.memory_space<vmem>>, vector<8x16xbf16>
    %cst_84 = arith.constant dense<0.000000e+00> : vector<64x16xf32>
    %114 = tpu.matmul %112, %113, %cst_84 {dimension_numbers = #tpu.dot_dimension_numbers<[1], [0], [0], [1], [0, 0, 1, 1], [], []>} : vector<64x8xbf16>, vector<8x16xbf16>, vector<64x16xf32> -> vector<64x16xf32>
    %115 = arith.addf %108, %114 : vector<64x16xf32>
    %c15 = arith.constant 15 : index
    %c0_85 = arith.constant 0 : index
    %c0_86 = arith.constant 0 : index
    %116 = vector.load %arg6[%c15, %c0_85, %c0_86] : memref<16x64x256xbf16, #tpu.memory_space<vmem>>, vector<1x64x256xbf16>
    %117 = vector.shape_cast %116 : vector<1x64x256xbf16> to vector<64x256xbf16>
    %cst_87 = arith.constant dense<0.000000e+00> : vector<64x8xf32>
    %118 = tpu.matmul %117, %9, %cst_87 {dimension_numbers = #tpu.dot_dimension_numbers<[1], [0], [0], [1], [0, 0, 1, 1], [], []>} : vector<64x256xbf16>, vector<256x8xbf16>, vector<64x8xf32> -> vector<64x8xf32>
    %119 = arith.truncf %118 : vector<64x8xf32> to vector<64x8xbf16>
    %c120 = arith.constant 120 : index
    %c0_88 = arith.constant 0 : index
    %120 = vector.load %arg3[%c120, %c0_88] : memref<128x16xbf16, #tpu.memory_space<vmem>>, vector<8x16xbf16>
    %cst_89 = arith.constant dense<0.000000e+00> : vector<64x16xf32>
    %121 = tpu.matmul %119, %120, %cst_89 {dimension_numbers = #tpu.dot_dimension_numbers<[1], [0], [0], [1], [0, 0, 1, 1], [], []>} : vector<64x8xbf16>, vector<8x16xbf16>, vector<64x16xf32> -> vector<64x16xf32>
    %122 = arith.addf %115, %121 : vector<64x16xf32>
    %cst_90 = arith.constant 0.000000e+00 : f32
    %123 = vector.broadcast %cst_90 : f32 to vector<64x16xf32>
    %124 = arith.cmpf oge, %122, %123 : vector<64x16xf32>
    %cst_91 = arith.constant 2.000000e-01 : f32
    %125 = vector.broadcast %cst_91 : f32 to vector<64x16xf32>
    %126 = arith.mulf %125, %122 : vector<64x16xf32>
    %127 = arith.select %124, %122, %126 : vector<64x16xi1>, vector<64x16xf32>
    %128 = arith.truncf %127 : vector<64x16xf32> to vector<64x16xbf16>
    %cst_92 = arith.constant 0.000000e+00 : f32
    %129 = vector.broadcast %cst_92 : f32 to vector<16x32xf32>
    %c0_93 = arith.constant 0 : index
    %c0_94 = arith.constant 0 : index
    %c0_95 = arith.constant 0 : index
    %130 = vector.load %arg7[%c0_93, %c0_94, %c0_95] : memref<16x16x64xbf16, #tpu.memory_space<vmem>>, vector<1x16x64xbf16>
    %131 = vector.shape_cast %130 : vector<1x16x64xbf16> to vector<16x64xbf16>
    %cst_96 = arith.constant dense<0.000000e+00> : vector<16x16xf32>
    %132 = tpu.matmul %131, %128, %cst_96 {dimension_numbers = #tpu.dot_dimension_numbers<[1], [0], [0], [1], [0, 0, 1, 1], [], []>} : vector<16x64xbf16>, vector<64x16xbf16>, vector<16x16xf32> -> vector<16x16xf32>
    %133 = arith.truncf %132 : vector<16x16xf32> to vector<16x16xbf16>
    %c0_97 = arith.constant 0 : index
    %c0_98 = arith.constant 0 : index
    %134 = vector.load %arg4[%c0_97, %c0_98] : memref<256x32xbf16, #tpu.memory_space<vmem>>, vector<16x32xbf16>
    %cst_99 = arith.constant dense<0.000000e+00> : vector<16x32xf32>
    %135 = tpu.matmul %133, %134, %cst_99 {dimension_numbers = #tpu.dot_dimension_numbers<[1], [0], [0], [1], [0, 0, 1, 1], [], []>} : vector<16x16xbf16>, vector<16x32xbf16>, vector<16x32xf32> -> vector<16x32xf32>
    %136 = arith.addf %129, %135 : vector<16x32xf32>
    %c1_100 = arith.constant 1 : index
    %c0_101 = arith.constant 0 : index
    %c0_102 = arith.constant 0 : index
    %137 = vector.load %arg7[%c1_100, %c0_101, %c0_102] : memref<16x16x64xbf16, #tpu.memory_space<vmem>>, vector<1x16x64xbf16>
    %138 = vector.shape_cast %137 : vector<1x16x64xbf16> to vector<16x64xbf16>
    %cst_103 = arith.constant dense<0.000000e+00> : vector<16x16xf32>
    %139 = tpu.matmul %138, %128, %cst_103 {dimension_numbers = #tpu.dot_dimension_numbers<[1], [0], [0], [1], [0, 0, 1, 1], [], []>} : vector<16x64xbf16>, vector<64x16xbf16>, vector<16x16xf32> -> vector<16x16xf32>
    %140 = arith.truncf %139 : vector<16x16xf32> to vector<16x16xbf16>
    %c16_104 = arith.constant 16 : index
    %c0_105 = arith.constant 0 : index
    %141 = vector.load %arg4[%c16_104, %c0_105] : memref<256x32xbf16, #tpu.memory_space<vmem>>, vector<16x32xbf16>
    %cst_106 = arith.constant dense<0.000000e+00> : vector<16x32xf32>
    %142 = tpu.matmul %140, %141, %cst_106 {dimension_numbers = #tpu.dot_dimension_numbers<[1], [0], [0], [1], [0, 0, 1, 1], [], []>} : vector<16x16xbf16>, vector<16x32xbf16>, vector<16x32xf32> -> vector<16x32xf32>
    %143 = arith.addf %136, %142 : vector<16x32xf32>
    %c2_107 = arith.constant 2 : index
    %c0_108 = arith.constant 0 : index
    %c0_109 = arith.constant 0 : index
    %144 = vector.load %arg7[%c2_107, %c0_108, %c0_109] : memref<16x16x64xbf16, #tpu.memory_space<vmem>>, vector<1x16x64xbf16>
    %145 = vector.shape_cast %144 : vector<1x16x64xbf16> to vector<16x64xbf16>
    %cst_110 = arith.constant dense<0.000000e+00> : vector<16x16xf32>
    %146 = tpu.matmul %145, %128, %cst_110 {dimension_numbers = #tpu.dot_dimension_numbers<[1], [0], [0], [1], [0, 0, 1, 1], [], []>} : vector<16x64xbf16>, vector<64x16xbf16>, vector<16x16xf32> -> vector<16x16xf32>
    %147 = arith.truncf %146 : vector<16x16xf32> to vector<16x16xbf16>
    %c32_111 = arith.constant 32 : index
    %c0_112 = arith.constant 0 : index
    %148 = vector.load %arg4[%c32_111, %c0_112] : memref<256x32xbf16, #tpu.memory_space<vmem>>, vector<16x32xbf16>
    %cst_113 = arith.constant dense<0.000000e+00> : vector<16x32xf32>
    %149 = tpu.matmul %147, %148, %cst_113 {dimension_numbers = #tpu.dot_dimension_numbers<[1], [0], [0], [1], [0, 0, 1, 1], [], []>} : vector<16x16xbf16>, vector<16x32xbf16>, vector<16x32xf32> -> vector<16x32xf32>
    %150 = arith.addf %143, %149 : vector<16x32xf32>
    %c3_114 = arith.constant 3 : index
    %c0_115 = arith.constant 0 : index
    %c0_116 = arith.constant 0 : index
    %151 = vector.load %arg7[%c3_114, %c0_115, %c0_116] : memref<16x16x64xbf16, #tpu.memory_space<vmem>>, vector<1x16x64xbf16>
    %152 = vector.shape_cast %151 : vector<1x16x64xbf16> to vector<16x64xbf16>
    %cst_117 = arith.constant dense<0.000000e+00> : vector<16x16xf32>
    %153 = tpu.matmul %152, %128, %cst_117 {dimension_numbers = #tpu.dot_dimension_numbers<[1], [0], [0], [1], [0, 0, 1, 1], [], []>} : vector<16x64xbf16>, vector<64x16xbf16>, vector<16x16xf32> -> vector<16x16xf32>
    %154 = arith.truncf %153 : vector<16x16xf32> to vector<16x16xbf16>
    %c48_118 = arith.constant 48 : index
    %c0_119 = arith.constant 0 : index
    %155 = vector.load %arg4[%c48_118, %c0_119] : memref<256x32xbf16, #tpu.memory_space<vmem>>, vector<16x32xbf16>
    %cst_120 = arith.constant dense<0.000000e+00> : vector<16x32xf32>
    %156 = tpu.matmul %154, %155, %cst_120 {dimension_numbers = #tpu.dot_dimension_numbers<[1], [0], [0], [1], [0, 0, 1, 1], [], []>} : vector<16x16xbf16>, vector<16x32xbf16>, vector<16x32xf32> -> vector<16x32xf32>
    %157 = arith.addf %150, %156 : vector<16x32xf32>
    %c4_121 = arith.constant 4 : index
    %c0_122 = arith.constant 0 : index
    %c0_123 = arith.constant 0 : index
    %158 = vector.load %arg7[%c4_121, %c0_122, %c0_123] : memref<16x16x64xbf16, #tpu.memory_space<vmem>>, vector<1x16x64xbf16>
    %159 = vector.shape_cast %158 : vector<1x16x64xbf16> to vector<16x64xbf16>
    %cst_124 = arith.constant dense<0.000000e+00> : vector<16x16xf32>
    %160 = tpu.matmul %159, %128, %cst_124 {dimension_numbers = #tpu.dot_dimension_numbers<[1], [0], [0], [1], [0, 0, 1, 1], [], []>} : vector<16x64xbf16>, vector<64x16xbf16>, vector<16x16xf32> -> vector<16x16xf32>
    %161 = arith.truncf %160 : vector<16x16xf32> to vector<16x16xbf16>
    %c64_125 = arith.constant 64 : index
    %c0_126 = arith.constant 0 : index
    %162 = vector.load %arg4[%c64_125, %c0_126] : memref<256x32xbf16, #tpu.memory_space<vmem>>, vector<16x32xbf16>
    %cst_127 = arith.constant dense<0.000000e+00> : vector<16x32xf32>
    %163 = tpu.matmul %161, %162, %cst_127 {dimension_numbers = #tpu.dot_dimension_numbers<[1], [0], [0], [1], [0, 0, 1, 1], [], []>} : vector<16x16xbf16>, vector<16x32xbf16>, vector<16x32xf32> -> vector<16x32xf32>
    %164 = arith.addf %157, %163 : vector<16x32xf32>
    %c5_128 = arith.constant 5 : index
    %c0_129 = arith.constant 0 : index
    %c0_130 = arith.constant 0 : index
    %165 = vector.load %arg7[%c5_128, %c0_129, %c0_130] : memref<16x16x64xbf16, #tpu.memory_space<vmem>>, vector<1x16x64xbf16>
    %166 = vector.shape_cast %165 : vector<1x16x64xbf16> to vector<16x64xbf16>
    %cst_131 = arith.constant dense<0.000000e+00> : vector<16x16xf32>
    %167 = tpu.matmul %166, %128, %cst_131 {dimension_numbers = #tpu.dot_dimension_numbers<[1], [0], [0], [1], [0, 0, 1, 1], [], []>} : vector<16x64xbf16>, vector<64x16xbf16>, vector<16x16xf32> -> vector<16x16xf32>
    %168 = arith.truncf %167 : vector<16x16xf32> to vector<16x16xbf16>
    %c80_132 = arith.constant 80 : index
    %c0_133 = arith.constant 0 : index
    %169 = vector.load %arg4[%c80_132, %c0_133] : memref<256x32xbf16, #tpu.memory_space<vmem>>, vector<16x32xbf16>
    %cst_134 = arith.constant dense<0.000000e+00> : vector<16x32xf32>
    %170 = tpu.matmul %168, %169, %cst_134 {dimension_numbers = #tpu.dot_dimension_numbers<[1], [0], [0], [1], [0, 0, 1, 1], [], []>} : vector<16x16xbf16>, vector<16x32xbf16>, vector<16x32xf32> -> vector<16x32xf32>
    %171 = arith.addf %164, %170 : vector<16x32xf32>
    %c6_135 = arith.constant 6 : index
    %c0_136 = arith.constant 0 : index
    %c0_137 = arith.constant 0 : index
    %172 = vector.load %arg7[%c6_135, %c0_136, %c0_137] : memref<16x16x64xbf16, #tpu.memory_space<vmem>>, vector<1x16x64xbf16>
    %173 = vector.shape_cast %172 : vector<1x16x64xbf16> to vector<16x64xbf16>
    %cst_138 = arith.constant dense<0.000000e+00> : vector<16x16xf32>
    %174 = tpu.matmul %173, %128, %cst_138 {dimension_numbers = #tpu.dot_dimension_numbers<[1], [0], [0], [1], [0, 0, 1, 1], [], []>} : vector<16x64xbf16>, vector<64x16xbf16>, vector<16x16xf32> -> vector<16x16xf32>
    %175 = arith.truncf %174 : vector<16x16xf32> to vector<16x16xbf16>
    %c96_139 = arith.constant 96 : index
    %c0_140 = arith.constant 0 : index
    %176 = vector.load %arg4[%c96_139, %c0_140] : memref<256x32xbf16, #tpu.memory_space<vmem>>, vector<16x32xbf16>
    %cst_141 = arith.constant dense<0.000000e+00> : vector<16x32xf32>
    %177 = tpu.matmul %175, %176, %cst_141 {dimension_numbers = #tpu.dot_dimension_numbers<[1], [0], [0], [1], [0, 0, 1, 1], [], []>} : vector<16x16xbf16>, vector<16x32xbf16>, vector<16x32xf32> -> vector<16x32xf32>
    %178 = arith.addf %171, %177 : vector<16x32xf32>
    %c7_142 = arith.constant 7 : index
    %c0_143 = arith.constant 0 : index
    %c0_144 = arith.constant 0 : index
    %179 = vector.load %arg7[%c7_142, %c0_143, %c0_144] : memref<16x16x64xbf16, #tpu.memory_space<vmem>>, vector<1x16x64xbf16>
    %180 = vector.shape_cast %179 : vector<1x16x64xbf16> to vector<16x64xbf16>
    %cst_145 = arith.constant dense<0.000000e+00> : vector<16x16xf32>
    %181 = tpu.matmul %180, %128, %cst_145 {dimension_numbers = #tpu.dot_dimension_numbers<[1], [0], [0], [1], [0, 0, 1, 1], [], []>} : vector<16x64xbf16>, vector<64x16xbf16>, vector<16x16xf32> -> vector<16x16xf32>
    %182 = arith.truncf %181 : vector<16x16xf32> to vector<16x16xbf16>
    %c112_146 = arith.constant 112 : index
    %c0_147 = arith.constant 0 : index
    %183 = vector.load %arg4[%c112_146, %c0_147] : memref<256x32xbf16, #tpu.memory_space<vmem>>, vector<16x32xbf16>
    %cst_148 = arith.constant dense<0.000000e+00> : vector<16x32xf32>
    %184 = tpu.matmul %182, %183, %cst_148 {dimension_numbers = #tpu.dot_dimension_numbers<[1], [0], [0], [1], [0, 0, 1, 1], [], []>} : vector<16x16xbf16>, vector<16x32xbf16>, vector<16x32xf32> -> vector<16x32xf32>
    %185 = arith.addf %178, %184 : vector<16x32xf32>
    %c8_149 = arith.constant 8 : index
    %c0_150 = arith.constant 0 : index
    %c0_151 = arith.constant 0 : index
    %186 = vector.load %arg7[%c8_149, %c0_150, %c0_151] : memref<16x16x64xbf16, #tpu.memory_space<vmem>>, vector<1x16x64xbf16>
    %187 = vector.shape_cast %186 : vector<1x16x64xbf16> to vector<16x64xbf16>
    %cst_152 = arith.constant dense<0.000000e+00> : vector<16x16xf32>
    %188 = tpu.matmul %187, %128, %cst_152 {dimension_numbers = #tpu.dot_dimension_numbers<[1], [0], [0], [1], [0, 0, 1, 1], [], []>} : vector<16x64xbf16>, vector<64x16xbf16>, vector<16x16xf32> -> vector<16x16xf32>
    %189 = arith.truncf %188 : vector<16x16xf32> to vector<16x16xbf16>
    %c128 = arith.constant 128 : index
    %c0_153 = arith.constant 0 : index
    %190 = vector.load %arg4[%c128, %c0_153] : memref<256x32xbf16, #tpu.memory_space<vmem>>, vector<16x32xbf16>
    %cst_154 = arith.constant dense<0.000000e+00> : vector<16x32xf32>
    %191 = tpu.matmul %189, %190, %cst_154 {dimension_numbers = #tpu.dot_dimension_numbers<[1], [0], [0], [1], [0, 0, 1, 1], [], []>} : vector<16x16xbf16>, vector<16x32xbf16>, vector<16x32xf32> -> vector<16x32xf32>
    %192 = arith.addf %185, %191 : vector<16x32xf32>
    %c9_155 = arith.constant 9 : index
    %c0_156 = arith.constant 0 : index
    %c0_157 = arith.constant 0 : index
    %193 = vector.load %arg7[%c9_155, %c0_156, %c0_157] : memref<16x16x64xbf16, #tpu.memory_space<vmem>>, vector<1x16x64xbf16>
    %194 = vector.shape_cast %193 : vector<1x16x64xbf16> to vector<16x64xbf16>
    %cst_158 = arith.constant dense<0.000000e+00> : vector<16x16xf32>
    %195 = tpu.matmul %194, %128, %cst_158 {dimension_numbers = #tpu.dot_dimension_numbers<[1], [0], [0], [1], [0, 0, 1, 1], [], []>} : vector<16x64xbf16>, vector<64x16xbf16>, vector<16x16xf32> -> vector<16x16xf32>
    %196 = arith.truncf %195 : vector<16x16xf32> to vector<16x16xbf16>
    %c144 = arith.constant 144 : index
    %c0_159 = arith.constant 0 : index
    %197 = vector.load %arg4[%c144, %c0_159] : memref<256x32xbf16, #tpu.memory_space<vmem>>, vector<16x32xbf16>
    %cst_160 = arith.constant dense<0.000000e+00> : vector<16x32xf32>
    %198 = tpu.matmul %196, %197, %cst_160 {dimension_numbers = #tpu.dot_dimension_numbers<[1], [0], [0], [1], [0, 0, 1, 1], [], []>} : vector<16x16xbf16>, vector<16x32xbf16>, vector<16x32xf32> -> vector<16x32xf32>
    %199 = arith.addf %192, %198 : vector<16x32xf32>
    %c10_161 = arith.constant 10 : index
    %c0_162 = arith.constant 0 : index
    %c0_163 = arith.constant 0 : index
    %200 = vector.load %arg7[%c10_161, %c0_162, %c0_163] : memref<16x16x64xbf16, #tpu.memory_space<vmem>>, vector<1x16x64xbf16>
    %201 = vector.shape_cast %200 : vector<1x16x64xbf16> to vector<16x64xbf16>
    %cst_164 = arith.constant dense<0.000000e+00> : vector<16x16xf32>
    %202 = tpu.matmul %201, %128, %cst_164 {dimension_numbers = #tpu.dot_dimension_numbers<[1], [0], [0], [1], [0, 0, 1, 1], [], []>} : vector<16x64xbf16>, vector<64x16xbf16>, vector<16x16xf32> -> vector<16x16xf32>
    %203 = arith.truncf %202 : vector<16x16xf32> to vector<16x16xbf16>
    %c160 = arith.constant 160 : index
    %c0_165 = arith.constant 0 : index
    %204 = vector.load %arg4[%c160, %c0_165] : memref<256x32xbf16, #tpu.memory_space<vmem>>, vector<16x32xbf16>
    %cst_166 = arith.constant dense<0.000000e+00> : vector<16x32xf32>
    %205 = tpu.matmul %203, %204, %cst_166 {dimension_numbers = #tpu.dot_dimension_numbers<[1], [0], [0], [1], [0, 0, 1, 1], [], []>} : vector<16x16xbf16>, vector<16x32xbf16>, vector<16x32xf32> -> vector<16x32xf32>
    %206 = arith.addf %199, %205 : vector<16x32xf32>
    %c11_167 = arith.constant 11 : index
    %c0_168 = arith.constant 0 : index
    %c0_169 = arith.constant 0 : index
    %207 = vector.load %arg7[%c11_167, %c0_168, %c0_169] : memref<16x16x64xbf16, #tpu.memory_space<vmem>>, vector<1x16x64xbf16>
    %208 = vector.shape_cast %207 : vector<1x16x64xbf16> to vector<16x64xbf16>
    %cst_170 = arith.constant dense<0.000000e+00> : vector<16x16xf32>
    %209 = tpu.matmul %208, %128, %cst_170 {dimension_numbers = #tpu.dot_dimension_numbers<[1], [0], [0], [1], [0, 0, 1, 1], [], []>} : vector<16x64xbf16>, vector<64x16xbf16>, vector<16x16xf32> -> vector<16x16xf32>
    %210 = arith.truncf %209 : vector<16x16xf32> to vector<16x16xbf16>
    %c176 = arith.constant 176 : index
    %c0_171 = arith.constant 0 : index
    %211 = vector.load %arg4[%c176, %c0_171] : memref<256x32xbf16, #tpu.memory_space<vmem>>, vector<16x32xbf16>
    %cst_172 = arith.constant dense<0.000000e+00> : vector<16x32xf32>
    %212 = tpu.matmul %210, %211, %cst_172 {dimension_numbers = #tpu.dot_dimension_numbers<[1], [0], [0], [1], [0, 0, 1, 1], [], []>} : vector<16x16xbf16>, vector<16x32xbf16>, vector<16x32xf32> -> vector<16x32xf32>
    %213 = arith.addf %206, %212 : vector<16x32xf32>
    %c12_173 = arith.constant 12 : index
    %c0_174 = arith.constant 0 : index
    %c0_175 = arith.constant 0 : index
    %214 = vector.load %arg7[%c12_173, %c0_174, %c0_175] : memref<16x16x64xbf16, #tpu.memory_space<vmem>>, vector<1x16x64xbf16>
    %215 = vector.shape_cast %214 : vector<1x16x64xbf16> to vector<16x64xbf16>
    %cst_176 = arith.constant dense<0.000000e+00> : vector<16x16xf32>
    %216 = tpu.matmul %215, %128, %cst_176 {dimension_numbers = #tpu.dot_dimension_numbers<[1], [0], [0], [1], [0, 0, 1, 1], [], []>} : vector<16x64xbf16>, vector<64x16xbf16>, vector<16x16xf32> -> vector<16x16xf32>
    %217 = arith.truncf %216 : vector<16x16xf32> to vector<16x16xbf16>
    %c192 = arith.constant 192 : index
    %c0_177 = arith.constant 0 : index
    %218 = vector.load %arg4[%c192, %c0_177] : memref<256x32xbf16, #tpu.memory_space<vmem>>, vector<16x32xbf16>
    %cst_178 = arith.constant dense<0.000000e+00> : vector<16x32xf32>
    %219 = tpu.matmul %217, %218, %cst_178 {dimension_numbers = #tpu.dot_dimension_numbers<[1], [0], [0], [1], [0, 0, 1, 1], [], []>} : vector<16x16xbf16>, vector<16x32xbf16>, vector<16x32xf32> -> vector<16x32xf32>
    %220 = arith.addf %213, %219 : vector<16x32xf32>
    %c13_179 = arith.constant 13 : index
    %c0_180 = arith.constant 0 : index
    %c0_181 = arith.constant 0 : index
    %221 = vector.load %arg7[%c13_179, %c0_180, %c0_181] : memref<16x16x64xbf16, #tpu.memory_space<vmem>>, vector<1x16x64xbf16>
    %222 = vector.shape_cast %221 : vector<1x16x64xbf16> to vector<16x64xbf16>
    %cst_182 = arith.constant dense<0.000000e+00> : vector<16x16xf32>
    %223 = tpu.matmul %222, %128, %cst_182 {dimension_numbers = #tpu.dot_dimension_numbers<[1], [0], [0], [1], [0, 0, 1, 1], [], []>} : vector<16x64xbf16>, vector<64x16xbf16>, vector<16x16xf32> -> vector<16x16xf32>
    %224 = arith.truncf %223 : vector<16x16xf32> to vector<16x16xbf16>
    %c208 = arith.constant 208 : index
    %c0_183 = arith.constant 0 : index
    %225 = vector.load %arg4[%c208, %c0_183] : memref<256x32xbf16, #tpu.memory_space<vmem>>, vector<16x32xbf16>
    %cst_184 = arith.constant dense<0.000000e+00> : vector<16x32xf32>
    %226 = tpu.matmul %224, %225, %cst_184 {dimension_numbers = #tpu.dot_dimension_numbers<[1], [0], [0], [1], [0, 0, 1, 1], [], []>} : vector<16x16xbf16>, vector<16x32xbf16>, vector<16x32xf32> -> vector<16x32xf32>
    %227 = arith.addf %220, %226 : vector<16x32xf32>
    %c14_185 = arith.constant 14 : index
    %c0_186 = arith.constant 0 : index
    %c0_187 = arith.constant 0 : index
    %228 = vector.load %arg7[%c14_185, %c0_186, %c0_187] : memref<16x16x64xbf16, #tpu.memory_space<vmem>>, vector<1x16x64xbf16>
    %229 = vector.shape_cast %228 : vector<1x16x64xbf16> to vector<16x64xbf16>
    %cst_188 = arith.constant dense<0.000000e+00> : vector<16x16xf32>
    %230 = tpu.matmul %229, %128, %cst_188 {dimension_numbers = #tpu.dot_dimension_numbers<[1], [0], [0], [1], [0, 0, 1, 1], [], []>} : vector<16x64xbf16>, vector<64x16xbf16>, vector<16x16xf32> -> vector<16x16xf32>
    %231 = arith.truncf %230 : vector<16x16xf32> to vector<16x16xbf16>
    %c224 = arith.constant 224 : index
    %c0_189 = arith.constant 0 : index
    %232 = vector.load %arg4[%c224, %c0_189] : memref<256x32xbf16, #tpu.memory_space<vmem>>, vector<16x32xbf16>
    %cst_190 = arith.constant dense<0.000000e+00> : vector<16x32xf32>
    %233 = tpu.matmul %231, %232, %cst_190 {dimension_numbers = #tpu.dot_dimension_numbers<[1], [0], [0], [1], [0, 0, 1, 1], [], []>} : vector<16x16xbf16>, vector<16x32xbf16>, vector<16x32xf32> -> vector<16x32xf32>
    %234 = arith.addf %227, %233 : vector<16x32xf32>
    %c15_191 = arith.constant 15 : index
    %c0_192 = arith.constant 0 : index
    %c0_193 = arith.constant 0 : index
    %235 = vector.load %arg7[%c15_191, %c0_192, %c0_193] : memref<16x16x64xbf16, #tpu.memory_space<vmem>>, vector<1x16x64xbf16>
    %236 = vector.shape_cast %235 : vector<1x16x64xbf16> to vector<16x64xbf16>
    %cst_194 = arith.constant dense<0.000000e+00> : vector<16x16xf32>
    %237 = tpu.matmul %236, %128, %cst_194 {dimension_numbers = #tpu.dot_dimension_numbers<[1], [0], [0], [1], [0, 0, 1, 1], [], []>} : vector<16x64xbf16>, vector<64x16xbf16>, vector<16x16xf32> -> vector<16x16xf32>
    %238 = arith.truncf %237 : vector<16x16xf32> to vector<16x16xbf16>
    %c240 = arith.constant 240 : index
    %c0_195 = arith.constant 0 : index
    %239 = vector.load %arg4[%c240, %c0_195] : memref<256x32xbf16, #tpu.memory_space<vmem>>, vector<16x32xbf16>
    %cst_196 = arith.constant dense<0.000000e+00> : vector<16x32xf32>
    %240 = tpu.matmul %238, %239, %cst_196 {dimension_numbers = #tpu.dot_dimension_numbers<[1], [0], [0], [1], [0, 0, 1, 1], [], []>} : vector<16x16xbf16>, vector<16x32xbf16>, vector<16x32xf32> -> vector<16x32xf32>
    %241 = arith.addf %234, %240 : vector<16x32xf32>
    %cst_197 = arith.constant 0.000000e+00 : f32
    %242 = vector.broadcast %cst_197 : f32 to vector<16x32xf32>
    %243 = arith.cmpf oge, %241, %242 : vector<16x32xf32>
    %cst_198 = arith.constant 2.000000e-01 : f32
    %244 = vector.broadcast %cst_198 : f32 to vector<16x32xf32>
    %245 = arith.mulf %244, %241 : vector<16x32xf32>
    %246 = arith.select %243, %241, %245 : vector<16x32xi1>, vector<16x32xf32>
    %c0_199 = arith.constant 0 : index
    %c0_200 = arith.constant 0 : index
    %247 = vector.load %arg5[%c0_199, %c0_200] : memref<16x32xf32, #tpu.memory_space<vmem>>, vector<16x32xf32>
    %248 = arith.mulf %246, %247 : vector<16x32xf32>
    %249 = vector.shape_cast %248 : vector<16x32xf32> to vector<1x16x32xf32>
    %cst_201 = arith.constant dense<0.000000e+00> : vector<1xf32>
    %250 = vector.multi_reduction <add>, %249, %cst_201 [1, 2] : vector<1x16x32xf32> to vector<1xf32>
    %251 = vector.shape_cast %250 : vector<1xf32> to vector<1x1x1xf32>
    %252 = vector.extract %251[0, 0, 0] : f32 from vector<1x1x1xf32>
    %253 = vector.broadcast %252 : f32 to vector<1x1xf32>
    %cst_202 = arith.constant 0.000000e+00 : f32
    %254 = vector.broadcast %cst_202 : f32 to vector<1x1xf32>
    %255 = arith.subf %254, %253 : vector<1x1xf32>
    %256 = math.exp %255 : vector<1x1xf32>
    %cst_203 = arith.constant 1.000000e+00 : f32
    %257 = vector.broadcast %cst_203 : f32 to vector<1x1xf32>
    %258 = arith.addf %257, %256 : vector<1x1xf32>
    %259 = tpu.reciprocal %258 {approx = true} : vector<1x1xf32> -> vector<1x1xf32>
    %c0_204 = arith.constant 0 : index
    %c0_205 = arith.constant 0 : index
    %c0_206 = arith.constant 0 : index
    %260 = vector.load %arg8[%c0_204, %c0_205, %c0_206] : memref<1x1x1xf32, #tpu.memory_space<vmem>>, vector<1x1x1xf32>
    %261 = vector.shape_cast %260 : vector<1x1x1xf32> to vector<1x1xf32>
    %262 = vector.shape_cast %259 : vector<1x1xf32> to vector<1x1x1xf32>
    tpu.vector_store %arg8[%c0_204, %c0_205, %c0_206], %262 {strides = array<i32>} : memref<1x1x1xf32, #tpu.memory_space<vmem>>, vector<1x1x1xf32>,
    return
  }
  func.func @transform_0(%arg0: i32) -> (i32, i32, i32) {
    %c0_i32 = arith.constant 0 : i32
    %c0_i32_0 = arith.constant 0 : i32
    %c0_i32_1 = arith.constant 0 : i32
    return %arg0, %c0_i32, %c0_i32_0 : i32, i32, i32
  }
  func.func @transform_1(%arg0: i32) -> (i32, i32) {
    %c0_i32 = arith.constant 0 : i32
    %c0_i32_0 = arith.constant 0 : i32
    %c0_i32_1 = arith.constant 0 : i32
    return %c0_i32, %c0_i32_0 : i32, i32
  }
  func.func @transform_2(%arg0: i32) -> (i32, i32) {
    %c0_i32 = arith.constant 0 : i32
    %c0_i32_0 = arith.constant 0 : i32
    %c0_i32_1 = arith.constant 0 : i32
    return %c0_i32, %c0_i32_0 : i32, i32
  }
  func.func @transform_3(%arg0: i32) -> (i32, i32) {
    %c0_i32 = arith.constant 0 : i32
    %c0_i32_0 = arith.constant 0 : i32
    %c0_i32_1 = arith.constant 0 : i32
    return %c0_i32, %c0_i32_0 : i32, i32
  }
  func.func @transform_4(%arg0: i32) -> (i32, i32) {
    %c0_i32 = arith.constant 0 : i32
    %c0_i32_0 = arith.constant 0 : i32
    %c0_i32_1 = arith.constant 0 : i32
    return %c0_i32, %c0_i32_0 : i32, i32
  }
  func.func @transform_5(%arg0: i32) -> (i32, i32, i32) {
    %c0_i32 = arith.constant 0 : i32
    %c0_i32_0 = arith.constant 0 : i32
    %c0_i32_1 = arith.constant 0 : i32
    %c0_i32_2 = arith.constant 0 : i32
    return %c0_i32, %c0_i32_0, %c0_i32_1 : i32, i32, i32
  }
  func.func @transform_6(%arg0: i32) -> (i32, i32, i32) {
    %c0_i32 = arith.constant 0 : i32
    %c0_i32_0 = arith.constant 0 : i32
    %c0_i32_1 = arith.constant 0 : i32
    %c0_i32_2 = arith.constant 0 : i32
    return %c0_i32, %c0_i32_0, %c0_i32_1 : i32, i32, i32
  }
  func.func @transform_7(%arg0: i32) -> (i32, i32, i32) {
    %c0_i32 = arith.constant 0 : i32
    %c0_i32_0 = arith.constant 0 : i32
    %c0_i32_1 = arith.constant 0 : i32
    return %arg0, %c0_i32, %c0_i32_0 : i32, i32, i32
  }
}

</mosaic_0001>

<bundles_post_ra>
// kernel: cdcgan_discriminator_forward.1
= control target key start
LH: loop header
LB: loop body
LE: loop exit
PB: predicated region body
PF: predicated region fallthrough
CT: control target
= control target key end

     0   :  { %s7975_s24 = smov 0   ;;  %s9507_s0 = inlined_call_operand.vmem [shape: bf16[2,256,128], index: 0, kind: input, shape index: {}]   ;;  %s9508_s1 = inlined_call_operand.vmem [shape: bf16[128,8], index: 1, kind: input, shape index: {}]   ;;  %s9509_s2 = inlined_call_operand.vmem [shape: bf16[128,16], index: 2, kind: input, shape index: {}]   ;;  %s9510_s3 = inlined_call_operand.vmem [shape: bf16[256,32], index: 3, kind: input, shape index: {}]   ;;  %s9511_s4 = inlined_call_operand.vmem [shape: f32[16,32], index: 4, kind: input, shape index: {}]   ;;  %s9512_s5 = inlined_call_operand.vmem [shape: bf16[16,64,256], index: 5, kind: input, shape index: {}]   ;;  %s9513_s6 = inlined_call_operand.vmem [shape: bf16[16,16,64], index: 6, kind: input, shape index: {}]   ;;  %s9514_s7 = inlined_call_operand.vmem [shape: f32[2,1,1], index: 7, kind: output, shape index: {}]  }
   0x1 LB: > { %s5853_s25 = sadd.s32 4294967295, %s7931_s24   ;;  %p5857_p0 = scmp.ge.s32.totalorder %s7931_s24, 1  ;;  %s7931_s24 = sphi %s7975_s24, %s17_s24  }
   0x2   : > { %p237_p1 = scmp.lt.s32.totalorder %s7931_s24, 3 }
   0x4   : > { %p238_p2 = pnand %p5857_p0, %p237_p1 }
   0x6   : > { %241 = sbr.rel (%p238_p2) target bundleno = 6600 (0x19c8), region = 48 }
   0xb   : > { %v7673_v0 = vld [vmem:[%s9508_s1 + $0x38] sm:$0xff]   ;;  %p267_p3 = scmp.lt.s32.totalorder %s5853_s25, 1  ;;  %v7674_v1 = vld [vmem:[%s9508_s1 + $0x30] sm:$0xff]   ;;  %v7675_v2 = vld [vmem:[%s9508_s1 + $0x28] sm:$0xff]   ;;  %vm991_vm0 = vcmask 1043456  }
   0xc   : > { %7149 = vmatprep.subr.bf16.mxu0 %v7673_v0  ;;  %v7676_v3 = vld [vmem:[%s9508_s1 + $0x20] sm:$0xff]   ;;  %v7677_v5 = vld [vmem:[%s9508_s1 + $0x18] sm:$0xff]   ;;  %v7678_v6 = vld [vmem:[%s9508_s1 + $0x10] sm:$0xff]  }
   0xd   : > { %s9522_s25 = smov (!%p267_p3, %s5853_s25), 1  ;;  %7150 = vmatpush3.bf16.msra.mxu0 %v7673_v0  ;;  %v7679_v7 = vld [vmem:[%s9508_s1 + $0x8] sm:$0xff]   ;;  %v7680_v8 = vld [vmem:[%s9508_s1] sm:$0xff]  }
   0xe   : > { %7151 = vmatprep.subr.bf16.mxu0 %v7674_v1  ;;  %s6292_s9 = sshll.u32 %s9522_s25, 7  ;;  %v977_v24 = vld [vmem:[%s9509_s2 + $0x4] sm:$0xf]  ;;  %s274_s27 = scalar_lea.vmem %s9514_s7, %s9522_s25 }
   0xf   : > { %s7998_s12 = scalar_lea.vmem %s9507_s0, %s6292_s9  ;;  %v993_v25 = vsel %vm991_vm0, %v977_v24, 0  ;;  %v7699_v26 = vld [vmem:[%s9512_s5 + $0x4] ss:$8 sps:$4 sm:$0xff]  }
  0x10   : > { %v7681_v4 = vld [vmem:[%s7998_s12] sm:$0xff]   ;;  %v7682_v9 = vld [vmem:[%s7998_s12 + $0x8] sm:$0xff]   ;;  %v7683_v10 = vld [vmem:[%s7998_s12 + $0x10] sm:$0xff]   ;;  %821 = vmatprep.mubr.bf16.mxu1 %v7699_v26 }
  0x11   : > { %7152 = vmatpush3.bf16.msra.mxu0 %v7674_v1  ;;  %7165 = vmatprep.mubr.bf16.mxu0 %v7681_v4  ;;  %v7684_v11 = vld [vmem:[%s7998_s12 + $0x18] sm:$0xff]   ;;  %v7685_v12 = vld [vmem:[%s7998_s12 + $0x20] sm:$0xff]   ;;  %v7686_v13 = vld [vmem:[%s7998_s12 + $0x28] sm:$0xff]  }
  0x12   : > { %7153 = vmatprep.subr.bf16.mxu0 %v7675_v2  ;;  %v7687_v14 = vld [vmem:[%s7998_s12 + $0x30] sm:$0xff]   ;;  %v7688_v15 = vld [vmem:[%s7998_s12 + $0x38] sm:$0xff]   ;;  %v7689_v16 = vld [vmem:[%s7998_s12 + $0x40] sm:$0xff]  }
  0x13   : > { %v7690_v17 = vld [vmem:[%s7998_s12 + $0x48] sm:$0xff]   ;;  %v7691_v18 = vld [vmem:[%s7998_s12 + $0x50] sm:$0xff]   ;;  %v7692_v19 = vld [vmem:[%s7998_s12 + $0x58] sm:$0xff]  }
  0x14   : > { %v7693_v20 = vld [vmem:[%s7998_s12 + $0x60] sm:$0xff]   ;;  %v7694_v21 = vld [vmem:[%s7998_s12 + $0x68] sm:$0xff]   ;;  %v7695_v22 = vld [vmem:[%s7998_s12 + $0x70] sm:$0xff]  }
  0x15   : > { %7154 = vmatpush3.bf16.msra.mxu0 %v7675_v2  ;;  %v7696_v23 = vld [vmem:[%s7998_s12 + $0x78] sm:$0xff]  }
  0x16   : > { %7155 = vmatprep.subr.bf16.mxu0 %v7676_v3 }
  0x19   : > { %7156 = vmatpush3.bf16.msra.mxu0 %v7676_v3 }
  0x1a   : > { %7157 = vmatprep.subr.bf16.mxu0 %v7677_v5 }
  0x1d   : > { %7158 = vmatpush3.bf16.msra.mxu0 %v7677_v5 }
  0x1e   : > { %7159 = vmatprep.subr.bf16.mxu0 %v7678_v6 }
  0x21   : > { %7160 = vmatpush3.bf16.msra.mxu0 %v7678_v6 }
  0x22   : > { %7161 = vmatprep.subr.bf16.mxu0 %v7679_v7 }
  0x25   : > { %7162 = vmatpush3.bf16.msra.mxu0 %v7679_v7 }
  0x26   : > { %7163 = vmatprep.subr.bf16.mxu0 %v7680_v8 }
  0x29   : > { %7164 = vmatpush3.bf16.msra.mxu0 %v7680_v8 }
  0x2a   : > { %7645 = vmatprep.subr.msk.bf16.mxu0 %vm991_vm0, %v977_v24 }
  0x2c   : > { %7166 = vmatmul.mubr.bf16.vlgmr.msra.gmra.mxu0 %v7682_v9 }
  0x2d   : > { %7169 = vmatprep.mubr.bf16.mxu0 %v7683_v10  ;;  %7198 = vmatpush3.bf16.msra.mxu0 %v993_v25 }
  0x34   : > { %7170 = vmatmul.mubr.bf16.gmra.mxu0 %v7684_v11 }
  0x35   : > { %7173 = vmatprep.mubr.bf16.mxu0 %v7685_v12 }
  0x3c   : > { %7174 = vmatmul.mubr.bf16.gmra.mxu0 %v7686_v13 }
  0x3d   : > { %7177 = vmatprep.mubr.bf16.mxu0 %v7687_v14 }
  0x44   : > { %7178 = vmatmul.mubr.bf16.gmra.mxu0 %v7688_v15 }
  0x45   : > { %7181 = vmatprep.mubr.bf16.mxu0 %v7689_v16 }
  0x4c   : > { %7182 = vmatmul.mubr.bf16.gmra.mxu0 %v7690_v17 }
  0x4d   : > { %7185 = vmatprep.mubr.bf16.mxu0 %v7691_v18 }
  0x54   : > { %7186 = vmatmul.mubr.bf16.gmra.mxu0 %v7692_v19 }
  0x55   : > { %7189 = vmatprep.mubr.bf16.mxu0 %v7693_v20 }
  0x5c   : > { %7190 = vmatmul.mubr.bf16.gmra.mxu0 %v7694_v21 }
  0x5d   : > { %7193 = vmatprep.mubr.bf16.mxu0 %v7695_v22 }
  0x64   : > { %7194 = vmatmul.mubr.bf16.gmra.mxu0 %v7696_v23 }
  0xec   : > { %v7167_v27 = vpop.f32.mrf.mxu0 }
  0xed   : > { %v663_v29 = vmul.f32 0.2, %v7167_v27  ;;  %vm631_vm1 = vcmp.ge.f32.partialorder %v7167_v27, 0.0 }
  0xee   : > { %v8039_v28 = vpop.f32.mrf.mxu0 }
  0xef   : > { %v695_v33 = vsel %vm631_vm1, %v7167_v27, %v663_v29 }
  0xf0   : > { %v7168_v30 = vpop.f32.mrf.mxu0 }
  0xf1   : > { %vm632_vm2 = vcmp.ge.f32.partialorder %v7168_v30, 0.0  ;;  %v664_v31 = vmul.f32 0.2, %v7168_v30 }
  0xf2   : > { %v8041_v32 = vpop.f32.mrf.mxu0 }
  0xf3   : > { %v696_v34 = vsel %vm632_vm2, %v7168_v30, %v664_v31 }
  0xf4   : > { %v8043_v35 = vpack.c.bf16 %v696_v34, %v695_v33  ;;  %v7171_v36 = vpop.f32.mrf.mxu0 }
  0xf5   : > { %v667_v38 = vmul.f32 0.2, %v7171_v36  ;;  %vm635_vm3 = vcmp.ge.f32.partialorder %v7171_v36, 0.0 }
  0xf6   : > { %v8045_v37 = vpop.f32.mrf.mxu0 }
  0xf7   : > { %v699_v42 = vsel %vm635_vm3, %v7171_v36, %v667_v38 }
  0xf8   : > { %v7172_v39 = vpop.f32.mrf.mxu0 }
  0xf9   : > { %vm636_vm4 = vcmp.ge.f32.partialorder %v7172_v39, 0.0  ;;  %v668_v40 = vmul.f32 0.2, %v7172_v39 }
  0xfa   : > { %v8047_v41 = vpop.f32.mrf.mxu0 }
  0xfb   : > { %v700_v43 = vsel %vm636_vm4, %v7172_v39, %v668_v40 }
  0xfc   : > { %v8049_v44 = vpack.c.bf16 %v700_v43, %v699_v42  ;;  %v8051_v45 = vpop.f32.mrf.mxu0 }
  0xfd   : > { %v671_v29 = vmul.f32 0.2, %v8051_v45  ;;  %vm639_vm2 = vcmp.ge.f32.partialorder %v8051_v45, 0.0 }
  0xfe   : > { %v8053_v46 = vpop.f32.mrf.mxu0 }
  0xff   : > { %v703_v43 = vsel %vm639_vm2, %v8051_v45, %v671_v29  ;;  %vm629_vm2 = vcmp.ge.f32.partialorder %v8039_v28, 0.0  ;;  %v7717_v29 = vld [vmem:[%s9512_s5 + $0x60] ss:$8 sps:$4 sm:$0xff]  }
 0x100   : > { %v8055_v47 = vpop.f32.mrf.mxu0 }
 0x101   : > { %v672_v23 = vmul.f32 0.2, %v8055_v47  ;;  %vm640_vm15 = vcmp.ge.f32.partialorder %v8055_v47, 0.0 }
 0x102   : > { %v8057_v48 = vpop.f32.mrf.mxu0 }
 0x103   : > { %v704_v36 = vsel %vm640_vm15, %v8055_v47, %v672_v23  ;;  %v670_v38 = vmul.f32 0.2, %v8057_v48  ;;  %vm638_vm4 = vcmp.ge.f32.partialorder %v8057_v48, 0.0  ;;  %v7709_v23 = vld [vmem:[%s9512_s5 + $0x40] ss:$8 sps:$4 sm:$0xff]  }
 0x104   : > { %v7179_v49 = vpop.f32.mrf.mxu0  ;;  %v8109_v47 = vpack.c.bf16 %v704_v36, %v703_v43 }
 0x105   : > { %v675_v1 = vmul.f32 0.2, %v7179_v49  ;;  %vm643_vm5 = vcmp.ge.f32.partialorder %v7179_v49, 0.0 }
 0x106   : > { %v550_v50 = vpop.f32.mrf.mxu0 }
 0x107   : > { %v707_v6 = vsel %vm643_vm5, %v7179_v49, %v675_v1  ;;  %vm641_vm12 = vcmp.ge.f32.partialorder %v550_v50, 0.0  ;;  %v673_v17 = vmul.f32 0.2, %v550_v50  ;;  %v669_v49 = vmul.f32 0.2, %v8053_v46 }
 0x108   : > { %v7180_v51 = vpop.f32.mrf.mxu0 }
 0x109   : > { %v676_v3 = vmul.f32 0.2, %v7180_v51  ;;  %vm644_vm6 = vcmp.ge.f32.partialorder %v7180_v51, 0.0  ;;  %v705_v30 = vsel %vm641_vm12, %v550_v50, %v673_v17  ;;  %vm633_vm12 = vcmp.ge.f32.partialorder %v8045_v37, 0.0  ;;  %v7705_v17 = vld [vmem:[%s9512_s5 + $0x20] ss:$8 sps:$4 sm:$0xff]  }
 0x10a   : > { %v553_v52 = vpop.f32.mrf.mxu0 }
 0x10b   : > { %v708_v8 = vsel %vm644_vm6, %v7180_v51, %v676_v3  ;;  %vm642_vm9 = vcmp.ge.f32.partialorder %v553_v52, 0.0  ;;  %v674_v11 = vmul.f32 0.2, %v553_v52  ;;  %vm637_vm6 = vcmp.ge.f32.partialorder %v8053_v46, 0.0 }
 0x10c   : > { %v8059_v53 = vpop.f32.mrf.mxu0  ;;  %v8079_v19 = vpack.c.bf16 %v708_v8, %v707_v6 }
 0x10d   : > { %v706_v24 = vsel %vm642_vm9, %v553_v52, %v674_v11  ;;  %v702_v52 = vsel %vm638_vm4, %v8057_v48, %v670_v38  ;;  %v662_v11 = vmul.f32 0.2, %v8041_v32  ;;  %v1258_v38 = vld [vmem:[%s9509_s2 + $0x8] sm:$0xf] }
 0x10e   : > { %v8061_v54 = vpop.f32.mrf.mxu0  ;;  %v8093_v31 = vpack.c.bf16 %v706_v24, %v705_v30  ;;  %v7712_v24 = vld [vmem:[%s9512_s5 + $0x54] ss:$8 sps:$4 sm:$0xff]  }
 0x10f   : > { %vm645_vm15 = vcmp.ge.f32.partialorder %v8061_v54, 0.0  ;;  %v7718_v30 = vld [vmem:[%s9512_s5 + $0x74] ss:$8 sps:$4 sm:$0xff]  }
 0x110   : > { %v8063_v55 = vpop.f32.mrf.mxu0 }
 0x112   : > { %v8065_v56 = vpop.f32.mrf.mxu0 }
 0x113   : > { %v678_v8 = vmul.f32 0.2, %v8065_v56 }
 0x114   : > { %v8067_v57 = vpop.f32.mrf.mxu0 }
 0x115   : > { %v683_v50 = vmul.f32 0.2, %v8067_v57 }
 0x116   : > { %v8069_v58 = vpop.f32.mrf.mxu0 }
 0x117   : > { %vm649_vm9 = vcmp.ge.f32.partialorder %v8069_v58, 0.0 }
 0x118   : > { %v8071_v59 = vpop.f32.mrf.mxu0 }
 0x119   : > { %v684_v40 = vmul.f32 0.2, %v8071_v59  ;;  %vm652_vm5 = vcmp.ge.f32.partialorder %v8071_v59, 0.0 }
 0x11a   : > { %v8073_v60 = vpop.f32.mrf.mxu0 }
 0x11b   : > { %v716_v45 = vsel %vm652_vm5, %v8071_v59, %v684_v40 }
 0x11c   : > { %v7191_v61 = vpop.f32.mrf.mxu0 }
 0x11d   : > { %v687_v20 = vmul.f32 0.2, %v7191_v61  ;;  %vm655_vm14 = vcmp.ge.f32.partialorder %v7191_v61, 0.0 }
 0x11e   : > { %v8075_v62 = vpop.f32.mrf.mxu0 }
 0x11f   : > { %v719_v33 = vsel %vm655_vm14, %v7191_v61, %v687_v20  ;;  %v685_v34 = vmul.f32 0.2, %v8075_v62  ;;  %vm653_vm3 = vcmp.ge.f32.partialorder %v8075_v62, 0.0  ;;  %vm646_vm14 = vcmp.ge.f32.partialorder %v8065_v56, 0.0  ;;  %v7706_v20 = vld [vmem:[%s9512_s5 + $0x34] ss:$8 sps:$4 sm:$0xff]  }
 0x120   : > { %v7192_v63 = vpop.f32.mrf.mxu0 }
 0x121   : > { %v688_v12 = vmul.f32 0.2, %v7192_v63  ;;  %vm656_vm13 = vcmp.ge.f32.partialorder %v7192_v63, 0.0  ;;  %v717_v51 = vsel %vm653_vm3, %v8075_v62, %v685_v34  ;;  %v681_v62 = vmul.f32 0.2, %v8069_v58 }
 0x122   : > { %v601_v0 = vpop.f32.mrf.mxu0  ;;  %v858_v34 = vld [vmem:[%s9509_s2] sm:$0xf]  ;;  %vm978_vm3 = vcmask 64512  }
 0x123   : > { %v720_v26 = vsel %vm656_vm13, %v7192_v63, %v688_v12  ;;  %v686_v27 = vmul.f32 0.2, %v601_v0  ;;  %vm654_vm1 = vcmp.ge.f32.partialorder %v601_v0, 0.0  ;;  %v682_v63 = vmul.f32 0.2, %v8073_v60 }
 0x124   : > { %v7195_v2 = vpop.f32.mrf.mxu0  ;;  %v8099_v39 = vpack.c.bf16 %v720_v26, %v719_v33  ;;  %vm647_vm13 = vcmp.ge.f32.partialorder %v8059_v53, 0.0  ;;  %v661_v12 = vmul.f32 0.2, %v8039_v28  ;;  %v7714_v26 = vld [vmem:[%s9512_s5 + $0x50] ss:$8 sps:$4 sm:$0xff]   ;;  %v1073_v36 = vsel %vm991_vm0, %v858_v34, 0 }
 0x125   : > { %v691_v5 = vmul.f32 0.2, %v7195_v2  ;;  %vm659_vm7 = vcmp.ge.f32.partialorder %v7195_v2, 0.0  ;;  %v718_v42 = vsel %vm654_vm1, %v601_v0, %v686_v27  ;;  %v701_v0 = vsel %vm637_vm6, %v8053_v46, %v669_v49  ;;  %v7715_v27 = vld [vmem:[%s9512_s5 + $0x64] ss:$8 sps:$4 sm:$0xff]  }
 0x126   : > { %v614_v4 = vpop.f32.mrf.mxu0  ;;  %v8115_v61 = vpack.c.bf16 %v718_v42, %v717_v51  ;;  %v8123_v1 = vpack.c.bf16 %v702_v52, %v701_v0  ;;  %v680_v46 = vmul.f32 0.2, %v8063_v55  ;;  %vm630_vm1 = vcmp.ge.f32.partialorder %v8041_v32, 0.0  ;;  %v7720_v33 = vld [vmem:[%s9512_s5 + $0x70] ss:$8 sps:$4 sm:$0xff]  }
 0x127   : > { %v689_v9 = vmul.f32 0.2, %v614_v4  ;;  %vm657_vm10 = vcmp.ge.f32.partialorder %v614_v4, 0.0  ;;  %v723_v14 = vsel %vm659_vm7, %v7195_v2, %v691_v5  ;;  %vm651_vm7 = vcmp.ge.f32.partialorder %v8067_v57, 0.0 }
 0x128   : > { %v7196_v7 = vpop.f32.mrf.mxu0  ;;  %v715_v48 = vsel %vm651_vm7, %v8067_v57, %v683_v50  ;;  %v666_v2 = vmul.f32 0.2, %v8047_v41  ;;  %v679_v57 = vmul.f32 0.2, %v8059_v53  ;;  %v713_v5 = vsel %vm649_vm9, %v8069_v58, %v681_v62 }
 0x129   : > { %vm660_vm8 = vcmp.ge.f32.partialorder %v7196_v7, 0.0  ;;  %v692_v10 = vmul.f32 0.2, %v7196_v7  ;;  %v721_v21 = vsel %vm657_vm10, %v614_v4, %v689_v9  ;;  %v8129_v59 = vpack.c.bf16 %v716_v45, %v715_v48 }
 0x12a   : > { %v617_v13 = vpop.f32.mrf.mxu0  ;;  %vm634_vm10 = vcmp.ge.f32.partialorder %v8047_v41, 0.0  ;;  %v665_v4 = vmul.f32 0.2, %v8045_v37  ;;  %v677_v58 = vmul.f32 0.2, %v8061_v54 }
 0x12b   : > { %v724_v15 = vsel %vm660_vm8, %v7196_v7, %v692_v10  ;;  %vm658_vm11 = vcmp.ge.f32.partialorder %v617_v13, 0.0  ;;  %v690_v16 = vmul.f32 0.2, %v617_v13  ;;  %vm650_vm8 = vcmp.ge.f32.partialorder %v8073_v60, 0.0 }
 0x12c   : > { %v8077_v18 = vpack.c.bf16 %v724_v15, %v723_v14  ;;  %v714_v3 = vsel %vm650_vm8, %v8073_v60, %v682_v63  ;;  %v698_v6 = vsel %vm634_vm10, %v8047_v41, %v666_v2  ;;  %v697_v9 = vsel %vm633_vm12, %v8045_v37, %v665_v4 }
 0x12d   : > { %v722_v22 = vsel %vm658_vm11, %v617_v13, %v690_v16  ;;  %vm648_vm11 = vcmp.ge.f32.partialorder %v8063_v55, 0.0  ;;  %v8143_v7 = vpack.c.bf16 %v714_v3, %v713_v5  ;;  %v8151_v10 = vpack.c.bf16 %v698_v6, %v697_v9  ;;  %v7697_v16 = vld [vmem:[%s9512_s5] ss:$8 sps:$4 sm:$0xff]  }
 0x12e   : > { %v8083_v25 = vpack.c.bf16 %v722_v22, %v721_v21  ;;  %6317 = vmatprep.subr.bf16.mxu1 %v8077_v18  ;;  %6407 = vmatprep.subr.bf16.mxu0 %v8077_v18  ;;  %v712_v60 = vsel %vm648_vm11, %v8063_v55, %v680_v46  ;;  %v711_v41 = vsel %vm647_vm13, %v8059_v53, %v679_v57  ;;  %v7708_v21 = vld [vmem:[%s9512_s5 + $0x30] ss:$8 sps:$4 sm:$0xff]   ;;  %v7711_v22 = vld [vmem:[%s9512_s5 + $0x44] ss:$8 sps:$4 sm:$0xff]   ;;  %v1272_v4 = vsel %vm991_vm0, %v1258_v38, 0 }
 0x12f   : > { %6318 = vmatpush3.bf16.msra.mxu1 %v8079_v19  ;;  %v8157_v55 = vpack.c.bf16 %v712_v60, %v711_v41  ;;  %v710_v37 = vsel %vm646_vm14, %v8065_v56, %v678_v8  ;;  %v709_v53 = vsel %vm645_vm15, %v8061_v54, %v677_v58  ;;  %v694_v13 = vsel %vm630_vm1, %v8041_v32, %v662_v11  ;;  %v7700_v32 = vld [vmem:[%s9512_s5 + $0x14] ss:$8 sps:$4 sm:$0xff]   ;;  %v7703_v54 = vld [vmem:[%s9512_s5 + $0x24] ss:$8 sps:$4 sm:$0xff]  }
 0x130   : > { %6319 = vmatprep.subr.bf16.mxu1 %v8083_v25  ;;  %v8167_v14 = vpack.c.bf16 %v710_v37, %v709_v53  ;;  %v693_v15 = vsel %vm629_vm2, %v8039_v28, %v661_v12  ;;  %v7702_v28 = vld [vmem:[%s9512_s5 + $0x10] ss:$8 sps:$4 sm:$0xff]   ;;  %vm4073_vm12 = vcmask 523264   ;;  %vm4182_vm13 = vcmask 130048  }
 0x131   : > { %v8172_v56 = vpack.c.bf16 %v694_v13, %v693_v15  ;;  %vm5785_vm1 = vcmask 261120   ;;  %vm5804_vm2 = vcmask 0  }
 0x133   : > { %6320 = vmatpush3.bf16.msra.mxu1 %v8093_v31 }
 0x134   : > { %6321 = vmatprep.subr.bf16.mxu1 %v8099_v39 }
 0x137   : > { %6322 = vmatpush3.bf16.msra.mxu1 %v8109_v47 }
 0x138   : > { %6323 = vmatprep.subr.bf16.mxu1 %v8115_v61 }
 0x13b   : > { %6324 = vmatpush3.bf16.msra.mxu1 %v8123_v1 }
 0x13c   : > { %6325 = vmatprep.subr.bf16.mxu1 %v8129_v59 }
 0x13f   : > { %6326 = vmatpush3.bf16.msra.mxu1 %v8049_v44 }
 0x140   : > { %6327 = vmatprep.subr.bf16.mxu1 %v8143_v7 }
 0x143   : > { %6328 = vmatpush3.bf16.msra.mxu1 %v8151_v10 }
 0x144   : > { %6329 = vmatprep.subr.bf16.mxu1 %v8157_v55 }
 0x147   : > { %6330 = vmatpush3.bf16.msra.mxu1 %v8043_v35 }
 0x148   : > { %6331 = vmatprep.subr.bf16.mxu1 %v8167_v14 }
 0x14b   : > { %6332 = vmatpush3.bf16.msra.mxu1 %v8172_v56 }
 0x14c   : > { %6357 = vmatprep.subr.bf16.mxu1 %v8077_v18 }
 0x14e   : > { %822 = vmatmul.mubr.bf16.vlgmr.msra.gmra.mxu1 %v7697_v16 }
 0x14f   : > { %6358 = vmatpush3.bf16.msra.mxu1 %v8079_v19  ;;  %829 = vmatprep.mubr.bf16.mxu1 %v7700_v32 }
 0x150   : > { %6359 = vmatprep.subr.bf16.mxu1 %v8083_v25 }
 0x153   : > { %6360 = vmatpush3.bf16.msra.mxu1 %v8093_v31 }
 0x154   : > { %6361 = vmatprep.subr.bf16.mxu1 %v8099_v39 }
 0x156   : > { %830 = vmatmul.mubr.bf16.gmra.mxu1 %v7702_v28 }
 0x157   : > { %6362 = vmatpush3.bf16.msra.mxu1 %v8109_v47  ;;  %837 = vmatprep.mubr.bf16.mxu1 %v7703_v54 }
 0x158   : > { %6363 = vmatprep.subr.bf16.mxu1 %v8115_v61 }
 0x15b   : > { %6364 = vmatpush3.bf16.msra.mxu1 %v8123_v1 }
 0x15c   : > { %6365 = vmatprep.subr.bf16.mxu1 %v8129_v59 }
 0x15e   : > { %838 = vmatmul.mubr.bf16.gmra.mxu1 %v7705_v17 }
 0x15f   : > { %6366 = vmatpush3.bf16.msra.mxu1 %v8049_v44  ;;  %845 = vmatprep.mubr.bf16.mxu1 %v7706_v20 }
 0x160   : > { %6367 = vmatprep.subr.bf16.mxu1 %v8143_v7 }
 0x163   : > { %6368 = vmatpush3.bf16.msra.mxu1 %v8151_v10 }
 0x164   : > { %6369 = vmatprep.subr.bf16.mxu1 %v8157_v55 }
 0x166   : > { %846 = vmatmul.mubr.bf16.gmra.mxu1 %v7708_v21 }
 0x167   : > { %6370 = vmatpush3.bf16.msra.mxu1 %v8043_v35  ;;  %940 = vmatprep.mubr.bf16.mxu1 %v7711_v22 }
 0x168   : > { %6371 = vmatprep.subr.bf16.mxu1 %v8167_v14 }
 0x16b   : > { %6372 = vmatpush3.bf16.msra.mxu1 %v8172_v56 }
 0x16c   : > { %7646 = vmatprep.subr.msk.bf16.mxu1 %vm991_vm0, %v858_v34 }
 0x16e   : > { %941 = vmatmul.mubr.bf16.vlgmr.msra.gmra.mxu1 %v7709_v23 }
 0x16f   : > { %948 = vmatprep.mubr.bf16.mxu1 %v7712_v24  ;;  %7208 = vmatpush3.bf16.msra.mxu1 %v1073_v36 }
 0x170   : > { %7647 = vmatprep.subr.msk.bf16.mxu1 %vm991_vm0, %v1258_v38 }
 0x176   : > { %949 = vmatmul.mubr.bf16.gmra.mxu1 %v7714_v26 }
 0x177   : > { %956 = vmatprep.mubr.bf16.mxu1 %v7715_v27 }
 0x17e   : > { %957 = vmatmul.mubr.bf16.gmra.mxu1 %v7717_v29 }
 0x17f   : > { %964 = vmatprep.mubr.bf16.mxu1 %v7718_v30 }
 0x186   : > { %965 = vmatmul.mubr.bf16.gmra.mxu1 %v7720_v33 }
 0x20e   : > { %v6333_v40 = vpop.f32.mrf.mxu1 }
 0x210   : > { %v6334_v42 = vpop.f32.mrf.mxu1 }
 0x211   : > { %v6335_v50 = vadd.f32 %v6334_v42, %v6333_v40 }
 0x212   : > { %v6336_v43 = vpop.f32.mrf.mxu1 }
 0x214   : > { %v6337_v49 = vpop.f32.mrf.mxu1 }
 0x215   : > { %v6338_v51 = vadd.f32 %v6337_v49, %v6336_v43 }
 0x216   : > { %v6339_v52 = vpop.f32.mrf.mxu1 }
 0x217   : > { %v854_v45 = vpack.c.bf16 %v6338_v51, %v6335_v50 }
 0x218   : > { %v6340_v63 = vpop.f32.mrf.mxu1 }
 0x219   : > { %7209 = vmatprep.mubr.msk.bf16.mxu1 %vm978_vm3, %v854_v45  ;;  %v6341_v62 = vadd.f32 %v6340_v63, %v6339_v52  ;;  %v7723_v63 = vld [vmem:[%s9512_s5 + $0x84] ss:$8 sps:$4 sm:$0xff]  }
 0x21a   : > { %v6342_v0 = vpop.f32.mrf.mxu1 }
 0x21c   : > { %v6343_v48 = vpop.f32.mrf.mxu1 }
 0x21d   : > { %v6344_v2 = vadd.f32 %v6343_v48, %v6342_v0  ;;  %v7721_v48 = vld [vmem:[%s9512_s5 + $0x80] ss:$8 sps:$4 sm:$0xff]  }
 0x21e   : > { %v6345_v46 = vpop.f32.mrf.mxu1 }
 0x21f   : > { %v855_v3 = vpack.c.bf16 %v6344_v2, %v6341_v62  ;;  %v7724_v62 = vld [vmem:[%s9512_s5 + $0x94] ss:$8 sps:$4 sm:$0xff]   ;;  %v7726_v2 = vld [vmem:[%s9512_s5 + $0x90] ss:$8 sps:$4 sm:$0xff]  }
 0x220   : > { %v6346_v57 = vpop.f32.mrf.mxu1 }
 0x221   : > { %7210 = vmatmul.mubr.msk.bf16.vlgmr.msra.gmra.mxu1 %vm978_vm3, %v855_v3  ;;  %v6347_v60 = vadd.f32 %v6346_v57, %v6345_v46  ;;  %v7727_v46 = vld [vmem:[%s9512_s5 + $0xa4] ss:$8 sps:$4 sm:$0xff]   ;;  %v7729_v3 = vld [vmem:[%s9512_s5 + $0xa0] ss:$8 sps:$4 sm:$0xff]   ;;  %v7732_v57 = vld [vmem:[%s9512_s5 + $0xb0] ss:$8 sps:$4 sm:$0xff]  }
 0x222   : > { %7218 = vmatpush3.bf16.msra.mxu1 %v1272_v4  ;;  %v6348_v5 = vpop.f32.mrf.mxu1  ;;  %v7730_v4 = vld [vmem:[%s9512_s5 + $0xb4] ss:$8 sps:$4 sm:$0xff]  }
 0x223   : > { %6452 = vmatprep.subr.bf16.mxu1 %v8077_v18 }
 0x224   : > { %v6349_v6 = vpop.f32.mrf.mxu1 }
 0x225   : > { %v6350_v8 = vadd.f32 %v6349_v6, %v6348_v5 }
 0x226   : > { %v6351_v9 = vpop.f32.mrf.mxu1 }
 0x227   : > { %v856_v41 = vpack.c.bf16 %v6350_v8, %v6347_v60 }
 0x228   : > { %v6352_v58 = vpop.f32.mrf.mxu1 }
 0x229   : > { %7213 = vmatprep.mubr.msk.bf16.mxu1 %vm978_vm3, %v856_v41  ;;  %v6353_v12 = vadd.f32 %v6352_v58, %v6351_v9 }
 0x22a   : > { %v6354_v11 = vpop.f32.mrf.mxu1 }
 0x22c   : > { %v6355_v37 = vpop.f32.mrf.mxu1 }
 0x22d   : > { %v6356_v53 = vadd.f32 %v6355_v37, %v6354_v11 }
 0x22e   : > { %v6373_v13 = vpop.f32.mrf.mxu1 }
 0x22f   : > { %v857_v15 = vpack.c.bf16 %v6356_v53, %v6353_v12 }
 0x230   : > { %v6374_v16 = vpop.f32.mrf.mxu1 }
 0x231   : > { %7214 = vmatmul.mubr.msk.bf16.gmra.mxu1 %vm978_vm3, %v857_v15  ;;  %v6375_v54 = vadd.f32 %v6374_v16, %v6373_v13 }
 0x232   : > { %v6376_v32 = vpop.f32.mrf.mxu1 }
 0x234   : > { %v6377_v28 = vpop.f32.mrf.mxu1 }
 0x235   : > { %v6378_v17 = vadd.f32 %v6377_v28, %v6376_v32 }
 0x236   : > { %v6379_v20 = vpop.f32.mrf.mxu1 }
 0x237   : > { %v973_v21 = vpack.c.bf16 %v6378_v17, %v6375_v54 }
 0x238   : > { %v6380_v22 = vpop.f32.mrf.mxu1 }
 0x239   : > { %7199 = vmatprep.mubr.msk.bf16.mxu0 %vm978_vm3, %v973_v21  ;;  %v6381_v26 = vadd.f32 %v6380_v22, %v6379_v20 }
 0x23a   : > { %v6382_v23 = vpop.f32.mrf.mxu1 }
 0x23c   : > { %v6383_v24 = vpop.f32.mrf.mxu1 }
 0x23d   : > { %v6384_v27 = vadd.f32 %v6383_v24, %v6382_v23 }
 0x23e   : > { %v6385_v29 = vpop.f32.mrf.mxu1 }
 0x23f   : > { %v974_v30 = vpack.c.bf16 %v6384_v27, %v6381_v26 }
 0x240   : > { %v6386_v33 = vpop.f32.mrf.mxu1 }
 0x241   : > { %7200 = vmatmul.mubr.msk.bf16.vlgmr.msra.gmra.mxu0 %vm978_vm3, %v974_v30  ;;  %v6387_v36 = vadd.f32 %v6386_v33, %v6385_v29 }
 0x242   : > { %6408 = vmatpush3.bf16.msra.mxu0 %v8079_v19  ;;  %v6388_v34 = vpop.f32.mrf.mxu1 }
 0x243   : > { %6409 = vmatprep.subr.bf16.mxu0 %v8083_v25 }
 0x244   : > { %v6389_v38 = vpop.f32.mrf.mxu1 }
 0x245   : > { %v6390_v40 = vadd.f32 %v6389_v38, %v6388_v34 }
 0x246   : > { %6410 = vmatpush3.bf16.msra.mxu0 %v8093_v31  ;;  %v6391_v42 = vpop.f32.mrf.mxu1 }
 0x247   : > { %v975_v43 = vpack.c.bf16 %v6390_v40, %v6387_v36  ;;  %6411 = vmatprep.subr.bf16.mxu0 %v8099_v39 }
 0x248   : > { %v6392_v49 = vpop.f32.mrf.mxu1 }
 0x249   : > { %7203 = vmatprep.mubr.msk.bf16.mxu0 %vm978_vm3, %v975_v43  ;;  %v6393_v51 = vadd.f32 %v6392_v49, %v6391_v42 }
 0x24a   : > { %6412 = vmatpush3.bf16.msra.mxu0 %v8109_v47  ;;  %v6394_v50 = vpop.f32.mrf.mxu1 }
 0x24b   : > { %6413 = vmatprep.subr.bf16.mxu0 %v8115_v61 }
 0x24c   : > { %v6395_v52 = vpop.f32.mrf.mxu1 }
 0x24d   : > { %v6396_v45 = vadd.f32 %v6395_v52, %v6394_v50 }
 0x24e   : > { %6414 = vmatpush3.bf16.msra.mxu0 %v8123_v1 }
 0x24f   : > { %v976_v0 = vpack.c.bf16 %v6396_v45, %v6393_v51  ;;  %6415 = vmatprep.subr.bf16.mxu0 %v8129_v59 }
 0x251   : > { %7204 = vmatmul.mubr.msk.bf16.gmra.mxu0 %vm978_vm3, %v976_v0 }
 0x252   : > { %6416 = vmatpush3.bf16.msra.mxu0 %v8049_v44  ;;  %1221 = vmatprep.mubr.bf16.mxu0 %v7723_v63 }
 0x253   : > { %6417 = vmatprep.subr.bf16.mxu0 %v8143_v7 }
 0x256   : > { %6418 = vmatpush3.bf16.msra.mxu0 %v8151_v10 }
 0x257   : > { %6419 = vmatprep.subr.bf16.mxu0 %v8157_v55 }
 0x25a   : > { %6420 = vmatpush3.bf16.msra.mxu0 %v8043_v35 }
 0x25b   : > { %6421 = vmatprep.subr.bf16.mxu0 %v8167_v14 }
 0x25e   : > { %6422 = vmatpush3.bf16.msra.mxu0 %v8172_v56 }
 0x261   : > { %1222 = vmatmul.mubr.bf16.vlgmr.msra.gmra.mxu0 %v7721_v48 }
 0x262   : > { %1229 = vmatprep.mubr.bf16.mxu0 %v7724_v62 }
 0x269   : > { %1230 = vmatmul.mubr.bf16.gmra.mxu0 %v7726_v2 }
 0x26a   : > { %1237 = vmatprep.mubr.bf16.mxu0 %v7727_v46 }
 0x271   : > { %1238 = vmatmul.mubr.bf16.gmra.mxu0 %v7729_v3 }
 0x272   : > { %1245 = vmatprep.mubr.bf16.mxu0 %v7730_v4 }
 0x279   : > { %1246 = vmatmul.mubr.bf16.gmra.mxu0 %v7732_v57 }
 0x2e1   : > { %v7211_v5 = vpop.f32.mrf.mxu1 }
 0x2e3   : > { %v1109_v6 = vpop.f32.mrf.mxu1 }
 0x2e5   : > { %v7212_v58 = vpop.f32.mrf.mxu1 }
 0x2e7   : > { %v8300_v12 = vpop.f32.mrf.mxu1 }
 0x2f1   : > { %v7215_v53 = vpop.f32.mrf.mxu1 }
 0x2f3   : > { %v1125_v15 = vpop.f32.mrf.mxu1 }
 0x2f5   : > { %v7216_v17 = vpop.f32.mrf.mxu1 }
 0x301   : > { %v7201_v60 = vpop.f32.mrf.mxu0 }
 0x302   : > { %v8294_v8 = vadd.f32 %v7211_v5, %v7201_v60  ;;  %v7735_v5 = vld [vmem:[%s9512_s5 + $0xc4] ss:$8 sps:$4 sm:$0xff]   ;;  %v7733_v60 = vld [vmem:[%s9512_s5 + $0xc0] ss:$8 sps:$4 sm:$0xff]  }
 0x303   : > { %v1029_v9 = vpop.f32.mrf.mxu0 }
 0x304   : > { %v8296_v41 = vadd.f32 %v1109_v6, %v1029_v9  ;;  %v7736_v9 = vld [vmem:[%s9512_s5 + $0xd4] ss:$8 sps:$4 sm:$0xff]  }
 0x305   : > { %v7202_v11 = vpop.f32.mrf.mxu0 }
 0x306   : > { %v8298_v37 = vadd.f32 %v7212_v58, %v7202_v11  ;;  %v7738_v58 = vld [vmem:[%s9512_s5 + $0xd0] ss:$8 sps:$4 sm:$0xff]   ;;  %v7739_v11 = vld [vmem:[%s9512_s5 + $0xe4] ss:$8 sps:$4 sm:$0xff]  }
 0x307   : > { %v8302_v13 = vpop.f32.mrf.mxu0 }
 0x311   : > { %v7205_v16 = vpop.f32.mrf.mxu0 }
 0x312   : > { %v8304_v32 = vadd.f32 %v7215_v53, %v7205_v16  ;;  %v7741_v53 = vld [vmem:[%s9512_s5 + $0xe0] ss:$8 sps:$4 sm:$0xff]   ;;  %v7744_v16 = vld [vmem:[%s9512_s5 + $0xf0] ss:$8 sps:$4 sm:$0xff]  }
 0x313   : > { %v1045_v28 = vpop.f32.mrf.mxu0 }
 0x314   : > { %v8306_v54 = vadd.f32 %v1125_v15, %v1045_v28  ;;  %v7742_v15 = vld [vmem:[%s9512_s5 + $0xf4] ss:$8 sps:$4 sm:$0xff]   ;;  %v7747_v28 = vld [vmem:[%s9512_s5 + $0x104] ss:$8 sps:$4 sm:$0xff]  }
 0x315   : > { %v7206_v20 = vpop.f32.mrf.mxu0 }
 0x316   : > { %v8308_v21 = vadd.f32 %v7216_v17, %v7206_v20  ;;  %v7745_v17 = vld [vmem:[%s9512_s5 + $0x100] ss:$8 sps:$4 sm:$0xff]   ;;  %v7748_v20 = vld [vmem:[%s9512_s5 + $0x114] ss:$8 sps:$4 sm:$0xff]  }
 0x317   : > { %v8310_v22 = vpop.f32.mrf.mxu0 }
 0x321   : > { %v6423_v23 = vpop.f32.mrf.mxu0 }
 0x323   : > { %v6424_v24 = vpop.f32.mrf.mxu0 }
 0x324   : > { %v6425_v29 = vadd.f32 %v6424_v24, %v6423_v23  ;;  %v7750_v23 = vld [vmem:[%s9512_s5 + $0x110] ss:$8 sps:$4 sm:$0xff]   ;;  %v7751_v24 = vld [vmem:[%s9512_s5 + $0x124] ss:$8 sps:$4 sm:$0xff]  }
 0x325   : > { %v6426_v26 = vpop.f32.mrf.mxu0 }
 0x327   : > { %v6427_v27 = vpop.f32.mrf.mxu0 }
 0x328   : > { %v6428_v30 = vadd.f32 %v6427_v27, %v6426_v26  ;;  %v7753_v26 = vld [vmem:[%s9512_s5 + $0x120] ss:$8 sps:$4 sm:$0xff]   ;;  %v7754_v27 = vld [vmem:[%s9512_s5 + $0x134] ss:$8 sps:$4 sm:$0xff]  }
 0x329   : > { %v6429_v33 = vpop.f32.mrf.mxu0 }
 0x32a   : > { %v1254_v34 = vpack.c.bf16 %v6428_v30, %v6425_v29  ;;  %v7756_v29 = vld [vmem:[%s9512_s5 + $0x130] ss:$8 sps:$4 sm:$0xff]   ;;  %v1465_v30 = vld [vmem:[%s9509_s2 + $0xc] sm:$0xf] }
 0x32b   : > { %v6430_v36 = vpop.f32.mrf.mxu0  ;;  %7648 = vmatprep.subr.msk.bf16.mxu0 %vm991_vm0, %v1465_v30 }
 0x32c   : > { %7219 = vmatprep.mubr.msk.bf16.mxu1 %vm978_vm3, %v1254_v34  ;;  %v6431_v42 = vadd.f32 %v6430_v36, %v6429_v33  ;;  %v1479_v33 = vsel %vm991_vm0, %v1465_v30, 0  ;;  %v1672_v34 = vld [vmem:[%s9509_s2 + $0x10] sm:$0xf]  ;;  %v8404_v36 = vpop.f32.mrf.mxu1 }
 0x32d   : > { %v6432_v38 = vpop.f32.mrf.mxu0  ;;  %7228 = vmatpush3.bf16.msra.mxu0 %v1479_v33 }
 0x32e   : > { %7649 = vmatprep.subr.msk.bf16.mxu0 %vm991_vm0, %v1672_v34 }
 0x32f   : > { %v6433_v40 = vpop.f32.mrf.mxu0 }
 0x330   : > { %v6434_v43 = vadd.f32 %v6433_v40, %v6432_v38 }
 0x331   : > { %v6435_v49 = vpop.f32.mrf.mxu0 }
 0x332   : > { %v1255_v50 = vpack.c.bf16 %v6434_v43, %v6431_v42 }
 0x333   : > { %v6436_v51 = vpop.f32.mrf.mxu0 }
 0x334   : > { %7220 = vmatmul.mubr.msk.bf16.vlgmr.msra.gmra.mxu1 %vm978_vm3, %v1255_v50  ;;  %v6437_v45 = vadd.f32 %v6436_v51, %v6435_v49 }
 0x335   : > { %6453 = vmatpush3.bf16.msra.mxu1 %v8079_v19  ;;  %v6438_v52 = vpop.f32.mrf.mxu0 }
 0x336   : > { %6454 = vmatprep.subr.bf16.mxu1 %v8083_v25 }
 0x337   : > { %v6439_v63 = vpop.f32.mrf.mxu0 }
 0x338   : > { %v6440_v0 = vadd.f32 %v6439_v63, %v6438_v52 }
 0x339   : > { %6455 = vmatpush3.bf16.msra.mxu1 %v8093_v31  ;;  %v6441_v48 = vpop.f32.mrf.mxu0 }
 0x33a   : > { %v1256_v62 = vpack.c.bf16 %v6440_v0, %v6437_v45  ;;  %6456 = vmatprep.subr.bf16.mxu1 %v8099_v39 }
 0x33b   : > { %v6442_v2 = vpop.f32.mrf.mxu0 }
 0x33c   : > { %7223 = vmatprep.mubr.msk.bf16.mxu1 %vm978_vm3, %v1256_v62  ;;  %v6443_v3 = vadd.f32 %v6442_v2, %v6441_v48 }
 0x33d   : > { %6457 = vmatpush3.bf16.msra.mxu1 %v8109_v47  ;;  %v6444_v46 = vpop.f32.mrf.mxu0 }
 0x33e   : > { %6458 = vmatprep.subr.bf16.mxu1 %v8115_v61 }
 0x33f   : > { %v6445_v4 = vpop.f32.mrf.mxu0 }
 0x340   : > { %v6446_v57 = vadd.f32 %v6445_v4, %v6444_v46 }
 0x341   : > { %6459 = vmatpush3.bf16.msra.mxu1 %v8123_v1 }
 0x342   : > { %v1257_v6 = vpack.c.bf16 %v6446_v57, %v6443_v3  ;;  %6460 = vmatprep.subr.bf16.mxu1 %v8129_v59 }
 0x344   : > { %7224 = vmatmul.mubr.msk.bf16.gmra.mxu1 %vm978_vm3, %v1257_v6 }
 0x345   : > { %6461 = vmatpush3.bf16.msra.mxu1 %v8049_v44  ;;  %1428 = vmatprep.mubr.bf16.mxu1 %v7735_v5 }
 0x346   : > { %6462 = vmatprep.subr.bf16.mxu1 %v8143_v7 }
 0x349   : > { %6463 = vmatpush3.bf16.msra.mxu1 %v8151_v10 }
 0x34a   : > { %6464 = vmatprep.subr.bf16.mxu1 %v8157_v55 }
 0x34d   : > { %6465 = vmatpush3.bf16.msra.mxu1 %v8043_v35 }
 0x34e   : > { %6466 = vmatprep.subr.bf16.mxu1 %v8167_v14 }
 0x351   : > { %6467 = vmatpush3.bf16.msra.mxu1 %v8172_v56 }
 0x352   : > { %6497 = vmatprep.subr.bf16.mxu1 %v8077_v18 }
 0x354   : > { %1429 = vmatmul.mubr.bf16.vlgmr.msra.gmra.mxu1 %v7733_v60 }
 0x355   : > { %6498 = vmatpush3.bf16.msra.mxu1 %v8079_v19  ;;  %1436 = vmatprep.mubr.bf16.mxu1 %v7736_v9 }
 0x356   : > { %6499 = vmatprep.subr.bf16.mxu1 %v8083_v25 }
 0x359   : > { %6500 = vmatpush3.bf16.msra.mxu1 %v8093_v31 }
 0x35a   : > { %6501 = vmatprep.subr.bf16.mxu1 %v8099_v39 }
 0x35c   : > { %1437 = vmatmul.mubr.bf16.gmra.mxu1 %v7738_v58 }
 0x35d   : > { %6502 = vmatpush3.bf16.msra.mxu1 %v8109_v47  ;;  %1444 = vmatprep.mubr.bf16.mxu1 %v7739_v11  ;;  %v1686_v11 = vsel %vm991_vm0, %v1672_v34, 0 }
 0x35e   : > { %6503 = vmatprep.subr.bf16.mxu1 %v8115_v61 }
 0x361   : > { %6504 = vmatpush3.bf16.msra.mxu1 %v8123_v1 }
 0x362   : > { %6505 = vmatprep.subr.bf16.mxu1 %v8129_v59 }
 0x364   : > { %1445 = vmatmul.mubr.bf16.gmra.mxu1 %v7741_v53 }
 0x365   : > { %6506 = vmatpush3.bf16.msra.mxu1 %v8049_v44  ;;  %1452 = vmatprep.mubr.bf16.mxu1 %v7742_v15 }
 0x366   : > { %6507 = vmatprep.subr.bf16.mxu1 %v8143_v7 }
 0x369   : > { %6508 = vmatpush3.bf16.msra.mxu1 %v8151_v10 }
 0x36a   : > { %6509 = vmatprep.subr.bf16.mxu1 %v8157_v55 }
 0x36c   : > { %1453 = vmatmul.mubr.bf16.gmra.mxu1 %v7744_v16 }
 0x36d   : > { %6510 = vmatpush3.bf16.msra.mxu1 %v8043_v35  ;;  %1635 = vmatprep.mubr.bf16.mxu1 %v7747_v28 }
 0x36e   : > { %6511 = vmatprep.subr.bf16.mxu1 %v8167_v14 }
 0x371   : > { %6512 = vmatpush3.bf16.msra.mxu1 %v8172_v56 }
 0x374   : > { %1636 = vmatmul.mubr.bf16.vlgmr.msra.gmra.mxu1 %v7745_v17 }
 0x375   : > { %1643 = vmatprep.mubr.bf16.mxu1 %v7748_v20 }
 0x37c   : > { %1644 = vmatmul.mubr.bf16.gmra.mxu1 %v7750_v23 }
 0x37d   : > { %1651 = vmatprep.mubr.bf16.mxu1 %v7751_v24 }
 0x384   : > { %1652 = vmatmul.mubr.bf16.gmra.mxu1 %v7753_v26 }
 0x385   : > { %1659 = vmatprep.mubr.bf16.mxu1 %v7754_v27 }
 0x38c   : > { %1660 = vmatmul.mubr.bf16.gmra.mxu1 %v7756_v29 }
 0x3f4   : > { %v7221_v38 = vpop.f32.mrf.mxu1 }
 0x3f5   : > { %v8407_v40 = vadd.f32 %v7221_v38, %v8294_v8 }
 0x3f6   : > { %v1308_v42 = vpop.f32.mrf.mxu1 }
 0x3f7   : > { %v8410_v43 = vadd.f32 %v1308_v42, %v8296_v41 }
 0x3f8   : > { %v7222_v49 = vpop.f32.mrf.mxu1 }
 0x3f9   : > { %v8413_v50 = vadd.f32 %v7222_v49, %v8298_v37 }
 0x3fa   : > { %v8415_v51 = vpop.f32.mrf.mxu1 }
 0x404   : > { %v7225_v52 = vpop.f32.mrf.mxu1 }
 0x405   : > { %v8418_v45 = vadd.f32 %v7225_v52, %v8304_v32 }
 0x406   : > { %v1324_v63 = vpop.f32.mrf.mxu1 }
 0x407   : > { %v8421_v0 = vadd.f32 %v1324_v63, %v8306_v54 }
 0x408   : > { %v7226_v8 = vpop.f32.mrf.mxu1 }
 0x409   : > { %v8424_v48 = vadd.f32 %v7226_v8, %v8308_v21 }
 0x40a   : > { %v8426_v41 = vpop.f32.mrf.mxu1 }
 0x414   : > { %v6468_v62 = vpop.f32.mrf.mxu1 }
 0x416   : > { %v6469_v2 = vpop.f32.mrf.mxu1 }
 0x417   : > { %v6470_v3 = vadd.f32 %v6469_v2, %v6468_v62 }
 0x418   : > { %v6471_v37 = vpop.f32.mrf.mxu1 }
 0x41a   : > { %v6472_v46 = vpop.f32.mrf.mxu1 }
 0x41b   : > { %v6473_v4 = vadd.f32 %v6472_v46, %v6471_v37 }
 0x41c   : > { %v6474_v57 = vpop.f32.mrf.mxu1 }
 0x41d   : > { %v1461_v5 = vpack.c.bf16 %v6473_v4, %v6470_v3 }
 0x41e   : > { %v6475_v32 = vpop.f32.mrf.mxu1 }
 0x41f   : > { %7229 = vmatprep.mubr.msk.bf16.mxu0 %vm978_vm3, %v1461_v5  ;;  %v6476_v60 = vadd.f32 %v6475_v32, %v6474_v57 }
 0x420   : > { %v6477_v6 = vpop.f32.mrf.mxu1 }
 0x422   : > { %v6478_v54 = vpop.f32.mrf.mxu1 }
 0x423   : > { %v6479_v9 = vadd.f32 %v6478_v54, %v6477_v6 }
 0x424   : > { %v6480_v58 = vpop.f32.mrf.mxu1 }
 0x425   : > { %v1462_v21 = vpack.c.bf16 %v6479_v9, %v6476_v60 }
 0x426   : > { %v6481_v53 = vpop.f32.mrf.mxu1 }
 0x427   : > { %7230 = vmatmul.mubr.msk.bf16.vlgmr.msra.gmra.mxu0 %vm978_vm3, %v1462_v21  ;;  %v6482_v28 = vadd.f32 %v6481_v53, %v6480_v58 }
 0x428   : > { %7238 = vmatpush3.bf16.msra.mxu0 %v1686_v11  ;;  %v6483_v15 = vpop.f32.mrf.mxu1 }
 0x429   : > { %6542 = vmatprep.subr.bf16.mxu0 %v8077_v18 }
 0x42a   : > { %v6484_v16 = vpop.f32.mrf.mxu1 }
 0x42b   : > { %v6485_v17 = vadd.f32 %v6484_v16, %v6483_v15 }
 0x42c   : > { %v6486_v20 = vpop.f32.mrf.mxu1 }
 0x42d   : > { %v1463_v23 = vpack.c.bf16 %v6485_v17, %v6482_v28  ;;  %v7759_v17 = vld [vmem:[%s9512_s5 + $0x144] ss:$8 sps:$4 sm:$0xff]  }
 0x42e   : > { %v6487_v24 = vpop.f32.mrf.mxu1 }
 0x42f   : > { %7233 = vmatprep.mubr.msk.bf16.mxu0 %vm978_vm3, %v1463_v23  ;;  %v6488_v29 = vadd.f32 %v6487_v24, %v6486_v20  ;;  %v7757_v23 = vld [vmem:[%s9512_s5 + $0x140] ss:$8 sps:$4 sm:$0xff]   ;;  %v7760_v24 = vld [vmem:[%s9512_s5 + $0x154] ss:$8 sps:$4 sm:$0xff]  }
 0x430   : > { %v6489_v26 = vpop.f32.mrf.mxu1 }
 0x432   : > { %v6490_v27 = vpop.f32.mrf.mxu1 }
 0x433   : > { %v6491_v30 = vadd.f32 %v6490_v27, %v6489_v26  ;;  %v7762_v26 = vld [vmem:[%s9512_s5 + $0x150] ss:$8 sps:$4 sm:$0xff]   ;;  %v7763_v27 = vld [vmem:[%s9512_s5 + $0x164] ss:$8 sps:$4 sm:$0xff]  }
 0x434   : > { %v6513_v33 = vpop.f32.mrf.mxu1 }
 0x435   : > { %v1464_v34 = vpack.c.bf16 %v6491_v30, %v6488_v29  ;;  %v7765_v29 = vld [vmem:[%s9512_s5 + $0x160] ss:$8 sps:$4 sm:$0xff]   ;;  %v7766_v30 = vld [vmem:[%s9512_s5 + $0x174] ss:$8 sps:$4 sm:$0xff]  }
 0x436   : > { %v6514_v38 = vpop.f32.mrf.mxu1 }
 0x437   : > { %7234 = vmatmul.mubr.msk.bf16.gmra.mxu0 %vm978_vm3, %v1464_v34  ;;  %v6515_v52 = vadd.f32 %v6514_v38, %v6513_v33  ;;  %v7768_v33 = vld [vmem:[%s9512_s5 + $0x170] ss:$8 sps:$4 sm:$0xff]   ;;  %v7771_v34 = vld [vmem:[%s9512_s5 + $0x184] ss:$8 sps:$4 sm:$0xff]   ;;  %v7769_v38 = vld [vmem:[%s9512_s5 + $0x180] ss:$8 sps:$4 sm:$0xff]  }
 0x438   : > { %v6516_v42 = vpop.f32.mrf.mxu1 }
 0x43a   : > { %v6517_v49 = vpop.f32.mrf.mxu1 }
 0x43b   : > { %v6518_v63 = vadd.f32 %v6517_v49, %v6516_v42  ;;  %v7772_v42 = vld [vmem:[%s9512_s5 + $0x194] ss:$8 sps:$4 sm:$0xff]   ;;  %v7774_v49 = vld [vmem:[%s9512_s5 + $0x190] ss:$8 sps:$4 sm:$0xff]  }
 0x43c   : > { %v6519_v8 = vpop.f32.mrf.mxu1 }
 0x43d   : > { %v1668_v62 = vpack.c.bf16 %v6518_v63, %v6515_v52  ;;  %v7775_v52 = vld [vmem:[%s9512_s5 + $0x1a4] ss:$8 sps:$4 sm:$0xff]   ;;  %v7777_v63 = vld [vmem:[%s9512_s5 + $0x1a0] ss:$8 sps:$4 sm:$0xff]  }
 0x43e   : > { %v6520_v2 = vpop.f32.mrf.mxu1 }
 0x43f   : > { %7239 = vmatprep.mubr.msk.bf16.mxu0 %vm978_vm3, %v1668_v62  ;;  %v6521_v3 = vadd.f32 %v6520_v2, %v6519_v8  ;;  %v7778_v8 = vld [vmem:[%s9512_s5 + $0x1b4] ss:$8 sps:$4 sm:$0xff]   ;;  %v7780_v62 = vld [vmem:[%s9512_s5 + $0x1b0] ss:$8 sps:$4 sm:$0xff]  }
 0x440   : > { %v6522_v37 = vpop.f32.mrf.mxu1  ;;  %v1879_v2 = vld [vmem:[%s9509_s2 + $0x14] sm:$0xf] }
 0x441   : > { %7650 = vmatprep.subr.msk.bf16.mxu1 %vm991_vm0, %v1879_v2 }
 0x442   : > { %v6523_v46 = vpop.f32.mrf.mxu1 }
 0x443   : > { %v6524_v4 = vadd.f32 %v6523_v46, %v6522_v37  ;;  %v1893_v37 = vsel %vm991_vm0, %v1879_v2, 0  ;;  %v2086_v46 = vld [vmem:[%s9509_s2 + $0x18] sm:$0xf] }
 0x444   : > { %v6525_v57 = vpop.f32.mrf.mxu1  ;;  %7248 = vmatpush3.bf16.msra.mxu1 %v1893_v37 }
 0x445   : > { %v1669_v5 = vpack.c.bf16 %v6524_v4, %v6521_v3  ;;  %7651 = vmatprep.subr.msk.bf16.mxu1 %vm991_vm0, %v2086_v46 }
 0x446   : > { %v6526_v32 = vpop.f32.mrf.mxu1 }
 0x447   : > { %7240 = vmatmul.mubr.msk.bf16.vlgmr.msra.gmra.mxu0 %vm978_vm3, %v1669_v5  ;;  %v6527_v54 = vadd.f32 %v6526_v32, %v6525_v57 }
 0x448   : > { %6543 = vmatpush3.bf16.msra.mxu0 %v8079_v19  ;;  %v6528_v6 = vpop.f32.mrf.mxu1 }
 0x449   : > { %6544 = vmatprep.subr.bf16.mxu0 %v8083_v25 }
 0x44a   : > { %v6529_v60 = vpop.f32.mrf.mxu1 }
 0x44b   : > { %v6530_v9 = vadd.f32 %v6529_v60, %v6528_v6 }
 0x44c   : > { %6545 = vmatpush3.bf16.msra.mxu0 %v8093_v31  ;;  %v6531_v58 = vpop.f32.mrf.mxu1 }
 0x44d   : > { %v1670_v21 = vpack.c.bf16 %v6530_v9, %v6527_v54  ;;  %6546 = vmatprep.subr.bf16.mxu0 %v8099_v39 }
 0x44e   : > { %v6532_v11 = vpop.f32.mrf.mxu1 }
 0x44f   : > { %7243 = vmatprep.mubr.msk.bf16.mxu0 %vm978_vm3, %v1670_v21  ;;  %v6533_v15 = vadd.f32 %v6532_v11, %v6531_v58 }
 0x450   : > { %6547 = vmatpush3.bf16.msra.mxu0 %v8109_v47  ;;  %v6534_v53 = vpop.f32.mrf.mxu1 }
 0x451   : > { %6548 = vmatprep.subr.bf16.mxu0 %v8115_v61 }
 0x452   : > { %v6535_v16 = vpop.f32.mrf.mxu1 }
 0x453   : > { %v6536_v28 = vadd.f32 %v6535_v16, %v6534_v53 }
 0x454   : > { %6549 = vmatpush3.bf16.msra.mxu0 %v8123_v1 }
 0x455   : > { %v1671_v20 = vpack.c.bf16 %v6536_v28, %v6533_v15  ;;  %6550 = vmatprep.subr.bf16.mxu0 %v8129_v59 }
 0x457   : > { %7244 = vmatmul.mubr.msk.bf16.gmra.mxu0 %vm978_vm3, %v1671_v20 }
 0x458   : > { %6551 = vmatpush3.bf16.msra.mxu0 %v8049_v44  ;;  %1842 = vmatprep.mubr.bf16.mxu0 %v7759_v17 }
 0x459   : > { %6552 = vmatprep.subr.bf16.mxu0 %v8143_v7 }
 0x45c   : > { %6553 = vmatpush3.bf16.msra.mxu0 %v8151_v10 }
 0x45d   : > { %6554 = vmatprep.subr.bf16.mxu0 %v8157_v55 }
 0x460   : > { %6555 = vmatpush3.bf16.msra.mxu0 %v8043_v35 }
 0x461   : > { %6556 = vmatprep.subr.bf16.mxu0 %v8167_v14 }
 0x464   : > { %6557 = vmatpush3.bf16.msra.mxu0 %v8172_v56 }
 0x465   : > { %6587 = vmatprep.subr.bf16.mxu0 %v8077_v18 }
 0x467   : > { %1843 = vmatmul.mubr.bf16.vlgmr.msra.gmra.mxu0 %v7757_v23 }
 0x468   : > { %6588 = vmatpush3.bf16.msra.mxu0 %v8079_v19  ;;  %1850 = vmatprep.mubr.bf16.mxu0 %v7760_v24 }
 0x469   : > { %6589 = vmatprep.subr.bf16.mxu0 %v8083_v25 }
 0x46c   : > { %6590 = vmatpush3.bf16.msra.mxu0 %v8093_v31 }
 0x46d   : > { %6591 = vmatprep.subr.bf16.mxu0 %v8099_v39 }
 0x46f   : > { %1851 = vmatmul.mubr.bf16.gmra.mxu0 %v7762_v26 }
 0x470   : > { %6592 = vmatpush3.bf16.msra.mxu0 %v8109_v47  ;;  %1858 = vmatprep.mubr.bf16.mxu0 %v7763_v27 }
 0x471   : > { %6593 = vmatprep.subr.bf16.mxu0 %v8115_v61 }
 0x474   : > { %6594 = vmatpush3.bf16.msra.mxu0 %v8123_v1 }
 0x475   : > { %6595 = vmatprep.subr.bf16.mxu0 %v8129_v59 }
 0x477   : > { %1859 = vmatmul.mubr.bf16.gmra.mxu0 %v7765_v29 }
 0x478   : > { %6596 = vmatpush3.bf16.msra.mxu0 %v8049_v44  ;;  %1866 = vmatprep.mubr.bf16.mxu0 %v7766_v30 }
 0x479   : > { %6597 = vmatprep.subr.bf16.mxu0 %v8143_v7 }
 0x47c   : > { %6598 = vmatpush3.bf16.msra.mxu0 %v8151_v10 }
 0x47d   : > { %6599 = vmatprep.subr.bf16.mxu0 %v8157_v55 }
 0x47f   : > { %1867 = vmatmul.mubr.bf16.gmra.mxu0 %v7768_v33 }
 0x480   : > { %6600 = vmatpush3.bf16.msra.mxu0 %v8043_v35  ;;  %2049 = vmatprep.mubr.bf16.mxu0 %v7771_v34 }
 0x481   : > { %6601 = vmatprep.subr.bf16.mxu0 %v8167_v14 }
 0x484   : > { %6602 = vmatpush3.bf16.msra.mxu0 %v8172_v56 }
 0x487   : > { %2050 = vmatmul.mubr.bf16.vlgmr.msra.gmra.mxu0 %v7769_v38 }
 0x488   : > { %2057 = vmatprep.mubr.bf16.mxu0 %v7772_v42 }
 0x48f   : > { %2058 = vmatmul.mubr.bf16.gmra.mxu0 %v7774_v49 }
 0x490   : > { %2065 = vmatprep.mubr.bf16.mxu0 %v7775_v52 }
 0x497   : > { %2066 = vmatmul.mubr.bf16.gmra.mxu0 %v7777_v63 }
 0x498   : > { %2073 = vmatprep.mubr.bf16.mxu0 %v7778_v8 }
 0x49f   : > { %2074 = vmatmul.mubr.bf16.gmra.mxu0 %v7780_v62 }
 0x4e7   : > { %v7231_v3 = vpop.f32.mrf.mxu0 }
 0x4e8   : > { %v1548_v4 = vadd.f32 %v7231_v3, %v8407_v40 }
 0x4e9   : > { %v1515_v57 = vpop.f32.mrf.mxu0 }
 0x4ea   : > { %v1546_v5 = vadd.f32 %v1515_v57, %v8410_v43  ;;  %v2100_v57 = vsel %vm991_vm0, %v2086_v46, 0 }
 0x4eb   : > { %v7232_v32 = vpop.f32.mrf.mxu0 }
 0x4ec   : > { %v1549_v6 = vadd.f32 %v7232_v32, %v8413_v50 }
 0x4ed   : > { %v8529_v54 = vpop.f32.mrf.mxu0 }
 0x4f7   : > { %v7235_v60 = vpop.f32.mrf.mxu0 }
 0x4f8   : > { %v1552_v9 = vadd.f32 %v7235_v60, %v8418_v45 }
 0x4f9   : > { %v1531_v58 = vpop.f32.mrf.mxu0 }
 0x4fa   : > { %v1550_v21 = vadd.f32 %v1531_v58, %v8421_v0 }
 0x4fb   : > { %v7236_v11 = vpop.f32.mrf.mxu0 }
 0x4fc   : > { %v1553_v53 = vadd.f32 %v7236_v11, %v8424_v48 }
 0x4fd   : > { %v8534_v15 = vpop.f32.mrf.mxu0 }
 0x507   : > { %v7241_v40 = vpop.f32.mrf.mxu0 }
 0x508   : > { %v8536_v16 = vadd.f32 %v7241_v40, %v1548_v4 }
 0x509   : > { %v1722_v43 = vpop.f32.mrf.mxu0 }
 0x50a   : > { %v8538_v28 = vadd.f32 %v1722_v43, %v1546_v5 }
 0x50b   : > { %v7242_v50 = vpop.f32.mrf.mxu0 }
 0x50c   : > { %v8540_v17 = vadd.f32 %v7242_v50, %v1549_v6 }
 0x50d   : > { %v8542_v20 = vpop.f32.mrf.mxu0 }
 0x517   : > { %v7245_v45 = vpop.f32.mrf.mxu0 }
 0x518   : > { %v8544_v23 = vadd.f32 %v7245_v45, %v1552_v9 }
 0x519   : > { %v1738_v0 = vpop.f32.mrf.mxu0 }
 0x51a   : > { %v8546_v24 = vadd.f32 %v1738_v0, %v1550_v21 }
 0x51b   : > { %v7246_v48 = vpop.f32.mrf.mxu0 }
 0x51c   : > { %v8548_v26 = vadd.f32 %v7246_v48, %v1553_v53 }
 0x51d   : > { %v8550_v27 = vpop.f32.mrf.mxu0 }
 0x527   : > { %v6558_v29 = vpop.f32.mrf.mxu0 }
 0x529   : > { %v6559_v30 = vpop.f32.mrf.mxu0 }
 0x52a   : > { %v6560_v38 = vadd.f32 %v6559_v30, %v6558_v29 }
 0x52b   : > { %v6561_v33 = vpop.f32.mrf.mxu0 }
 0x52d   : > { %v6562_v34 = vpop.f32.mrf.mxu0 }
 0x52e   : > { %v6563_v42 = vadd.f32 %v6562_v34, %v6561_v33 }
 0x52f   : > { %v6564_v49 = vpop.f32.mrf.mxu0 }
 0x530   : > { %v1875_v52 = vpack.c.bf16 %v6563_v42, %v6560_v38 }
 0x531   : > { %v6565_v63 = vpop.f32.mrf.mxu0 }
 0x532   : > { %7249 = vmatprep.mubr.msk.bf16.mxu1 %vm978_vm3, %v1875_v52  ;;  %v6566_v2 = vadd.f32 %v6565_v63, %v6564_v49 }
 0x533   : > { %v6567_v8 = vpop.f32.mrf.mxu0 }
 0x535   : > { %v6568_v62 = vpop.f32.mrf.mxu0 }
 0x536   : > { %v6569_v37 = vadd.f32 %v6568_v62, %v6567_v8 }
 0x537   : > { %v6570_v3 = vpop.f32.mrf.mxu0 }
 0x538   : > { %v1876_v4 = vpack.c.bf16 %v6569_v37, %v6566_v2 }
 0x539   : > { %v6571_v5 = vpop.f32.mrf.mxu0 }
 0x53a   : > { %7250 = vmatmul.mubr.msk.bf16.vlgmr.msra.gmra.mxu1 %vm978_vm3, %v1876_v4  ;;  %v6572_v60 = vadd.f32 %v6571_v5, %v6570_v3 }
 0x53b   : > { %7258 = vmatpush3.bf16.msra.mxu1 %v2100_v57  ;;  %v6573_v32 = vpop.f32.mrf.mxu0 }
 0x53c   : > { %6632 = vmatprep.subr.bf16.mxu1 %v8077_v18 }
 0x53d   : > { %v6574_v6 = vpop.f32.mrf.mxu0 }
 0x53e   : > { %v6575_v9 = vadd.f32 %v6574_v6, %v6573_v32 }
 0x53f   : > { %v6576_v58 = vpop.f32.mrf.mxu0 }
 0x540   : > { %v1877_v21 = vpack.c.bf16 %v6575_v9, %v6572_v60 }
 0x541   : > { %v6577_v11 = vpop.f32.mrf.mxu0 }
 0x542   : > { %7253 = vmatprep.mubr.msk.bf16.mxu1 %vm978_vm3, %v1877_v21  ;;  %v6578_v43 = vadd.f32 %v6577_v11, %v6576_v58 }
 0x543   : > { %v6579_v53 = vpop.f32.mrf.mxu0 }
 0x545   : > { %v6580_v40 = vpop.f32.mrf.mxu0 }
 0x546   : > { %v6581_v50 = vadd.f32 %v6580_v40, %v6579_v53  ;;  %v7783_v53 = vld [vmem:[%s9512_s5 + $0x1c4] ss:$8 sps:$4 sm:$0xff]  }
 0x547   : > { %v6603_v46 = vpop.f32.mrf.mxu0 }
 0x548   : > { %v1878_v45 = vpack.c.bf16 %v6581_v50, %v6578_v43  ;;  %v7781_v43 = vld [vmem:[%s9512_s5 + $0x1c0] ss:$8 sps:$4 sm:$0xff]   ;;  %v7784_v50 = vld [vmem:[%s9512_s5 + $0x1d4] ss:$8 sps:$4 sm:$0xff]  }
 0x549   : > { %v6604_v0 = vpop.f32.mrf.mxu0 }
 0x54a   : > { %7254 = vmatmul.mubr.msk.bf16.gmra.mxu1 %vm978_vm3, %v1878_v45  ;;  %v6605_v30 = vadd.f32 %v6604_v0, %v6603_v46  ;;  %v7786_v46 = vld [vmem:[%s9512_s5 + $0x1d0] ss:$8 sps:$4 sm:$0xff]   ;;  %v7787_v45 = vld [vmem:[%s9512_s5 + $0x1e4] ss:$8 sps:$4 sm:$0xff]   ;;  %v7789_v0 = vld [vmem:[%s9512_s5 + $0x1e0] ss:$8 sps:$4 sm:$0xff]  }
 0x54b   : > { %v6606_v48 = vpop.f32.mrf.mxu0 }
 0x54d   : > { %v6607_v29 = vpop.f32.mrf.mxu0 }
 0x54e   : > { %v6608_v33 = vadd.f32 %v6607_v29, %v6606_v48  ;;  %v7790_v48 = vld [vmem:[%s9512_s5 + $0x1f4] ss:$8 sps:$4 sm:$0xff]   ;;  %v7792_v29 = vld [vmem:[%s9512_s5 + $0x1f0] ss:$8 sps:$4 sm:$0xff]  }
 0x54f   : > { %v6609_v34 = vpop.f32.mrf.mxu0 }
 0x550   : > { %v2082_v38 = vpack.c.bf16 %v6608_v33, %v6605_v30  ;;  %v7795_v30 = vld [vmem:[%s9512_s5 + $0x204] ss:$8 sps:$4 sm:$0xff]   ;;  %v7793_v33 = vld [vmem:[%s9512_s5 + $0x200] ss:$8 sps:$4 sm:$0xff]  }
 0x551   : > { %v6610_v42 = vpop.f32.mrf.mxu0 }
 0x552   : > { %7259 = vmatprep.mubr.msk.bf16.mxu1 %vm978_vm3, %v2082_v38  ;;  %v6611_v63 = vadd.f32 %v6610_v42, %v6609_v34  ;;  %v7798_v34 = vld [vmem:[%s9512_s5 + $0x214] ss:$8 sps:$4 sm:$0xff]   ;;  %v7796_v38 = vld [vmem:[%s9512_s5 + $0x210] ss:$8 sps:$4 sm:$0xff]   ;;  %v7801_v42 = vld [vmem:[%s9512_s5 + $0x224] ss:$8 sps:$4 sm:$0xff]  }
 0x553   : > { %v6612_v49 = vpop.f32.mrf.mxu0 }
 0x555   : > { %v6613_v52 = vpop.f32.mrf.mxu0 }
 0x556   : > { %v6614_v8 = vadd.f32 %v6613_v52, %v6612_v49  ;;  %v7799_v49 = vld [vmem:[%s9512_s5 + $0x220] ss:$8 sps:$4 sm:$0xff]   ;;  %v7804_v52 = vld [vmem:[%s9512_s5 + $0x234] ss:$8 sps:$4 sm:$0xff]  }
 0x557   : > { %v6615_v62 = vpop.f32.mrf.mxu0 }
 0x558   : > { %v2083_v2 = vpack.c.bf16 %v6614_v8, %v6611_v63  ;;  %v7802_v63 = vld [vmem:[%s9512_s5 + $0x230] ss:$8 sps:$4 sm:$0xff]   ;;  %v2293_v8 = vld [vmem:[%s9509_s2 + $0x1c] sm:$0xf] }
 0x559   : > { %v6616_v37 = vpop.f32.mrf.mxu0  ;;  %7652 = vmatprep.subr.msk.bf16.mxu0 %vm991_vm0, %v2293_v8 }
 0x55a   : > { %7260 = vmatmul.mubr.msk.bf16.vlgmr.msra.gmra.mxu1 %vm978_vm3, %v2083_v2  ;;  %v6617_v4 = vadd.f32 %v6616_v37, %v6615_v62  ;;  %v2307_v62 = vsel %vm991_vm0, %v2293_v8, 0  ;;  %v2500_v2 = vld [vmem:[%s9509_s2 + $0x20] sm:$0xf] }
 0x55b   : > { %6633 = vmatpush3.bf16.msra.mxu1 %v8079_v19  ;;  %v6618_v3 = vpop.f32.mrf.mxu0  ;;  %7268 = vmatpush3.bf16.msra.mxu0 %v2307_v62 }
 0x55c   : > { %6634 = vmatprep.subr.bf16.mxu1 %v8083_v25  ;;  %7653 = vmatprep.subr.msk.bf16.mxu0 %vm991_vm0, %v2500_v2 }
 0x55d   : > { %v6619_v57 = vpop.f32.mrf.mxu0 }
 0x55e   : > { %v6620_v5 = vadd.f32 %v6619_v57, %v6618_v3 }
 0x55f   : > { %6635 = vmatpush3.bf16.msra.mxu1 %v8093_v31  ;;  %v6621_v32 = vpop.f32.mrf.mxu0 }
 0x560   : > { %v2084_v6 = vpack.c.bf16 %v6620_v5, %v6617_v4  ;;  %6636 = vmatprep.subr.bf16.mxu1 %v8099_v39 }
 0x561   : > { %v6622_v60 = vpop.f32.mrf.mxu0 }
 0x562   : > { %7263 = vmatprep.mubr.msk.bf16.mxu1 %vm978_vm3, %v2084_v6  ;;  %v6623_v58 = vadd.f32 %v6622_v60, %v6621_v32 }
 0x563   : > { %6637 = vmatpush3.bf16.msra.mxu1 %v8109_v47  ;;  %v6624_v9 = vpop.f32.mrf.mxu0 }
 0x564   : > { %6638 = vmatprep.subr.bf16.mxu1 %v8115_v61 }
 0x565   : > { %v6625_v21 = vpop.f32.mrf.mxu0 }
 0x566   : > { %v6626_v11 = vadd.f32 %v6625_v21, %v6624_v9 }
 0x567   : > { %6639 = vmatpush3.bf16.msra.mxu1 %v8123_v1 }
 0x568   : > { %v2085_v40 = vpack.c.bf16 %v6626_v11, %v6623_v58  ;;  %6640 = vmatprep.subr.bf16.mxu1 %v8129_v59 }
 0x56a   : > { %7264 = vmatmul.mubr.msk.bf16.gmra.mxu1 %vm978_vm3, %v2085_v40 }
 0x56b   : > { %6641 = vmatpush3.bf16.msra.mxu1 %v8049_v44  ;;  %2256 = vmatprep.mubr.bf16.mxu1 %v7783_v53 }
 0x56c   : > { %6642 = vmatprep.subr.bf16.mxu1 %v8143_v7 }
 0x56f   : > { %6643 = vmatpush3.bf16.msra.mxu1 %v8151_v10 }
 0x570   : > { %6644 = vmatprep.subr.bf16.mxu1 %v8157_v55 }
 0x573   : > { %6645 = vmatpush3.bf16.msra.mxu1 %v8043_v35 }
 0x574   : > { %6646 = vmatprep.subr.bf16.mxu1 %v8167_v14 }
 0x577   : > { %6647 = vmatpush3.bf16.msra.mxu1 %v8172_v56 }
 0x578   : > { %6677 = vmatprep.subr.bf16.mxu1 %v8077_v18 }
 0x57a   : > { %2257 = vmatmul.mubr.bf16.vlgmr.msra.gmra.mxu1 %v7781_v43 }
 0x57b   : > { %6678 = vmatpush3.bf16.msra.mxu1 %v8079_v19  ;;  %2264 = vmatprep.mubr.bf16.mxu1 %v7784_v50 }
 0x57c   : > { %6679 = vmatprep.subr.bf16.mxu1 %v8083_v25 }
 0x57f   : > { %6680 = vmatpush3.bf16.msra.mxu1 %v8093_v31 }
 0x580   : > { %6681 = vmatprep.subr.bf16.mxu1 %v8099_v39 }
 0x582   : > { %2265 = vmatmul.mubr.bf16.gmra.mxu1 %v7786_v46 }
 0x583   : > { %6682 = vmatpush3.bf16.msra.mxu1 %v8109_v47  ;;  %2272 = vmatprep.mubr.bf16.mxu1 %v7787_v45 }
 0x584   : > { %6683 = vmatprep.subr.bf16.mxu1 %v8115_v61 }
 0x587   : > { %6684 = vmatpush3.bf16.msra.mxu1 %v8123_v1 }
 0x588   : > { %6685 = vmatprep.subr.bf16.mxu1 %v8129_v59 }
 0x58a   : > { %2273 = vmatmul.mubr.bf16.gmra.mxu1 %v7789_v0 }
 0x58b   : > { %6686 = vmatpush3.bf16.msra.mxu1 %v8049_v44  ;;  %2280 = vmatprep.mubr.bf16.mxu1 %v7790_v48 }
 0x58c   : > { %6687 = vmatprep.subr.bf16.mxu1 %v8143_v7 }
 0x58f   : > { %6688 = vmatpush3.bf16.msra.mxu1 %v8151_v10 }
 0x590   : > { %6689 = vmatprep.subr.bf16.mxu1 %v8157_v55 }
 0x592   : > { %2281 = vmatmul.mubr.bf16.gmra.mxu1 %v7792_v29 }
 0x593   : > { %6690 = vmatpush3.bf16.msra.mxu1 %v8043_v35  ;;  %2463 = vmatprep.mubr.bf16.mxu1 %v7795_v30 }
 0x594   : > { %6691 = vmatprep.subr.bf16.mxu1 %v8167_v14 }
 0x597   : > { %6692 = vmatpush3.bf16.msra.mxu1 %v8172_v56 }
 0x59a   : > { %2464 = vmatmul.mubr.bf16.vlgmr.msra.gmra.mxu1 %v7793_v33 }
 0x59b   : > { %2471 = vmatprep.mubr.bf16.mxu1 %v7798_v34 }
 0x5a2   : > { %2472 = vmatmul.mubr.bf16.gmra.mxu1 %v7796_v38 }
 0x5a3   : > { %2479 = vmatprep.mubr.bf16.mxu1 %v7801_v42 }
 0x5aa   : > { %2480 = vmatmul.mubr.bf16.gmra.mxu1 %v7799_v49 }
 0x5ab   : > { %2487 = vmatprep.mubr.bf16.mxu1 %v7804_v52 }
 0x5b2   : > { %2488 = vmatmul.mubr.bf16.gmra.mxu1 %v7802_v63 }
 0x5fa   : > { %v7251_v37 = vpop.f32.mrf.mxu1 }
 0x5fb   : > { %v1962_v3 = vadd.f32 %v7251_v37, %v8536_v16 }
 0x5fc   : > { %v1929_v4 = vpop.f32.mrf.mxu1 }
 0x5fd   : > { %v1960_v57 = vadd.f32 %v1929_v4, %v8538_v28 }
 0x5fe   : > { %v7252_v5 = vpop.f32.mrf.mxu1 }
 0x5ff   : > { %v1963_v32 = vadd.f32 %v7252_v5, %v8540_v17 }
 0x600   : > { %v8653_v6 = vpop.f32.mrf.mxu1 }
 0x60a   : > { %v7255_v60 = vpop.f32.mrf.mxu1 }
 0x60b   : > { %v1966_v9 = vadd.f32 %v7255_v60, %v8544_v23  ;;  %v2514_v60 = vsel %vm991_vm0, %v2500_v2, 0 }
 0x60c   : > { %v1945_v58 = vpop.f32.mrf.mxu1 }
 0x60d   : > { %v1964_v21 = vadd.f32 %v1945_v58, %v8546_v24 }
 0x60e   : > { %v7256_v11 = vpop.f32.mrf.mxu1 }
 0x60f   : > { %v1967_v53 = vadd.f32 %v7256_v11, %v8548_v26 }
 0x610   : > { %v8658_v40 = vpop.f32.mrf.mxu1 }
 0x61a   : > { %v7261_v16 = vpop.f32.mrf.mxu1 }
 0x61b   : > { %v8660_v43 = vadd.f32 %v7261_v16, %v1962_v3 }
 0x61c   : > { %v2136_v28 = vpop.f32.mrf.mxu1 }
 0x61d   : > { %v8662_v50 = vadd.f32 %v2136_v28, %v1960_v57 }
 0x61e   : > { %v7262_v17 = vpop.f32.mrf.mxu1 }
 0x61f   : > { %v8664_v46 = vadd.f32 %v7262_v17, %v1963_v32 }
 0x620   : > { %v8666_v45 = vpop.f32.mrf.mxu1 }
 0x62a   : > { %v7265_v23 = vpop.f32.mrf.mxu1 }
 0x62b   : > { %v8668_v0 = vadd.f32 %v7265_v23, %v1966_v9 }
 0x62c   : > { %v2152_v24 = vpop.f32.mrf.mxu1 }
 0x62d   : > { %v8670_v48 = vadd.f32 %v2152_v24, %v1964_v21 }
 0x62e   : > { %v7266_v26 = vpop.f32.mrf.mxu1 }
 0x62f   : > { %v8672_v29 = vadd.f32 %v7266_v26, %v1967_v53 }
 0x630   : > { %v8674_v30 = vpop.f32.mrf.mxu1 }
 0x63a   : > { %v6648_v33 = vpop.f32.mrf.mxu1 }
 0x63c   : > { %v6649_v34 = vpop.f32.mrf.mxu1 }
 0x63d   : > { %v6650_v49 = vadd.f32 %v6649_v34, %v6648_v33 }
 0x63e   : > { %v6651_v38 = vpop.f32.mrf.mxu1 }
 0x640   : > { %v6652_v42 = vpop.f32.mrf.mxu1 }
 0x641   : > { %v6653_v52 = vadd.f32 %v6652_v42, %v6651_v38 }
 0x642   : > { %v6654_v63 = vpop.f32.mrf.mxu1 }
 0x643   : > { %v2289_v8 = vpack.c.bf16 %v6653_v52, %v6650_v49 }
 0x644   : > { %v6655_v62 = vpop.f32.mrf.mxu1 }
 0x645   : > { %7269 = vmatprep.mubr.msk.bf16.mxu0 %vm978_vm3, %v2289_v8  ;;  %v6656_v4 = vadd.f32 %v6655_v62, %v6654_v63 }
 0x646   : > { %v6657_v37 = vpop.f32.mrf.mxu1 }
 0x648   : > { %v6658_v3 = vpop.f32.mrf.mxu1 }
 0x649   : > { %v6659_v57 = vadd.f32 %v6658_v3, %v6657_v37 }
 0x64a   : > { %v6660_v5 = vpop.f32.mrf.mxu1 }
 0x64b   : > { %v2290_v32 = vpack.c.bf16 %v6659_v57, %v6656_v4 }
 0x64c   : > { %v6661_v9 = vpop.f32.mrf.mxu1 }
 0x64d   : > { %7270 = vmatmul.mubr.msk.bf16.vlgmr.msra.gmra.mxu0 %vm978_vm3, %v2290_v32  ;;  %v6662_v11 = vadd.f32 %v6661_v9, %v6660_v5 }
 0x64e   : > { %7278 = vmatpush3.bf16.msra.mxu0 %v2514_v60  ;;  %v6663_v58 = vpop.f32.mrf.mxu1 }
 0x64f   : > { %6722 = vmatprep.subr.bf16.mxu0 %v8077_v18 }
 0x650   : > { %v6664_v21 = vpop.f32.mrf.mxu1 }
 0x651   : > { %v6665_v53 = vadd.f32 %v6664_v21, %v6663_v58 }
 0x652   : > { %v6666_v16 = vpop.f32.mrf.mxu1 }
 0x653   : > { %v2291_v28 = vpack.c.bf16 %v6665_v53, %v6662_v11 }
 0x654   : > { %v6667_v17 = vpop.f32.mrf.mxu1 }
 0x655   : > { %7273 = vmatprep.mubr.msk.bf16.mxu0 %vm978_vm3, %v2291_v28  ;;  %v6668_v26 = vadd.f32 %v6667_v17, %v6666_v16 }
 0x656   : > { %v6669_v23 = vpop.f32.mrf.mxu1 }
 0x658   : > { %v6670_v24 = vpop.f32.mrf.mxu1 }
 0x659   : > { %v6671_v33 = vadd.f32 %v6670_v24, %v6669_v23 }
 0x65a   : > { %v6693_v2 = vpop.f32.mrf.mxu1 }
 0x65b   : > { %v2292_v34 = vpack.c.bf16 %v6671_v33, %v6668_v26 }
 0x65c   : > { %v6694_v38 = vpop.f32.mrf.mxu1 }
 0x65d   : > { %7274 = vmatmul.mubr.msk.bf16.gmra.mxu0 %vm978_vm3, %v2292_v34  ;;  %v6695_v52 = vadd.f32 %v6694_v38, %v6693_v2  ;;  %v7807_v2 = vld [vmem:[%s9512_s5 + $0x244] ss:$8 sps:$4 sm:$0xff]   ;;  %v7805_v38 = vld [vmem:[%s9512_s5 + $0x240] ss:$8 sps:$4 sm:$0xff]  }
 0x65e   : > { %v6696_v42 = vpop.f32.mrf.mxu1 }
 0x660   : > { %v6697_v49 = vpop.f32.mrf.mxu1 }
 0x661   : > { %v6698_v63 = vadd.f32 %v6697_v49, %v6696_v42  ;;  %v7810_v42 = vld [vmem:[%s9512_s5 + $0x254] ss:$8 sps:$4 sm:$0xff]   ;;  %v7808_v49 = vld [vmem:[%s9512_s5 + $0x250] ss:$8 sps:$4 sm:$0xff]  }
 0x662   : > { %v6699_v8 = vpop.f32.mrf.mxu1 }
 0x663   : > { %v2496_v62 = vpack.c.bf16 %v6698_v63, %v6695_v52  ;;  %v7813_v52 = vld [vmem:[%s9512_s5 + $0x264] ss:$8 sps:$4 sm:$0xff]   ;;  %v7811_v63 = vld [vmem:[%s9512_s5 + $0x260] ss:$8 sps:$4 sm:$0xff]  }
 0x664   : > { %v6700_v37 = vpop.f32.mrf.mxu1 }
 0x665   : > { %7279 = vmatprep.mubr.msk.bf16.mxu0 %vm978_vm3, %v2496_v62  ;;  %v6701_v57 = vadd.f32 %v6700_v37, %v6699_v8  ;;  %v7816_v8 = vld [vmem:[%s9512_s5 + $0x274] ss:$8 sps:$4 sm:$0xff]   ;;  %v7814_v62 = vld [vmem:[%s9512_s5 + $0x270] ss:$8 sps:$4 sm:$0xff]   ;;  %v7819_v37 = vld [vmem:[%s9512_s5 + $0x284] ss:$8 sps:$4 sm:$0xff]  }
 0x666   : > { %v6702_v3 = vpop.f32.mrf.mxu1 }
 0x668   : > { %v6703_v4 = vpop.f32.mrf.mxu1 }
 0x669   : > { %v6704_v5 = vadd.f32 %v6703_v4, %v6702_v3  ;;  %v7817_v3 = vld [vmem:[%s9512_s5 + $0x280] ss:$8 sps:$4 sm:$0xff]   ;;  %v7822_v4 = vld [vmem:[%s9512_s5 + $0x294] ss:$8 sps:$4 sm:$0xff]  }
 0x66a   : > { %v6705_v32 = vpop.f32.mrf.mxu1 }
 0x66b   : > { %v2497_v60 = vpack.c.bf16 %v6704_v5, %v6701_v57  ;;  %v7820_v57 = vld [vmem:[%s9512_s5 + $0x290] ss:$8 sps:$4 sm:$0xff]   ;;  %v7825_v5 = vld [vmem:[%s9512_s5 + $0x2a4] ss:$8 sps:$4 sm:$0xff]  }
 0x66c   : > { %v6706_v9 = vpop.f32.mrf.mxu1 }
 0x66d   : > { %7280 = vmatmul.mubr.msk.bf16.vlgmr.msra.gmra.mxu0 %vm978_vm3, %v2497_v60  ;;  %v6707_v21 = vadd.f32 %v6706_v9, %v6705_v32  ;;  %v7823_v32 = vld [vmem:[%s9512_s5 + $0x2a0] ss:$8 sps:$4 sm:$0xff]   ;;  %v7828_v60 = vld [vmem:[%s9512_s5 + $0x2b4] ss:$8 sps:$4 sm:$0xff]   ;;  %v7826_v9 = vld [vmem:[%s9512_s5 + $0x2b0] ss:$8 sps:$4 sm:$0xff]  }
 0x66e   : > { %6723 = vmatpush3.bf16.msra.mxu0 %v8079_v19  ;;  %v6708_v58 = vpop.f32.mrf.mxu1 }
 0x66f   : > { %6724 = vmatprep.subr.bf16.mxu0 %v8083_v25 }
 0x670   : > { %v6709_v11 = vpop.f32.mrf.mxu1 }
 0x671   : > { %v6710_v53 = vadd.f32 %v6709_v11, %v6708_v58  ;;  %v2707_v58 = vld [vmem:[%s9509_s2 + $0x24] sm:$0xf]  ;;  %v2914_v11 = vld [vmem:[%s9509_s2 + $0x28] sm:$0xf] }
 0x672   : > { %6725 = vmatpush3.bf16.msra.mxu0 %v8093_v31  ;;  %v6711_v16 = vpop.f32.mrf.mxu1  ;;  %7654 = vmatprep.subr.msk.bf16.mxu1 %vm991_vm0, %v2707_v58 }
 0x673   : > { %v2498_v28 = vpack.c.bf16 %v6710_v53, %v6707_v21  ;;  %6726 = vmatprep.subr.bf16.mxu0 %v8099_v39  ;;  %v2721_v21 = vsel %vm991_vm0, %v2707_v58, 0 }
 0x674   : > { %v6712_v17 = vpop.f32.mrf.mxu1  ;;  %7288 = vmatpush3.bf16.msra.mxu1 %v2721_v21 }
 0x675   : > { %7283 = vmatprep.mubr.msk.bf16.mxu0 %vm978_vm3, %v2498_v28  ;;  %v6713_v24 = vadd.f32 %v6712_v17, %v6711_v16  ;;  %7655 = vmatprep.subr.msk.bf16.mxu1 %vm991_vm0, %v2914_v11 }
 0x676   : > { %6727 = vmatpush3.bf16.msra.mxu0 %v8109_v47  ;;  %v6714_v23 = vpop.f32.mrf.mxu1 }
 0x677   : > { %6728 = vmatprep.subr.bf16.mxu0 %v8115_v61 }
 0x678   : > { %v6715_v26 = vpop.f32.mrf.mxu1 }
 0x679   : > { %v6716_v33 = vadd.f32 %v6715_v26, %v6714_v23 }
 0x67a   : > { %6729 = vmatpush3.bf16.msra.mxu0 %v8123_v1 }
 0x67b   : > { %v2499_v34 = vpack.c.bf16 %v6716_v33, %v6713_v24  ;;  %6730 = vmatprep.subr.bf16.mxu0 %v8129_v59 }
 0x67d   : > { %7284 = vmatmul.mubr.msk.bf16.gmra.mxu0 %vm978_vm3, %v2499_v34 }
 0x67e   : > { %6731 = vmatpush3.bf16.msra.mxu0 %v8049_v44  ;;  %2670 = vmatprep.mubr.bf16.mxu0 %v7807_v2 }
 0x67f   : > { %6732 = vmatprep.subr.bf16.mxu0 %v8143_v7 }
 0x682   : > { %6733 = vmatpush3.bf16.msra.mxu0 %v8151_v10 }
 0x683   : > { %6734 = vmatprep.subr.bf16.mxu0 %v8157_v55 }
 0x686   : > { %6735 = vmatpush3.bf16.msra.mxu0 %v8043_v35 }
 0x687   : > { %6736 = vmatprep.subr.bf16.mxu0 %v8167_v14 }
 0x68a   : > { %6737 = vmatpush3.bf16.msra.mxu0 %v8172_v56 }
 0x68b   : > { %6767 = vmatprep.subr.bf16.mxu0 %v8077_v18 }
 0x68d   : > { %2671 = vmatmul.mubr.bf16.vlgmr.msra.gmra.mxu0 %v7805_v38 }
 0x68e   : > { %6768 = vmatpush3.bf16.msra.mxu0 %v8079_v19  ;;  %2678 = vmatprep.mubr.bf16.mxu0 %v7810_v42 }
 0x68f   : > { %6769 = vmatprep.subr.bf16.mxu0 %v8083_v25 }
 0x692   : > { %6770 = vmatpush3.bf16.msra.mxu0 %v8093_v31 }
 0x693   : > { %6771 = vmatprep.subr.bf16.mxu0 %v8099_v39 }
 0x695   : > { %2679 = vmatmul.mubr.bf16.gmra.mxu0 %v7808_v49 }
 0x696   : > { %6772 = vmatpush3.bf16.msra.mxu0 %v8109_v47  ;;  %2686 = vmatprep.mubr.bf16.mxu0 %v7813_v52 }
 0x697   : > { %6773 = vmatprep.subr.bf16.mxu0 %v8115_v61 }
 0x69a   : > { %6774 = vmatpush3.bf16.msra.mxu0 %v8123_v1 }
 0x69b   : > { %6775 = vmatprep.subr.bf16.mxu0 %v8129_v59 }
 0x69d   : > { %2687 = vmatmul.mubr.bf16.gmra.mxu0 %v7811_v63 }
 0x69e   : > { %6776 = vmatpush3.bf16.msra.mxu0 %v8049_v44  ;;  %2694 = vmatprep.mubr.bf16.mxu0 %v7816_v8 }
 0x69f   : > { %6777 = vmatprep.subr.bf16.mxu0 %v8143_v7 }
 0x6a2   : > { %6778 = vmatpush3.bf16.msra.mxu0 %v8151_v10 }
 0x6a3   : > { %6779 = vmatprep.subr.bf16.mxu0 %v8157_v55 }
 0x6a5   : > { %2695 = vmatmul.mubr.bf16.gmra.mxu0 %v7814_v62 }
 0x6a6   : > { %6780 = vmatpush3.bf16.msra.mxu0 %v8043_v35  ;;  %2877 = vmatprep.mubr.bf16.mxu0 %v7819_v37 }
 0x6a7   : > { %6781 = vmatprep.subr.bf16.mxu0 %v8167_v14 }
 0x6aa   : > { %6782 = vmatpush3.bf16.msra.mxu0 %v8172_v56 }
 0x6ad   : > { %2878 = vmatmul.mubr.bf16.vlgmr.msra.gmra.mxu0 %v7817_v3 }
 0x6ae   : > { %2885 = vmatprep.mubr.bf16.mxu0 %v7822_v4 }
 0x6b5   : > { %2886 = vmatmul.mubr.bf16.gmra.mxu0 %v7820_v57 }
 0x6b6   : > { %2893 = vmatprep.mubr.bf16.mxu0 %v7825_v5 }
 0x6bd   : > { %2894 = vmatmul.mubr.bf16.gmra.mxu0 %v7823_v32 }
 0x6be   : > { %2901 = vmatprep.mubr.bf16.mxu0 %v7828_v60 }
 0x6c5   : > { %2902 = vmatmul.mubr.bf16.gmra.mxu0 %v7826_v9 }
 0x70d   : > { %v7271_v53 = vpop.f32.mrf.mxu0 }
 0x70e   : > { %v2376_v16 = vadd.f32 %v7271_v53, %v8660_v43 }
 0x70f   : > { %v2343_v28 = vpop.f32.mrf.mxu0 }
 0x710   : > { %v2374_v17 = vadd.f32 %v2343_v28, %v8662_v50 }
 0x711   : > { %v7272_v23 = vpop.f32.mrf.mxu0 }
 0x712   : > { %v2377_v24 = vadd.f32 %v7272_v23, %v8664_v46 }
 0x713   : > { %v8777_v26 = vpop.f32.mrf.mxu0 }
 0x71d   : > { %v7275_v33 = vpop.f32.mrf.mxu0 }
 0x71e   : > { %v2380_v2 = vadd.f32 %v7275_v33, %v8668_v0 }
 0x71f   : > { %v2359_v34 = vpop.f32.mrf.mxu0 }
 0x720   : > { %v2378_v38 = vadd.f32 %v2359_v34, %v8670_v48 }
 0x721   : > { %v7276_v42 = vpop.f32.mrf.mxu0 }
 0x722   : > { %v2381_v49 = vadd.f32 %v7276_v42, %v8672_v29  ;;  %v2928_v42 = vsel %vm991_vm0, %v2914_v11, 0 }
 0x723   : > { %v8782_v52 = vpop.f32.mrf.mxu0 }
 0x72d   : > { %v7281_v43 = vpop.f32.mrf.mxu0 }
 0x72e   : > { %v8784_v63 = vadd.f32 %v7281_v43, %v2376_v16 }
 0x72f   : > { %v2550_v50 = vpop.f32.mrf.mxu0 }
 0x730   : > { %v8786_v8 = vadd.f32 %v2550_v50, %v2374_v17 }
 0x731   : > { %v7282_v46 = vpop.f32.mrf.mxu0 }
 0x732   : > { %v8788_v62 = vadd.f32 %v7282_v46, %v2377_v24 }
 0x733   : > { %v8790_v37 = vpop.f32.mrf.mxu0 }
 0x73d   : > { %v7285_v0 = vpop.f32.mrf.mxu0 }
 0x73e   : > { %v8792_v3 = vadd.f32 %v7285_v0, %v2380_v2 }
 0x73f   : > { %v2566_v48 = vpop.f32.mrf.mxu0 }
 0x740   : > { %v8794_v4 = vadd.f32 %v2566_v48, %v2378_v38 }
 0x741   : > { %v7286_v29 = vpop.f32.mrf.mxu0 }
 0x742   : > { %v8796_v57 = vadd.f32 %v7286_v29, %v2381_v49 }
 0x743   : > { %v8798_v5 = vpop.f32.mrf.mxu0 }
 0x74d   : > { %v6738_v32 = vpop.f32.mrf.mxu0 }
 0x74f   : > { %v6739_v60 = vpop.f32.mrf.mxu0 }
 0x750   : > { %v6740_v21 = vadd.f32 %v6739_v60, %v6738_v32 }
 0x751   : > { %v6741_v9 = vpop.f32.mrf.mxu0 }
 0x753   : > { %v6742_v58 = vpop.f32.mrf.mxu0 }
 0x754   : > { %v6743_v53 = vadd.f32 %v6742_v58, %v6741_v9 }
 0x755   : > { %v6744_v16 = vpop.f32.mrf.mxu0 }
 0x756   : > { %v2703_v28 = vpack.c.bf16 %v6743_v53, %v6740_v21 }
 0x757   : > { %v6745_v17 = vpop.f32.mrf.mxu0 }
 0x758   : > { %7289 = vmatprep.mubr.msk.bf16.mxu1 %vm978_vm3, %v2703_v28  ;;  %v6746_v33 = vadd.f32 %v6745_v17, %v6744_v16 }
 0x759   : > { %v6747_v23 = vpop.f32.mrf.mxu0 }
 0x75b   : > { %v6748_v24 = vpop.f32.mrf.mxu0 }
 0x75c   : > { %v6749_v2 = vadd.f32 %v6748_v24, %v6747_v23 }
 0x75d   : > { %v6750_v34 = vpop.f32.mrf.mxu0 }
 0x75e   : > { %v2704_v38 = vpack.c.bf16 %v6749_v2, %v6746_v33 }
 0x75f   : > { %v6751_v49 = vpop.f32.mrf.mxu0 }
 0x760   : > { %7290 = vmatmul.mubr.msk.bf16.vlgmr.msra.gmra.mxu1 %vm978_vm3, %v2704_v38  ;;  %v6752_v46 = vadd.f32 %v6751_v49, %v6750_v34 }
 0x761   : > { %7298 = vmatpush3.bf16.msra.mxu1 %v2928_v42  ;;  %v6753_v43 = vpop.f32.mrf.mxu0 }
 0x762   : > { %6812 = vmatprep.subr.bf16.mxu1 %v8077_v18 }
 0x763   : > { %v6754_v50 = vpop.f32.mrf.mxu0 }
 0x764   : > { %v6755_v0 = vadd.f32 %v6754_v50, %v6753_v43 }
 0x765   : > { %v6756_v48 = vpop.f32.mrf.mxu0 }
 0x766   : > { %v2705_v29 = vpack.c.bf16 %v6755_v0, %v6752_v46 }
 0x767   : > { %v6757_v32 = vpop.f32.mrf.mxu0 }
 0x768   : > { %7293 = vmatprep.mubr.msk.bf16.mxu1 %vm978_vm3, %v2705_v29  ;;  %v6758_v58 = vadd.f32 %v6757_v32, %v6756_v48 }
 0x769   : > { %v6759_v60 = vpop.f32.mrf.mxu0 }
 0x76b   : > { %v6760_v9 = vpop.f32.mrf.mxu0 }
 0x76c   : > { %v6761_v21 = vadd.f32 %v6760_v9, %v6759_v60 }
 0x76d   : > { %v6783_v11 = vpop.f32.mrf.mxu0 }
 0x76e   : > { %v2706_v53 = vpack.c.bf16 %v6761_v21, %v6758_v58 }
 0x76f   : > { %v6784_v16 = vpop.f32.mrf.mxu0 }
 0x770   : > { %7294 = vmatmul.mubr.msk.bf16.gmra.mxu1 %vm978_vm3, %v2706_v53  ;;  %v6785_v23 = vadd.f32 %v6784_v16, %v6783_v11 }
 0x771   : > { %v6786_v28 = vpop.f32.mrf.mxu0 }
 0x773   : > { %v6787_v17 = vpop.f32.mrf.mxu0 }
 0x774   : > { %v6788_v24 = vadd.f32 %v6787_v17, %v6786_v28  ;;  %v7831_v17 = vld [vmem:[%s9512_s5 + $0x2c4] ss:$8 sps:$4 sm:$0xff]  }
 0x775   : > { %v6789_v33 = vpop.f32.mrf.mxu0 }
 0x776   : > { %v2910_v2 = vpack.c.bf16 %v6788_v24, %v6785_v23  ;;  %v7829_v24 = vld [vmem:[%s9512_s5 + $0x2c0] ss:$8 sps:$4 sm:$0xff]  }
 0x777   : > { %v6790_v34 = vpop.f32.mrf.mxu0 }
 0x778   : > { %7299 = vmatprep.mubr.msk.bf16.mxu1 %vm978_vm3, %v2910_v2  ;;  %v6791_v49 = vadd.f32 %v6790_v34, %v6789_v33  ;;  %v7834_v33 = vld [vmem:[%s9512_s5 + $0x2d4] ss:$8 sps:$4 sm:$0xff]   ;;  %v7832_v2 = vld [vmem:[%s9512_s5 + $0x2d0] ss:$8 sps:$4 sm:$0xff]   ;;  %v7837_v34 = vld [vmem:[%s9512_s5 + $0x2e4] ss:$8 sps:$4 sm:$0xff]  }
 0x779   : > { %v6792_v38 = vpop.f32.mrf.mxu0 }
 0x77b   : > { %v6793_v42 = vpop.f32.mrf.mxu0 }
 0x77c   : > { %v6794_v43 = vadd.f32 %v6793_v42, %v6792_v38  ;;  %v7835_v38 = vld [vmem:[%s9512_s5 + $0x2e0] ss:$8 sps:$4 sm:$0xff]   ;;  %v7840_v42 = vld [vmem:[%s9512_s5 + $0x2f4] ss:$8 sps:$4 sm:$0xff]  }
 0x77d   : > { %v6795_v50 = vpop.f32.mrf.mxu0 }
 0x77e   : > { %v2911_v46 = vpack.c.bf16 %v6794_v43, %v6791_v49  ;;  %v7838_v49 = vld [vmem:[%s9512_s5 + $0x2f0] ss:$8 sps:$4 sm:$0xff]   ;;  %v7843_v43 = vld [vmem:[%s9512_s5 + $0x304] ss:$8 sps:$4 sm:$0xff]  }
 0x77f   : > { %v6796_v0 = vpop.f32.mrf.mxu0 }
 0x780   : > { %7300 = vmatmul.mubr.msk.bf16.vlgmr.msra.gmra.mxu1 %vm978_vm3, %v2911_v46  ;;  %v6797_v29 = vadd.f32 %v6796_v0, %v6795_v50  ;;  %v7841_v50 = vld [vmem:[%s9512_s5 + $0x300] ss:$8 sps:$4 sm:$0xff]   ;;  %v7846_v46 = vld [vmem:[%s9512_s5 + $0x314] ss:$8 sps:$4 sm:$0xff]   ;;  %v7844_v0 = vld [vmem:[%s9512_s5 + $0x310] ss:$8 sps:$4 sm:$0xff]  }
 0x781   : > { %6813 = vmatpush3.bf16.msra.mxu1 %v8079_v19  ;;  %v6798_v48 = vpop.f32.mrf.mxu0 }
 0x782   : > { %6814 = vmatprep.subr.bf16.mxu1 %v8083_v25 }
 0x783   : > { %v6799_v32 = vpop.f32.mrf.mxu0 }
 0x784   : > { %v6800_v60 = vadd.f32 %v6799_v32, %v6798_v48  ;;  %v7849_v48 = vld [vmem:[%s9512_s5 + $0x324] ss:$8 sps:$4 sm:$0xff]   ;;  %v7852_v32 = vld [vmem:[%s9512_s5 + $0x334] ss:$8 sps:$4 sm:$0xff]  }
 0x785   : > { %6815 = vmatpush3.bf16.msra.mxu1 %v8093_v31  ;;  %v6801_v9 = vpop.f32.mrf.mxu0 }
 0x786   : > { %v2912_v58 = vpack.c.bf16 %v6800_v60, %v6797_v29  ;;  %6816 = vmatprep.subr.bf16.mxu1 %v8099_v39  ;;  %v7847_v29 = vld [vmem:[%s9512_s5 + $0x320] ss:$8 sps:$4 sm:$0xff]   ;;  %v7850_v60 = vld [vmem:[%s9512_s5 + $0x330] ss:$8 sps:$4 sm:$0xff]  }
 0x787   : > { %v6802_v21 = vpop.f32.mrf.mxu0 }
 0x788   : > { %7303 = vmatprep.mubr.msk.bf16.mxu1 %vm978_vm3, %v2912_v58  ;;  %v6803_v53 = vadd.f32 %v6802_v21, %v6801_v9  ;;  %v3121_v9 = vld [vmem:[%s9509_s2 + $0x2c] sm:$0xf]  ;;  %v3328_v21 = vld [vmem:[%s9509_s2 + $0x30] sm:$0xf] }
 0x789   : > { %6817 = vmatpush3.bf16.msra.mxu1 %v8109_v47  ;;  %v6804_v11 = vpop.f32.mrf.mxu0  ;;  %7656 = vmatprep.subr.msk.bf16.mxu0 %vm991_vm0, %v3121_v9  ;;  %v3135_v58 = vsel %vm991_vm0, %v3121_v9, 0 }
 0x78a   : > { %6818 = vmatprep.subr.bf16.mxu1 %v8115_v61  ;;  %7308 = vmatpush3.bf16.msra.mxu0 %v3135_v58 }
 0x78b   : > { %v6805_v16 = vpop.f32.mrf.mxu0  ;;  %7657 = vmatprep.subr.msk.bf16.mxu0 %vm991_vm0, %v3328_v21 }
 0x78c   : > { %v6806_v28 = vadd.f32 %v6805_v16, %v6804_v11 }
 0x78d   : > { %6819 = vmatpush3.bf16.msra.mxu1 %v8123_v1 }
 0x78e   : > { %v2913_v23 = vpack.c.bf16 %v6806_v28, %v6803_v53  ;;  %6820 = vmatprep.subr.bf16.mxu1 %v8129_v59 }
 0x790   : > { %7304 = vmatmul.mubr.msk.bf16.gmra.mxu1 %vm978_vm3, %v2913_v23 }
 0x791   : > { %6821 = vmatpush3.bf16.msra.mxu1 %v8049_v44  ;;  %3084 = vmatprep.mubr.bf16.mxu1 %v7831_v17 }
 0x792   : > { %6822 = vmatprep.subr.bf16.mxu1 %v8143_v7 }
 0x795   : > { %6823 = vmatpush3.bf16.msra.mxu1 %v8151_v10 }
 0x796   : > { %6824 = vmatprep.subr.bf16.mxu1 %v8157_v55 }
 0x799   : > { %6825 = vmatpush3.bf16.msra.mxu1 %v8043_v35 }
 0x79a   : > { %6826 = vmatprep.subr.bf16.mxu1 %v8167_v14 }
 0x79d   : > { %6827 = vmatpush3.bf16.msra.mxu1 %v8172_v56 }
 0x79e   : > { %6857 = vmatprep.subr.bf16.mxu1 %v8077_v18 }
 0x7a0   : > { %3085 = vmatmul.mubr.bf16.vlgmr.msra.gmra.mxu1 %v7829_v24 }
 0x7a1   : > { %6858 = vmatpush3.bf16.msra.mxu1 %v8079_v19  ;;  %3092 = vmatprep.mubr.bf16.mxu1 %v7834_v33 }
 0x7a2   : > { %6859 = vmatprep.subr.bf16.mxu1 %v8083_v25 }
 0x7a5   : > { %6860 = vmatpush3.bf16.msra.mxu1 %v8093_v31 }
 0x7a6   : > { %6861 = vmatprep.subr.bf16.mxu1 %v8099_v39 }
 0x7a8   : > { %3093 = vmatmul.mubr.bf16.gmra.mxu1 %v7832_v2 }
 0x7a9   : > { %6862 = vmatpush3.bf16.msra.mxu1 %v8109_v47  ;;  %3100 = vmatprep.mubr.bf16.mxu1 %v7837_v34 }
 0x7aa   : > { %6863 = vmatprep.subr.bf16.mxu1 %v8115_v61 }
 0x7ad   : > { %6864 = vmatpush3.bf16.msra.mxu1 %v8123_v1 }
 0x7ae   : > { %6865 = vmatprep.subr.bf16.mxu1 %v8129_v59 }
 0x7b0   : > { %3101 = vmatmul.mubr.bf16.gmra.mxu1 %v7835_v38 }
 0x7b1   : > { %6866 = vmatpush3.bf16.msra.mxu1 %v8049_v44  ;;  %3108 = vmatprep.mubr.bf16.mxu1 %v7840_v42 }
 0x7b2   : > { %6867 = vmatprep.subr.bf16.mxu1 %v8143_v7 }
 0x7b5   : > { %6868 = vmatpush3.bf16.msra.mxu1 %v8151_v10 }
 0x7b6   : > { %6869 = vmatprep.subr.bf16.mxu1 %v8157_v55 }
 0x7b8   : > { %3109 = vmatmul.mubr.bf16.gmra.mxu1 %v7838_v49 }
 0x7b9   : > { %6870 = vmatpush3.bf16.msra.mxu1 %v8043_v35  ;;  %3291 = vmatprep.mubr.bf16.mxu1 %v7843_v43 }
 0x7ba   : > { %6871 = vmatprep.subr.bf16.mxu1 %v8167_v14 }
 0x7bd   : > { %6872 = vmatpush3.bf16.msra.mxu1 %v8172_v56 }
 0x7c0   : > { %3292 = vmatmul.mubr.bf16.vlgmr.msra.gmra.mxu1 %v7841_v50 }
 0x7c1   : > { %3299 = vmatprep.mubr.bf16.mxu1 %v7846_v46 }
 0x7c8   : > { %3300 = vmatmul.mubr.bf16.gmra.mxu1 %v7844_v0 }
 0x7c9   : > { %3307 = vmatprep.mubr.bf16.mxu1 %v7849_v48 }
 0x7d0   : > { %3308 = vmatmul.mubr.bf16.gmra.mxu1 %v7847_v29 }
 0x7d1   : > { %3315 = vmatprep.mubr.bf16.mxu1 %v7852_v32 }
 0x7d8   : > { %3316 = vmatmul.mubr.bf16.gmra.mxu1 %v7850_v60 }
 0x820   : > { %v7291_v11 = vpop.f32.mrf.mxu1 }
 0x821   : > { %v2790_v53 = vadd.f32 %v7291_v11, %v8784_v63 }
 0x822   : > { %v2757_v16 = vpop.f32.mrf.mxu1 }
 0x823   : > { %v2788_v28 = vadd.f32 %v2757_v16, %v8786_v8 }
 0x824   : > { %v7292_v17 = vpop.f32.mrf.mxu1 }
 0x825   : > { %v2791_v23 = vadd.f32 %v7292_v17, %v8788_v62 }
 0x826   : > { %v8901_v24 = vpop.f32.mrf.mxu1 }
 0x830   : > { %v7295_v33 = vpop.f32.mrf.mxu1 }
 0x831   : > { %v2794_v2 = vadd.f32 %v7295_v33, %v8792_v3 }
 0x832   : > { %v2773_v34 = vpop.f32.mrf.mxu1 }
 0x833   : > { %v2792_v38 = vadd.f32 %v2773_v34, %v8794_v4 }
 0x834   : > { %v7296_v42 = vpop.f32.mrf.mxu1 }
 0x835   : > { %v2795_v49 = vadd.f32 %v7296_v42, %v8796_v57 }
 0x836   : > { %v8906_v43 = vpop.f32.mrf.mxu1 }
 0x840   : > { %v7301_v63 = vpop.f32.mrf.mxu1 }
 0x841   : > { %v8908_v50 = vadd.f32 %v7301_v63, %v2790_v53 }
 0x842   : > { %v2964_v8 = vpop.f32.mrf.mxu1 }
 0x843   : > { %v8910_v46 = vadd.f32 %v2964_v8, %v2788_v28 }
 0x844   : > { %v7302_v62 = vpop.f32.mrf.mxu1 }
 0x845   : > { %v8912_v0 = vadd.f32 %v7302_v62, %v2791_v23  ;;  %v3342_v62 = vsel %vm991_vm0, %v3328_v21, 0 }
 0x846   : > { %v8914_v48 = vpop.f32.mrf.mxu1 }
 0x850   : > { %v7305_v3 = vpop.f32.mrf.mxu1 }
 0x851   : > { %v8916_v29 = vadd.f32 %v7305_v3, %v2794_v2 }
 0x852   : > { %v2980_v4 = vpop.f32.mrf.mxu1 }
 0x853   : > { %v8918_v32 = vadd.f32 %v2980_v4, %v2792_v38 }
 0x854   : > { %v7306_v57 = vpop.f32.mrf.mxu1 }
 0x855   : > { %v8920_v60 = vadd.f32 %v7306_v57, %v2795_v49 }
 0x856   : > { %v8922_v9 = vpop.f32.mrf.mxu1 }
 0x860   : > { %v6828_v58 = vpop.f32.mrf.mxu1 }
 0x862   : > { %v6829_v11 = vpop.f32.mrf.mxu1 }
 0x863   : > { %v6830_v28 = vadd.f32 %v6829_v11, %v6828_v58 }
 0x864   : > { %v6831_v53 = vpop.f32.mrf.mxu1 }
 0x866   : > { %v6832_v16 = vpop.f32.mrf.mxu1 }
 0x867   : > { %v6833_v17 = vadd.f32 %v6832_v16, %v6831_v53 }
 0x868   : > { %v6834_v23 = vpop.f32.mrf.mxu1 }
 0x869   : > { %v3117_v33 = vpack.c.bf16 %v6833_v17, %v6830_v28 }
 0x86a   : > { %v6835_v34 = vpop.f32.mrf.mxu1 }
 0x86b   : > { %7309 = vmatprep.mubr.msk.bf16.mxu0 %vm978_vm3, %v3117_v33  ;;  %v6836_v38 = vadd.f32 %v6835_v34, %v6834_v23 }
 0x86c   : > { %v6837_v2 = vpop.f32.mrf.mxu1 }
 0x86e   : > { %v6838_v42 = vpop.f32.mrf.mxu1 }
 0x86f   : > { %v6839_v63 = vadd.f32 %v6838_v42, %v6837_v2 }
 0x870   : > { %v6840_v8 = vpop.f32.mrf.mxu1 }
 0x871   : > { %v3118_v49 = vpack.c.bf16 %v6839_v63, %v6836_v38 }
 0x872   : > { %v6841_v3 = vpop.f32.mrf.mxu1 }
 0x873   : > { %7310 = vmatmul.mubr.msk.bf16.vlgmr.msra.gmra.mxu0 %vm978_vm3, %v3118_v49  ;;  %v6842_v58 = vadd.f32 %v6841_v3, %v6840_v8 }
 0x874   : > { %7318 = vmatpush3.bf16.msra.mxu0 %v3342_v62  ;;  %v6843_v4 = vpop.f32.mrf.mxu1 }
 0x875   : > { %6902 = vmatprep.subr.bf16.mxu0 %v8077_v18 }
 0x876   : > { %v6844_v57 = vpop.f32.mrf.mxu1 }
 0x877   : > { %v6845_v11 = vadd.f32 %v6844_v57, %v6843_v4 }
 0x878   : > { %v6846_v53 = vpop.f32.mrf.mxu1 }
 0x879   : > { %v3119_v16 = vpack.c.bf16 %v6845_v11, %v6842_v58 }
 0x87a   : > { %v6847_v28 = vpop.f32.mrf.mxu1 }
 0x87b   : > { %7313 = vmatprep.mubr.msk.bf16.mxu0 %vm978_vm3, %v3119_v16  ;;  %v6848_v33 = vadd.f32 %v6847_v28, %v6846_v53 }
 0x87c   : > { %v6849_v17 = vpop.f32.mrf.mxu1 }
 0x87e   : > { %v6850_v23 = vpop.f32.mrf.mxu1 }
 0x87f   : > { %v6851_v34 = vadd.f32 %v6850_v23, %v6849_v17 }
 0x880   : > { %v6873_v21 = vpop.f32.mrf.mxu1 }
 0x881   : > { %v3120_v2 = vpack.c.bf16 %v6851_v34, %v6848_v33 }
 0x882   : > { %v6874_v42 = vpop.f32.mrf.mxu1 }
 0x883   : > { %7314 = vmatmul.mubr.msk.bf16.gmra.mxu0 %vm978_vm3, %v3120_v2  ;;  %v6875_v49 = vadd.f32 %v6874_v42, %v6873_v21 }
 0x884   : > { %v6876_v38 = vpop.f32.mrf.mxu1 }
 0x886   : > { %v6877_v63 = vpop.f32.mrf.mxu1 }
 0x887   : > { %v6878_v62 = vadd.f32 %v6877_v63, %v6876_v38 }
 0x888   : > { %v6879_v8 = vpop.f32.mrf.mxu1 }
 0x889   : > { %v3324_v3 = vpack.c.bf16 %v6878_v62, %v6875_v49 }
 0x88a   : > { %v6880_v4 = vpop.f32.mrf.mxu1 }
 0x88b   : > { %7319 = vmatprep.mubr.msk.bf16.mxu0 %vm978_vm3, %v3324_v3  ;;  %v6881_v11 = vadd.f32 %v6880_v4, %v6879_v8  ;;  %v7855_v3 = vld [vmem:[%s9512_s5 + $0x344] ss:$8 sps:$4 sm:$0xff]  }
 0x88c   : > { %v6882_v57 = vpop.f32.mrf.mxu1 }
 0x88e   : > { %v6883_v58 = vpop.f32.mrf.mxu1 }
 0x88f   : > { %v6884_v16 = vadd.f32 %v6883_v58, %v6882_v57  ;;  %v7853_v57 = vld [vmem:[%s9512_s5 + $0x340] ss:$8 sps:$4 sm:$0xff]   ;;  %v7858_v58 = vld [vmem:[%s9512_s5 + $0x354] ss:$8 sps:$4 sm:$0xff]  }
 0x890   : > { %v6885_v53 = vpop.f32.mrf.mxu1 }
 0x891   : > { %v3325_v28 = vpack.c.bf16 %v6884_v16, %v6881_v11  ;;  %v7856_v11 = vld [vmem:[%s9512_s5 + $0x350] ss:$8 sps:$4 sm:$0xff]   ;;  %v7861_v16 = vld [vmem:[%s9512_s5 + $0x364] ss:$8 sps:$4 sm:$0xff]  }
 0x892   : > { %v6886_v17 = vpop.f32.mrf.mxu1 }
 0x893   : > { %7320 = vmatmul.mubr.msk.bf16.vlgmr.msra.gmra.mxu0 %vm978_vm3, %v3325_v28  ;;  %v6887_v33 = vadd.f32 %v6886_v17, %v6885_v53  ;;  %v7859_v53 = vld [vmem:[%s9512_s5 + $0x360] ss:$8 sps:$4 sm:$0xff]   ;;  %v7864_v28 = vld [vmem:[%s9512_s5 + $0x374] ss:$8 sps:$4 sm:$0xff]   ;;  %v7862_v17 = vld [vmem:[%s9512_s5 + $0x370] ss:$8 sps:$4 sm:$0xff]  }
 0x894   : > { %6903 = vmatpush3.bf16.msra.mxu0 %v8079_v19  ;;  %v6888_v23 = vpop.f32.mrf.mxu1 }
 0x895   : > { %6904 = vmatprep.subr.bf16.mxu0 %v8083_v25 }
 0x896   : > { %v6889_v34 = vpop.f32.mrf.mxu1 }
 0x897   : > { %v6890_v21 = vadd.f32 %v6889_v34, %v6888_v23  ;;  %v7867_v23 = vld [vmem:[%s9512_s5 + $0x384] ss:$8 sps:$4 sm:$0xff]   ;;  %v7870_v34 = vld [vmem:[%s9512_s5 + $0x394] ss:$8 sps:$4 sm:$0xff]  }
 0x898   : > { %6905 = vmatpush3.bf16.msra.mxu0 %v8093_v31  ;;  %v6891_v2 = vpop.f32.mrf.mxu1 }
 0x899   : > { %v3326_v42 = vpack.c.bf16 %v6890_v21, %v6887_v33  ;;  %6906 = vmatprep.subr.bf16.mxu0 %v8099_v39  ;;  %v7865_v33 = vld [vmem:[%s9512_s5 + $0x380] ss:$8 sps:$4 sm:$0xff]   ;;  %v7868_v21 = vld [vmem:[%s9512_s5 + $0x390] ss:$8 sps:$4 sm:$0xff]  }
 0x89a   : > { %v6892_v38 = vpop.f32.mrf.mxu1 }
 0x89b   : > { %7323 = vmatprep.mubr.msk.bf16.mxu0 %vm978_vm3, %v3326_v42  ;;  %v6893_v49 = vadd.f32 %v6892_v38, %v6891_v2  ;;  %v7873_v2 = vld [vmem:[%s9512_s5 + $0x3a4] ss:$8 sps:$4 sm:$0xff]   ;;  %v7871_v42 = vld [vmem:[%s9512_s5 + $0x3a0] ss:$8 sps:$4 sm:$0xff]   ;;  %v7876_v38 = vld [vmem:[%s9512_s5 + $0x3b4] ss:$8 sps:$4 sm:$0xff]  }
 0x89c   : > { %6907 = vmatpush3.bf16.msra.mxu0 %v8109_v47  ;;  %v6894_v63 = vpop.f32.mrf.mxu1 }
 0x89d   : > { %6908 = vmatprep.subr.bf16.mxu0 %v8115_v61 }
 0x89e   : > { %v6895_v62 = vpop.f32.mrf.mxu1 }
 0x89f   : > { %v6896_v8 = vadd.f32 %v6895_v62, %v6894_v63  ;;  %v7874_v63 = vld [vmem:[%s9512_s5 + $0x3b0] ss:$8 sps:$4 sm:$0xff]  }
 0x8a0   : > { %6909 = vmatpush3.bf16.msra.mxu0 %v8123_v1 }
 0x8a1   : > { %v3327_v4 = vpack.c.bf16 %v6896_v8, %v6893_v49  ;;  %6910 = vmatprep.subr.bf16.mxu0 %v8129_v59  ;;  %v3535_v49 = vld [vmem:[%s9509_s2 + $0x34] sm:$0xf]  ;;  %v3742_v8 = vld [vmem:[%s9509_s2 + $0x38] sm:$0xf] }
 0x8a2   : > { %7658 = vmatprep.subr.msk.bf16.mxu1 %vm991_vm0, %v3535_v49  ;;  %v3549_v62 = vsel %vm991_vm0, %v3535_v49, 0 }
 0x8a3   : > { %7324 = vmatmul.mubr.msk.bf16.gmra.mxu0 %vm978_vm3, %v3327_v4  ;;  %7328 = vmatpush3.bf16.msra.mxu1 %v3549_v62 }
 0x8a4   : > { %6911 = vmatpush3.bf16.msra.mxu0 %v8049_v44  ;;  %3498 = vmatprep.mubr.bf16.mxu0 %v7855_v3 }
 0x8a5   : > { %6912 = vmatprep.subr.bf16.mxu0 %v8143_v7  ;;  %7659 = vmatprep.subr.msk.bf16.mxu1 %vm991_vm0, %v3742_v8 }
 0x8a8   : > { %6913 = vmatpush3.bf16.msra.mxu0 %v8151_v10 }
 0x8a9   : > { %6914 = vmatprep.subr.bf16.mxu0 %v8157_v55 }
 0x8ac   : > { %6915 = vmatpush3.bf16.msra.mxu0 %v8043_v35 }
 0x8ad   : > { %6916 = vmatprep.subr.bf16.mxu0 %v8167_v14 }
 0x8b0   : > { %6917 = vmatpush3.bf16.msra.mxu0 %v8172_v56 }
 0x8b1   : > { %6947 = vmatprep.subr.bf16.mxu0 %v8077_v18 }
 0x8b3   : > { %3499 = vmatmul.mubr.bf16.vlgmr.msra.gmra.mxu0 %v7853_v57 }
 0x8b4   : > { %6948 = vmatpush3.bf16.msra.mxu0 %v8079_v19  ;;  %3506 = vmatprep.mubr.bf16.mxu0 %v7858_v58 }
 0x8b5   : > { %6949 = vmatprep.subr.bf16.mxu0 %v8083_v25 }
 0x8b8   : > { %6950 = vmatpush3.bf16.msra.mxu0 %v8093_v31 }
 0x8b9   : > { %6951 = vmatprep.subr.bf16.mxu0 %v8099_v39 }
 0x8bb   : > { %3507 = vmatmul.mubr.bf16.gmra.mxu0 %v7856_v11 }
 0x8bc   : > { %6952 = vmatpush3.bf16.msra.mxu0 %v8109_v47  ;;  %3514 = vmatprep.mubr.bf16.mxu0 %v7861_v16 }
 0x8bd   : > { %6953 = vmatprep.subr.bf16.mxu0 %v8115_v61 }
 0x8c0   : > { %6954 = vmatpush3.bf16.msra.mxu0 %v8123_v1 }
 0x8c1   : > { %6955 = vmatprep.subr.bf16.mxu0 %v8129_v59 }
 0x8c3   : > { %3515 = vmatmul.mubr.bf16.gmra.mxu0 %v7859_v53 }
 0x8c4   : > { %6956 = vmatpush3.bf16.msra.mxu0 %v8049_v44  ;;  %3522 = vmatprep.mubr.bf16.mxu0 %v7864_v28 }
 0x8c5   : > { %6957 = vmatprep.subr.bf16.mxu0 %v8143_v7 }
 0x8c8   : > { %6958 = vmatpush3.bf16.msra.mxu0 %v8151_v10 }
 0x8c9   : > { %6959 = vmatprep.subr.bf16.mxu0 %v8157_v55 }
 0x8cb   : > { %3523 = vmatmul.mubr.bf16.gmra.mxu0 %v7862_v17 }
 0x8cc   : > { %6960 = vmatpush3.bf16.msra.mxu0 %v8043_v35  ;;  %3705 = vmatprep.mubr.bf16.mxu0 %v7867_v23 }
 0x8cd   : > { %6961 = vmatprep.subr.bf16.mxu0 %v8167_v14 }
 0x8d0   : > { %6962 = vmatpush3.bf16.msra.mxu0 %v8172_v56 }
 0x8d3   : > { %3706 = vmatmul.mubr.bf16.vlgmr.msra.gmra.mxu0 %v7865_v33 }
 0x8d4   : > { %3713 = vmatprep.mubr.bf16.mxu0 %v7870_v34 }
 0x8db   : > { %3714 = vmatmul.mubr.bf16.gmra.mxu0 %v7868_v21 }
 0x8dc   : > { %3721 = vmatprep.mubr.bf16.mxu0 %v7873_v2 }
 0x8e3   : > { %3722 = vmatmul.mubr.bf16.gmra.mxu0 %v7871_v42 }
 0x8e4   : > { %3729 = vmatprep.mubr.bf16.mxu0 %v7876_v38 }
 0x8eb   : > { %3730 = vmatmul.mubr.bf16.gmra.mxu0 %v7874_v63 }
 0x933   : > { %v7311_v3 = vpop.f32.mrf.mxu0 }
 0x934   : > { %v3204_v4 = vadd.f32 %v7311_v3, %v8908_v50 }
 0x935   : > { %v3171_v57 = vpop.f32.mrf.mxu0 }
 0x936   : > { %v3202_v58 = vadd.f32 %v3171_v57, %v8910_v46 }
 0x937   : > { %v7312_v11 = vpop.f32.mrf.mxu0 }
 0x938   : > { %v3205_v16 = vadd.f32 %v7312_v11, %v8912_v0 }
 0x939   : > { %v9025_v53 = vpop.f32.mrf.mxu0 }
 0x943   : > { %v7315_v28 = vpop.f32.mrf.mxu0 }
 0x944   : > { %v3208_v17 = vadd.f32 %v7315_v28, %v8916_v29 }
 0x945   : > { %v3187_v23 = vpop.f32.mrf.mxu0 }
 0x946   : > { %v3206_v33 = vadd.f32 %v3187_v23, %v8918_v32 }
 0x947   : > { %v7316_v34 = vpop.f32.mrf.mxu0 }
 0x948   : > { %v3209_v21 = vadd.f32 %v7316_v34, %v8920_v60 }
 0x949   : > { %v9030_v2 = vpop.f32.mrf.mxu0 }
 0x953   : > { %v7321_v50 = vpop.f32.mrf.mxu0 }
 0x954   : > { %v9032_v42 = vadd.f32 %v7321_v50, %v3204_v4 }
 0x955   : > { %v3378_v46 = vpop.f32.mrf.mxu0 }
 0x956   : > { %v9034_v38 = vadd.f32 %v3378_v46, %v3202_v58 }
 0x957   : > { %v7322_v0 = vpop.f32.mrf.mxu0 }
 0x958   : > { %v9036_v63 = vadd.f32 %v7322_v0, %v3205_v16 }
 0x959   : > { %v9038_v49 = vpop.f32.mrf.mxu0 }
 0x963   : > { %v7325_v29 = vpop.f32.mrf.mxu0 }
 0x964   : > { %v9040_v62 = vadd.f32 %v7325_v29, %v3208_v17 }
 0x965   : > { %v3394_v32 = vpop.f32.mrf.mxu0 }
 0x966   : > { %v9042_v3 = vadd.f32 %v3394_v32, %v3206_v33 }
 0x967   : > { %v7326_v60 = vpop.f32.mrf.mxu0 }
 0x968   : > { %9515 = vst [vmem:[#allocation2_spill] sm:$0xff] %v9042_v3  ;;  %v9044_v57 = vadd.f32 %v7326_v60, %v3209_v21  ;;  %v3756_v60 = vsel %vm991_vm0, %v3742_v8, 0 }
 0x969   : > { %v9046_v11 = vpop.f32.mrf.mxu0 }
 0x96a   : > { %9516 = vst [vmem:[#allocation3_spill] sm:$0xff] %v9044_v57  ;;  %9517 = vst [vmem:[#allocation4_spill] sm:$0xff] %v9046_v11 }
 0x973   : > { %v6918_v4 = vpop.f32.mrf.mxu0 }
 0x975   : > { %v6919_v28 = vpop.f32.mrf.mxu0 }
 0x976   : > { %v6920_v34 = vadd.f32 %v6919_v28, %v6918_v4 }
 0x977   : > { %v6921_v58 = vpop.f32.mrf.mxu0 }
 0x979   : > { %v6922_v23 = vpop.f32.mrf.mxu0 }
 0x97a   : > { %v6923_v16 = vadd.f32 %v6922_v23, %v6921_v58 }
 0x97b   : > { %v6924_v50 = vpop.f32.mrf.mxu0 }
 0x97c   : > { %v3531_v46 = vpack.c.bf16 %v6923_v16, %v6920_v34 }
 0x97d   : > { %v6925_v0 = vpop.f32.mrf.mxu0 }
 0x97e   : > { %7329 = vmatprep.mubr.msk.bf16.mxu1 %vm978_vm3, %v3531_v46  ;;  %v6926_v33 = vadd.f32 %v6925_v0, %v6924_v50 }
 0x97f   : > { %v6927_v17 = vpop.f32.mrf.mxu0 }
 0x981   : > { %v6928_v29 = vpop.f32.mrf.mxu0 }
 0x982   : > { %v6929_v32 = vadd.f32 %v6928_v29, %v6927_v17 }
 0x983   : > { %v6930_v3 = vpop.f32.mrf.mxu0 }
 0x984   : > { %v3532_v21 = vpack.c.bf16 %v6929_v32, %v6926_v33 }
 0x985   : > { %v6931_v57 = vpop.f32.mrf.mxu0 }
 0x986   : > { %7330 = vmatmul.mubr.msk.bf16.vlgmr.msra.gmra.mxu1 %vm978_vm3, %v3532_v21  ;;  %v6932_v28 = vadd.f32 %v6931_v57, %v6930_v3 }
 0x987   : > { %7338 = vmatpush3.bf16.msra.mxu1 %v3756_v60  ;;  %v6933_v11 = vpop.f32.mrf.mxu0 }
 0x988   : > { %6992 = vmatprep.subr.bf16.mxu1 %v8077_v18 }
 0x989   : > { %v6934_v4 = vpop.f32.mrf.mxu0 }
 0x98a   : > { %v6935_v58 = vadd.f32 %v6934_v4, %v6933_v11 }
 0x98b   : > { %v6936_v23 = vpop.f32.mrf.mxu0 }
 0x98c   : > { %v3533_v34 = vpack.c.bf16 %v6935_v58, %v6932_v28 }
 0x98d   : > { %v6937_v16 = vpop.f32.mrf.mxu0 }
 0x98e   : > { %7333 = vmatprep.mubr.msk.bf16.mxu1 %vm978_vm3, %v3533_v34  ;;  %v6938_v0 = vadd.f32 %v6937_v16, %v6936_v23 }
 0x98f   : > { %v6939_v50 = vpop.f32.mrf.mxu0 }
 0x991   : > { %v6940_v46 = vpop.f32.mrf.mxu0 }
 0x992   : > { %v6941_v17 = vadd.f32 %v6940_v46, %v6939_v50 }
 0x993   : > { %v6963_v8 = vpop.f32.mrf.mxu0 }
 0x994   : > { %v3534_v29 = vpack.c.bf16 %v6941_v17, %v6938_v0 }
 0x995   : > { %v6964_v33 = vpop.f32.mrf.mxu0 }
 0x996   : > { %7334 = vmatmul.mubr.msk.bf16.gmra.mxu1 %vm978_vm3, %v3534_v29  ;;  %v6965_v18 = vadd.f32 %v6964_v33, %v6963_v8 }
 0x997   : > { %v6966_v32 = vpop.f32.mrf.mxu0 }
 0x999   : > { %v6967_v21 = vpop.f32.mrf.mxu0 }
 0x99a   : > { %v6968_v60 = vadd.f32 %v6967_v21, %v6966_v32 }
 0x99b   : > { %v6969_v3 = vpop.f32.mrf.mxu0 }
 0x99c   : > { %v3738_v57 = vpack.c.bf16 %v6968_v60, %v6965_v18 }
 0x99d   : > { %v6970_v11 = vpop.f32.mrf.mxu0 }
 0x99e   : > { %7339 = vmatprep.mubr.msk.bf16.mxu1 %vm978_vm3, %v3738_v57  ;;  %v6971_v58 = vadd.f32 %v6970_v11, %v6969_v3 }
 0x99f   : > { %v6972_v4 = vpop.f32.mrf.mxu0 }
 0x9a1   : > { %v6973_v28 = vpop.f32.mrf.mxu0 }
 0x9a2   : > { %v6974_v34 = vadd.f32 %v6973_v28, %v6972_v4 }
 0x9a3   : > { %v6975_v23 = vpop.f32.mrf.mxu0 }
 0x9a4   : > { %v3739_v16 = vpack.c.bf16 %v6974_v34, %v6971_v58  ;;  %v1129_v58 = vadd.f32 %v8404_v36, %v8310_v22 }
 0x9a5   : > { %v6976_v50 = vpop.f32.mrf.mxu0 }
 0x9a6   : > { %7340 = vmatmul.mubr.msk.bf16.vlgmr.msra.gmra.mxu1 %vm978_vm3, %v3739_v16  ;;  %v6977_v0 = vadd.f32 %v6976_v50, %v6975_v23 }
 0x9a7   : > { %6993 = vmatpush3.bf16.msra.mxu1 %v8079_v19  ;;  %v6978_v46 = vpop.f32.mrf.mxu0 }
 0x9a8   : > { %6994 = vmatprep.subr.bf16.mxu1 %v8083_v25  ;;  %v7879_v25 = vld [vmem:[%s9512_s5 + $0x3c4] ss:$8 sps:$4 sm:$0xff]  }
 0x9a9   : > { %v6979_v17 = vpop.f32.mrf.mxu0 }
 0x9aa   : > { %v6980_v8 = vadd.f32 %v6979_v17, %v6978_v46  ;;  %v9518_v46 = vld [vmem:[#allocation2_spill] sm:$0xff]  ;;  %v9519_v17 = vld [vmem:[#allocation4_spill] sm:$0xff] }
 0x9ab   : > { %6995 = vmatpush3.bf16.msra.mxu1 %v8093_v31  ;;  %v6981_v29 = vpop.f32.mrf.mxu0 }
 0x9ac   : > { %v3740_v33 = vpack.c.bf16 %v6980_v8, %v6977_v0  ;;  %6996 = vmatprep.subr.bf16.mxu1 %v8099_v39  ;;  %v7877_v39 = vld [vmem:[%s9512_s5 + $0x3c0] ss:$8 sps:$4 sm:$0xff]  }
 0x9ad   : > { %v6982_v32 = vpop.f32.mrf.mxu0 }
 0x9ae   : > { %7343 = vmatprep.mubr.msk.bf16.mxu1 %vm978_vm3, %v3740_v33  ;;  %v6983_v18 = vadd.f32 %v6982_v32, %v6981_v29 }
 0x9af   : > { %6997 = vmatpush3.bf16.msra.mxu1 %v8109_v47  ;;  %v6984_v21 = vpop.f32.mrf.mxu0  ;;  %v7880_v47 = vld [vmem:[%s9512_s5 + $0x3d0] ss:$8 sps:$4 sm:$0xff]  }
 0x9b0   : > { %6998 = vmatprep.subr.bf16.mxu1 %v8115_v61  ;;  %v7883_v61 = vld [vmem:[%s9512_s5 + $0x3e0] ss:$8 sps:$4 sm:$0xff]  }
 0x9b1   : > { %v6985_v19 = vpop.f32.mrf.mxu0 }
 0x9b2   : > { %v6986_v60 = vadd.f32 %v6985_v19, %v6984_v21 }
 0x9b3   : > { %6999 = vmatpush3.bf16.msra.mxu1 %v8123_v1  ;;  %v7888_v1 = vld [vmem:[%s9512_s5 + $0x3f4] ss:$8 sps:$4 sm:$0xff]  }
 0x9b4   : > { %v3741_v31 = vpack.c.bf16 %v6986_v60, %v6983_v18  ;;  %7000 = vmatprep.subr.bf16.mxu1 %v8129_v59  ;;  %v7886_v59 = vld [vmem:[%s9512_s5 + $0x3f0] ss:$8 sps:$4 sm:$0xff]  }
 0x9b6   : > { %7344 = vmatmul.mubr.msk.bf16.gmra.mxu1 %vm978_vm3, %v3741_v31 }
 0x9b7   : > { %7001 = vmatpush3.bf16.msra.mxu1 %v8049_v44  ;;  %3912 = vmatprep.mubr.bf16.mxu1 %v7879_v25  ;;  %v7882_v44 = vld [vmem:[%s9512_s5 + $0x3d4] ss:$8 sps:$4 sm:$0xff]  }
 0x9b8   : > { %7002 = vmatprep.subr.bf16.mxu1 %v8143_v7  ;;  %v3949_v7 = vld [vmem:[%s9509_s2 + $0x3c] sm:$0xf] }
 0x9b9   : > { %7660 = vmatprep.subr.msk.bf16.mxu0 %vm991_vm0, %v3949_v7 }
 0x9bb   : > { %7003 = vmatpush3.bf16.msra.mxu1 %v8151_v10  ;;  %v3963_v10 = vsel %vm991_vm0, %v3949_v7, 0  ;;  %vm7934_vm0 = vmmov 0  }
 0x9bc   : > { %7004 = vmatprep.subr.bf16.mxu1 %v8157_v55  ;;  %7348 = vmatpush3.bf16.msra.mxu0 %v3963_v10  ;;  %v1113_v55 = vadd.f32 %v8300_v12, %v8302_v13  ;;  %v1344_v13 = vadd.f32 %v8426_v41, %v1129_v58 }
 0x9bf   : > { %7005 = vmatpush3.bf16.msra.mxu1 %v8043_v35  ;;  %v7885_v35 = vld [vmem:[%s9512_s5 + $0x3e4] ss:$8 sps:$4 sm:$0xff]  }
 0x9c0   : > { %7006 = vmatprep.subr.bf16.mxu1 %v8167_v14  ;;  %v1340_v14 = vadd.f32 %v8415_v51, %v1113_v55 }
 0x9c3   : > { %7007 = vmatpush3.bf16.msra.mxu1 %v8172_v56  ;;  %v1547_v56 = vadd.f32 %v8529_v54, %v1340_v14 }
 0x9c5   : > { %v1754_v3 = vadd.f32 %v8542_v20, %v1547_v56 }
 0x9c6   : > { %3913 = vmatmul.mubr.bf16.vlgmr.msra.gmra.mxu1 %v7877_v39 }
 0x9c7   : > { %3920 = vmatprep.mubr.bf16.mxu1 %v7882_v44  ;;  %v1961_v57 = vadd.f32 %v8653_v6, %v1754_v3  ;;  %v1551_v6 = vadd.f32 %v8534_v15, %v1344_v13 }
 0x9c9   : > { %v2168_v11 = vadd.f32 %v8666_v45, %v1961_v57  ;;  %v1758_v23 = vadd.f32 %v8550_v27, %v1551_v6 }
 0x9cb   : > { %v2375_v4 = vadd.f32 %v8777_v26, %v2168_v11  ;;  %v1965_v41 = vadd.f32 %v8658_v40, %v1758_v23 }
 0x9cd   : > { %v2582_v28 = vadd.f32 %v8790_v37, %v2375_v4 }
 0x9ce   : > { %3921 = vmatmul.mubr.bf16.gmra.mxu1 %v7880_v47 }
 0x9cf   : > { %3928 = vmatprep.mubr.bf16.mxu1 %v7885_v35  ;;  %v2789_v34 = vadd.f32 %v8901_v24, %v2582_v28 }
 0x9d1   : > { %v2996_v51 = vadd.f32 %v8914_v48, %v2789_v34 }
 0x9d3   : > { %v3203_v45 = vadd.f32 %v9025_v53, %v2996_v51 }
 0x9d5   : > { %v3410_v22 = vadd.f32 %v9038_v49, %v3203_v45 }
 0x9d6   : > { %3929 = vmatmul.mubr.bf16.gmra.mxu1 %v7883_v61 }
 0x9d7   : > { %3936 = vmatprep.mubr.bf16.mxu1 %v7888_v1 }
 0x9de   : > { %3937 = vmatmul.mubr.bf16.gmra.mxu1 %v7886_v59 }
 0xa46   : > { %v7331_v12 = vpop.f32.mrf.mxu1 }
 0xa47   : > { %v3618_v54 = vadd.f32 %v7331_v12, %v9032_v42  ;;  %v2172_v42 = vadd.f32 %v8674_v30, %v1965_v41  ;;  %v9520_v30 = vld [vmem:[#allocation3_spill] sm:$0xff]  ;;  %v7933_v41 = vmov 0.0  }
 0xa48   : > { %v3585_v20 = vpop.f32.mrf.mxu1  ;;  %7357 = vmatprep.subr.bf16.mxu0 %v7933_v41  ;;  %7369 = vmatprep.subr.bf16.mxu1 %v7933_v41 }
 0xa49   : > { %v3616_v26 = vadd.f32 %v3585_v20, %v9034_v38  ;;  %v2379_v16 = vadd.f32 %v8782_v52, %v2172_v42  ;;  %7377 = vmatprep.mubr.msk.bf16.mxu1 %vm7934_vm0, %v7933_v41 }
 0xa4a   : > { %v7332_v37 = vpop.f32.mrf.mxu1 }
 0xa4b   : > { %v3619_v36 = vadd.f32 %v7332_v37, %v9036_v63  ;;  %v2586_v15 = vadd.f32 %v8798_v5, %v2379_v16 }
 0xa4c   : > { %v3588_v24 = vpop.f32.mrf.mxu1 }
 0xa4d   : > { %v3617_v48 = vadd.f32 %v3588_v24, %v3410_v22  ;;  %v2793_v53 = vadd.f32 %v8906_v43, %v2586_v15 }
 0xa4f   : > { %v3000_v50 = vadd.f32 %v8922_v9, %v2793_v53 }
 0xa51   : > { %v3207_v63 = vadd.f32 %v9030_v2, %v3000_v50 }
 0xa53   : > { %v3414_v8 = vadd.f32 %v9519_v17, %v3207_v63 }
 0xa56   : > { %v7335_v38 = vpop.f32.mrf.mxu1 }
 0xa57   : > { %v3622_v27 = vadd.f32 %v7335_v38, %v9040_v62 }
 0xa58   : > { %v3601_v49 = vpop.f32.mrf.mxu1 }
 0xa59   : > { %v3620_v0 = vadd.f32 %v3601_v49, %v9518_v46 }
 0xa5a   : > { %v7336_v40 = vpop.f32.mrf.mxu1 }
 0xa5b   : > { %v3623_v29 = vadd.f32 %v7336_v40, %v9520_v30 }
 0xa5c   : > { %v3604_v52 = vpop.f32.mrf.mxu1 }
 0xa5d   : > { %v3621_v33 = vadd.f32 %v3604_v52, %v3414_v8 }
 0xa66   : > { %v7341_v5 = vpop.f32.mrf.mxu1 }
 0xa67   : > { %v3825_v32 = vadd.f32 %v7341_v5, %v3618_v54 }
 0xa68   : > { %v3792_v43 = vpop.f32.mrf.mxu1 }
 0xa69   : > { %v3823_v21 = vadd.f32 %v3792_v43, %v3616_v26 }
 0xa6a   : > { %v7342_v18 = vpop.f32.mrf.mxu1 }
 0xa6b   : > { %v3826_v9 = vadd.f32 %v7342_v18, %v3619_v36 }
 0xa6c   : > { %v3795_v19 = vpop.f32.mrf.mxu1 }
 0xa6d   : > { %v3824_v62 = vadd.f32 %v3795_v19, %v3617_v48 }
 0xa76   : > { %v7345_v60 = vpop.f32.mrf.mxu1 }
 0xa77   : > { %v9134_v25 = vadd.f32 %v7345_v60, %v3622_v27 }
 0xa78   : > { %v3808_v2 = vpop.f32.mrf.mxu1 }
 0xa79   : > { %v9136_v31 = vadd.f32 %v3808_v2, %v3620_v0 }
 0xa7a   : > { %v7346_v39 = vpop.f32.mrf.mxu1 }
 0xa7b   : > { %v9138_v44 = vadd.f32 %v7346_v39, %v3623_v29 }
 0xa7c   : > { %v3811_v47 = vpop.f32.mrf.mxu1 }
 0xa7d   : > { %v9140_v35 = vadd.f32 %v3811_v47, %v3621_v33 }
 0xa86   : > { %v7008_v61 = vpop.f32.mrf.mxu1 }
 0xa88   : > { %v7009_v1 = vpop.f32.mrf.mxu1 }
 0xa89   : > { %v7010_v10 = vadd.f32 %v7009_v1, %v7008_v61 }
 0xa8a   : > { %v7011_v59 = vpop.f32.mrf.mxu1 }
 0xa8c   : > { %v7012_v7 = vpop.f32.mrf.mxu1 }
 0xa8d   : > { %v7013_v55 = vadd.f32 %v7012_v7, %v7011_v59  ;;  %v7891_v7 = vld [vmem:[%s9510_s3 + $0x8] sm:$0xff]  }
 0xa8e   : > { %v7014_v14 = vpop.f32.mrf.mxu1 }
 0xa8f   : > { %v3945_v56 = vpack.c.bf16 %v7013_v55, %v7010_v10  ;;  %v7892_v10 = vld [vmem:[%s9510_s3] sm:$0xff]  }
 0xa90   : > { %v7015_v3 = vpop.f32.mrf.mxu1 }
 0xa91   : > { %7349 = vmatprep.mubr.msk.bf16.mxu0 %vm978_vm3, %v3945_v56  ;;  %v7016_v4 = vadd.f32 %v7015_v3, %v7014_v14 }
 0xa92   : > { %v7017_v57 = vpop.f32.mrf.mxu1 }
 0xa94   : > { %v7018_v11 = vpop.f32.mrf.mxu1 }
 0xa95   : > { %v7019_v28 = vadd.f32 %v7018_v11, %v7017_v57 }
 0xa96   : > { %v7020_v58 = vpop.f32.mrf.mxu1 }
 0xa97   : > { %v3946_v34 = vpack.c.bf16 %v7019_v28, %v7016_v4 }
 0xa98   : > { %v7021_v12 = vpop.f32.mrf.mxu1 }
 0xa99   : > { %7350 = vmatmul.mubr.msk.bf16.vlgmr.msra.gmra.mxu0 %vm978_vm3, %v3946_v34  ;;  %v7022_v54 = vadd.f32 %v7021_v12, %v7020_v58  ;;  %v7893_v12 = vld [vmem:[%s9513_s6 + $0x10] sm:$0xff]  }
 0xa9a   : > { %v7023_v13 = vpop.f32.mrf.mxu1 }
 0xa9c   : > { %v7024_v51 = vpop.f32.mrf.mxu1 }
 0xa9d   : > { %v7025_v20 = vadd.f32 %v7024_v51, %v7023_v13  ;;  %v7894_v13 = vld [vmem:[%s9510_s3 + $0x10] sm:$0xff]  }
 0xa9e   : > { %v7026_v6 = vpop.f32.mrf.mxu1 }
 0xa9f   : > { %v3947_v45 = vpack.c.bf16 %v7025_v20, %v7022_v54 }
 0xaa0   : > { %v7027_v26 = vpop.f32.mrf.mxu1 }
 0xaa1   : > { %7353 = vmatprep.mubr.msk.bf16.mxu0 %vm978_vm3, %v3947_v45  ;;  %v7028_v22 = vadd.f32 %v7027_v26, %v7026_v6 }
 0xaa2   : > { %v7029_v37 = vpop.f32.mrf.mxu1 }
 0xaa4   : > { %v7030_v23 = vpop.f32.mrf.mxu1 }
 0xaa5   : > { %v7031_v36 = vadd.f32 %v7030_v23, %v7029_v37 }
 0xaa7   : > { %v3948_v24 = vpack.c.bf16 %v7031_v36, %v7028_v22 }
 0xaa9   : > { %7354 = vmatmul.mubr.msk.bf16.gmra.mxu0 %vm978_vm3, %v3948_v24 }
 0xaaa   : > { %7365 = vmatprep.mubr.msk.bf16.mxu0 %vm7934_vm0, %v7933_v41 }
 0xb59   : > { %v7351_v48 = vpop.f32.mrf.mxu0 }
 0xb5a   : > { %v4032_v42 = vadd.f32 %v7351_v48, %v3825_v32 }
 0xb5b   : > { %v3999_v16 = vpop.f32.mrf.mxu0 }
 0xb5c   : > { %v4030_v15 = vadd.f32 %v3999_v16, %v3823_v21  ;;  %v4048_v38 = vmul.f32 0.2, %v4032_v42  ;;  %vm4040_vm4 = vcmp.ge.f32.partialorder %v4032_v42, 0.0 }
 0xb5d   : > { %v7352_v53 = vpop.f32.mrf.mxu0 }
 0xb5e   : > { %v4033_v50 = vadd.f32 %v7352_v53, %v3826_v9  ;;  %v4046_v49 = vmul.f32 0.2, %v4030_v15  ;;  %vm4038_vm6 = vcmp.ge.f32.partialorder %v4030_v15, 0.0  ;;  %v4056_v0 = vsel %vm4040_vm4, %v4032_v42, %v4048_v38  ;;  %v7895_v53 = vld [vmem:[%s9513_s6 + $0x18] sm:$0xff]  }
 0xb5f   : > { %v4002_v27 = vpop.f32.mrf.mxu0  ;;  %v7896_v38 = vld [vmem:[%s9510_s3 + $0x18] sm:$0xff]  }
 0xb60   : > { %vm4041_vm5 = vcmp.ge.f32.partialorder %v4033_v50, 0.0  ;;  %v4049_v63 = vmul.f32 0.2, %v4033_v50  ;;  %v4031_v46 = vadd.f32 %v4002_v27, %v3824_v62  ;;  %v4054_v30 = vsel %vm4038_vm6, %v4030_v15, %v4046_v49 }
 0xb62   : > { %v4057_v40 = vsel %vm4041_vm5, %v4033_v50, %v4049_v63  ;;  %vm4039_vm7 = vcmp.ge.f32.partialorder %v4031_v46, 0.0  ;;  %v4047_v17 = vmul.f32 0.2, %v4031_v46 }
 0xb63   : > { %v9152_v8 = vpack.c.bf16 %v4057_v40, %v4056_v0 }
 0xb64   : > { %v4055_v29 = vsel %vm4039_vm7, %v4031_v46, %v4047_v17 }
 0xb65   : > { %v9154_v52 = vpack.c.bf16 %v4055_v29, %v4054_v30 }
 0xb69   : > { %v7355_v33 = vpop.f32.mrf.mxu0 }
 0xb6a   : > { %v4036_v5 = vadd.f32 %v7355_v33, %v9134_v25 }
 0xb6b   : > { %v4015_v32 = vpop.f32.mrf.mxu0 }
 0xb6c   : > { %v4034_v43 = vadd.f32 %v4015_v32, %v9136_v31  ;;  %v4052_v18 = vmul.f32 0.2, %v4036_v5  ;;  %vm4044_vm8 = vcmp.ge.f32.partialorder %v4036_v5, 0.0  ;;  %v7898_v32 = vld [vmem:[%s9510_s3 + $0x20] sm:$0xff]  }
 0xb6d   : > { %v7356_v21 = vpop.f32.mrf.mxu0 }
 0xb6e   : > { %v4037_v9 = vadd.f32 %v7356_v21, %v9138_v44  ;;  %v4050_v62 = vmul.f32 0.2, %v4034_v43  ;;  %vm4042_vm10 = vcmp.ge.f32.partialorder %v4034_v43, 0.0  ;;  %v4060_v39 = vsel %vm4044_vm8, %v4036_v5, %v4052_v18  ;;  %v7889_v44 = vld [vmem:[%s9513_s6 + $0x8] sm:$0xff]   ;;  %v7897_v5 = vld [vmem:[%s9513_s6 + $0x20] sm:$0xff]  }
 0xb6f   : > { %v4018_v19 = vpop.f32.mrf.mxu0 }
 0xb70   : > { %vm4045_vm9 = vcmp.ge.f32.partialorder %v4037_v9, 0.0  ;;  %v4053_v60 = vmul.f32 0.2, %v4037_v9  ;;  %v4035_v2 = vadd.f32 %v4018_v19, %v9140_v35  ;;  %v4058_v1 = vsel %vm4042_vm10, %v4034_v43, %v4050_v62  ;;  %v7890_v35 = vld [vmem:[%s9513_s6] sm:$0xff]  }
 0xb72   : > { %v4061_v47 = vsel %vm4045_vm9, %v4037_v9, %v4053_v60  ;;  %vm4043_vm11 = vcmp.ge.f32.partialorder %v4035_v2, 0.0  ;;  %v4051_v61 = vmul.f32 0.2, %v4035_v2 }
 0xb73   : > { %v9160_v25 = vpack.c.bf16 %v4061_v47, %v4060_v39 }
 0xb74   : > { %v4059_v31 = vsel %vm4043_vm11, %v4035_v2, %v4051_v61 }
 0xb75   : > { %v9162_v59 = vpack.c.bf16 %v4059_v31, %v4058_v1  ;;  %7358 = vmatpush3.bf16.msra.mxu0 %v9160_v25  ;;  %7370 = vmatpush3.bf16.msra.mxu1 %v9160_v25  ;;  %v7899_v1 = vld [vmem:[%s9513_s6 + $0x28] sm:$0xff]  }
 0xb76   : > { %7359 = vmatprep.subr.bf16.mxu0 %v7933_v41  ;;  %7371 = vmatprep.subr.bf16.mxu1 %v7933_v41  ;;  %v7900_v31 = vld [vmem:[%s9510_s3 + $0x28] sm:$0xff]  }
 0xb79   : > { %7360 = vmatpush3.bf16.msra.mxu0 %v9162_v59  ;;  %7372 = vmatpush3.bf16.msra.mxu1 %v9162_v59 }
 0xb7a   : > { %7361 = vmatprep.subr.bf16.mxu0 %v7933_v41  ;;  %7373 = vmatprep.subr.bf16.mxu1 %v7933_v41 }
 0xb7d   : > { %7362 = vmatpush3.bf16.msra.mxu0 %v9152_v8  ;;  %7374 = vmatpush3.bf16.msra.mxu1 %v9152_v8 }
 0xb7e   : > { %7363 = vmatprep.subr.bf16.mxu0 %v7933_v41  ;;  %7375 = vmatprep.subr.bf16.mxu1 %v7933_v41 }
 0xb81   : > { %7364 = vmatpush3.bf16.msra.mxu0 %v9154_v52  ;;  %7376 = vmatpush3.bf16.msra.mxu1 %v9154_v52 }
 0xb82   : > { %7381 = vmatprep.subr.bf16.mxu0 %v7933_v41  ;;  %7387 = vmatprep.subr.bf16.mxu1 %v7933_v41 }
 0xb84   : > { %7378 = vmatmul.mubr.msk.bf16.vlgmr.msra.gmra.mxu1 %vm4073_vm12, %v7889_v44  ;;  %7366 = vmatmul.mubr.msk.bf16.vlgmr.msra.gmra.mxu0 %vm4073_vm12, %v7890_v35 }
 0xb85   : > { %7383 = vmatprep.mubr.msk.bf16.mxu0 %vm7934_vm0, %v7933_v41  ;;  %7389 = vmatprep.mubr.msk.bf16.mxu1 %vm7934_vm0, %v7933_v41 }
 0xb86   : > { %7382 = vmatpush3.bf16.msra.mxu0 %v7891_v7  ;;  %7388 = vmatpush3.bf16.msra.mxu1 %v7892_v10 }
 0xb87   : > { %7393 = vmatprep.subr.bf16.mxu0 %v7933_v41  ;;  %7405 = vmatprep.subr.bf16.mxu1 %v7933_v41 }
 0xc44   : > { %v4166_v55 = vpop.f32.mrf.mxu1  ;;  %v4111_v14 = vpop.f32.mrf.mxu0 }
 0xc46   : > { %v7379_v56 = vpop.f32.mrf.mxu1  ;;  %v7367_v3 = vpop.f32.mrf.mxu0 }
 0xc48   : > { %v4169_v57 = vpop.f32.mrf.mxu1  ;;  %v4114_v11 = vpop.f32.mrf.mxu0 }
 0xc49   : > { %v4173_v4 = vpack.c.bf16 %v4169_v57, %v4166_v55  ;;  %v4118_v28 = vpack.c.bf16 %v4114_v11, %v4111_v14 }
 0xc4a   : > { %v7380_v58 = vpop.f32.mrf.mxu1  ;;  %v7368_v34 = vpop.f32.mrf.mxu0 }
 0xc4b   : > { %7384 = vmatmul.mubr.msk.bf16.vlgmr.msra.gmra.mxu0 %vm4182_vm13, %v4173_v4  ;;  %7390 = vmatmul.mubr.msk.bf16.vlgmr.msra.gmra.mxu1 %vm4182_vm13, %v4118_v28  ;;  %v7901_v28 = vld [vmem:[%s9513_s6 + $0x30] sm:$0xff]  }
 0xc4c   : > { %7394 = vmatpush3.bf16.msra.mxu0 %v9160_v25  ;;  %7401 = vmatprep.mubr.msk.bf16.mxu0 %vm7934_vm0, %v7933_v41  ;;  %v7902_v58 = vld [vmem:[%s9510_s3 + $0x30] sm:$0xff]  }
 0xc4d   : > { %7395 = vmatprep.subr.bf16.mxu0 %v7933_v41  ;;  %7407 = vmatprep.mubr.msk.bf16.mxu1 %vm7934_vm0, %v7933_v41 }
 0xc4e   : > { %7406 = vmatpush3.bf16.msra.mxu1 %v7894_v13 }
 0xc4f   : > { %7411 = vmatprep.subr.bf16.mxu1 %v7933_v41 }
 0xc50   : > { %7396 = vmatpush3.bf16.msra.mxu0 %v9162_v59 }
 0xc51   : > { %7397 = vmatprep.subr.bf16.mxu0 %v7933_v41 }
 0xc54   : > { %7398 = vmatpush3.bf16.msra.mxu0 %v9152_v8 }
 0xc55   : > { %7399 = vmatprep.subr.bf16.mxu0 %v7933_v41 }
 0xc58   : > { %7400 = vmatpush3.bf16.msra.mxu0 %v9154_v52 }
 0xc59   : > { %7423 = vmatprep.subr.bf16.mxu0 %v7933_v41 }
 0xc5b   : > { %7402 = vmatmul.mubr.msk.bf16.vlgmr.msra.gmra.mxu0 %vm4073_vm12, %v7893_v12 }
 0xc5c   : > { %7425 = vmatprep.mubr.msk.bf16.mxu0 %vm7934_vm0, %v7933_v41  ;;  %7424 = vmatpush3.bf16.msra.mxu0 %v7896_v38 }
 0xc5d   : > { %7429 = vmatprep.subr.bf16.mxu0 %v7933_v41 }
 0xd0b   : > { %v4220_v51 = vpop.f32.mrf.mxu0  ;;  %v4270_v54 = vpop.f32.mrf.mxu1 }
 0xd0c   : > { %v4271_v20 = vadd.f32 %v4270_v54, %v4220_v51 }
 0xd0d   : > { %v7385_v6 = vpop.f32.mrf.mxu0  ;;  %v7391_v45 = vpop.f32.mrf.mxu1 }
 0xd0f   : > { %v4223_v26 = vpop.f32.mrf.mxu0  ;;  %v4273_v37 = vpop.f32.mrf.mxu1 }
 0xd10   : > { %v4274_v23 = vadd.f32 %v4273_v37, %v4223_v26 }
 0xd11   : > { %v7386_v22 = vpop.f32.mrf.mxu0  ;;  %v7392_v36 = vpop.f32.mrf.mxu1 }
 0xd12   : > { %v7903_v22 = vld [vmem:[%s9513_s6 + $0x38] sm:$0xff]  }
 0xd13   : > { %v7904_v36 = vld [vmem:[%s9510_s3 + $0x38] sm:$0xff]  }
 0xd1b   : > { %v4322_v24 = vpop.f32.mrf.mxu0 }
 0xd1d   : > { %v7403_v48 = vpop.f32.mrf.mxu0 }
 0xd1f   : > { %v4325_v42 = vpop.f32.mrf.mxu0 }
 0xd20   : > { %v4329_v16 = vpack.c.bf16 %v4325_v42, %v4322_v24 }
 0xd21   : > { %v7404_v15 = vpop.f32.mrf.mxu0 }
 0xd22   : > { %7408 = vmatmul.mubr.msk.bf16.vlgmr.msra.gmra.mxu1 %vm4182_vm13, %v4329_v16 }
 0xd23   : > { %7412 = vmatpush3.bf16.msra.mxu1 %v9160_v25  ;;  %7419 = vmatprep.mubr.msk.bf16.mxu1 %vm7934_vm0, %v7933_v41 }
 0xd24   : > { %7413 = vmatprep.subr.bf16.mxu1 %v7933_v41 }
 0xd27   : > { %7414 = vmatpush3.bf16.msra.mxu1 %v9162_v59 }
 0xd28   : > { %7415 = vmatprep.subr.bf16.mxu1 %v7933_v41 }
 0xd2b   : > { %7416 = vmatpush3.bf16.msra.mxu1 %v9152_v8 }
 0xd2c   : > { %7417 = vmatprep.subr.bf16.mxu1 %v7933_v41 }
 0xd2f   : > { %7418 = vmatpush3.bf16.msra.mxu1 %v9154_v52 }
 0xd30   : > { %7441 = vmatprep.subr.bf16.mxu1 %v7933_v41 }
 0xd32   : > { %7420 = vmatmul.mubr.msk.bf16.vlgmr.msra.gmra.mxu1 %vm4073_vm12, %v7895_v53 }
 0xd33   : > { %7443 = vmatprep.mubr.msk.bf16.mxu1 %vm7934_vm0, %v7933_v41  ;;  %7442 = vmatpush3.bf16.msra.mxu1 %v7898_v32 }
 0xd34   : > { %7447 = vmatprep.subr.bf16.mxu1 %v7933_v41 }
 0xde2   : > { %v4375_v50 = vpop.f32.mrf.mxu1 }
 0xde3   : > { %v4382_v27 = vadd.f32 %v4375_v50, %v4271_v20 }
 0xde4   : > { %v7409_v49 = vpop.f32.mrf.mxu1 }
 0xde6   : > { %v4378_v63 = vpop.f32.mrf.mxu1 }
 0xde7   : > { %v4383_v46 = vadd.f32 %v4378_v63, %v4274_v23 }
 0xde8   : > { %v7410_v0 = vpop.f32.mrf.mxu1 }
 0xde9   : > { %v7906_v0 = vld [vmem:[%s9510_s3 + $0x40] sm:$0xff]  }
 0xdf2   : > { %v4429_v40 = vpop.f32.mrf.mxu1 }
 0xdf4   : > { %v7421_v17 = vpop.f32.mrf.mxu1 }
 0xdf6   : > { %v4432_v30 = vpop.f32.mrf.mxu1 }
 0xdf7   : > { %v4436_v29 = vpack.c.bf16 %v4432_v30, %v4429_v40 }
 0xdf8   : > { %v7422_v33 = vpop.f32.mrf.mxu1 }
 0xdf9   : > { %7426 = vmatmul.mubr.msk.bf16.vlgmr.msra.gmra.mxu0 %vm4182_vm13, %v4436_v29 }
 0xdfa   : > { %7430 = vmatpush3.bf16.msra.mxu0 %v9160_v25  ;;  %7437 = vmatprep.mubr.msk.bf16.mxu0 %vm7934_vm0, %v7933_v41 }
 0xdfb   : > { %7431 = vmatprep.subr.bf16.mxu0 %v7933_v41 }
 0xdfe   : > { %7432 = vmatpush3.bf16.msra.mxu0 %v9162_v59 }
 0xdff   : > { %7433 = vmatprep.subr.bf16.mxu0 %v7933_v41 }
 0xe02   : > { %7434 = vmatpush3.bf16.msra.mxu0 %v9152_v8 }
 0xe03   : > { %7435 = vmatprep.subr.bf16.mxu0 %v7933_v41 }
 0xe06   : > { %7436 = vmatpush3.bf16.msra.mxu0 %v9154_v52 }
 0xe07   : > { %7459 = vmatprep.subr.bf16.mxu0 %v7933_v41 }
 0xe09   : > { %7438 = vmatmul.mubr.msk.bf16.vlgmr.msra.gmra.mxu0 %vm4073_vm12, %v7897_v5 }
 0xe0a   : > { %7461 = vmatprep.mubr.msk.bf16.mxu0 %vm7934_vm0, %v7933_v41  ;;  %7460 = vmatpush3.bf16.msra.mxu0 %v7900_v31 }
 0xe0b   : > { %7465 = vmatprep.subr.bf16.mxu0 %v7933_v41 }
 0xeb9   : > { %v4482_v43 = vpop.f32.mrf.mxu0 }
 0xeba   : > { %v4489_v21 = vadd.f32 %v4482_v43, %v4382_v27 }
 0xebb   : > { %v7427_v18 = vpop.f32.mrf.mxu0 }
 0xebd   : > { %v4485_v9 = vpop.f32.mrf.mxu0 }
 0xebe   : > { %v4490_v19 = vadd.f32 %v4485_v9, %v4383_v46  ;;  %v7905_v46 = vld [vmem:[%s9513_s6 + $0x40] sm:$0xff]  }
 0xebf   : > { %v7428_v62 = vpop.f32.mrf.mxu0 }
 0xec0   : > { %v7908_v62 = vld [vmem:[%s9510_s3 + $0x48] sm:$0xff]  }
 0xec9   : > { %v4536_v60 = vpop.f32.mrf.mxu0 }
 0xecb   : > { %v7439_v2 = vpop.f32.mrf.mxu0 }
 0xecd   : > { %v4539_v39 = vpop.f32.mrf.mxu0 }
 0xece   : > { %v4543_v47 = vpack.c.bf16 %v4539_v39, %v4536_v60 }
 0xecf   : > { %v7440_v61 = vpop.f32.mrf.mxu0 }
 0xed0   : > { %7444 = vmatmul.mubr.msk.bf16.vlgmr.msra.gmra.mxu1 %vm4182_vm13, %v4543_v47 }
 0xed1   : > { %7448 = vmatpush3.bf16.msra.mxu1 %v9160_v25  ;;  %7455 = vmatprep.mubr.msk.bf16.mxu1 %vm7934_vm0, %v7933_v41 }
 0xed2   : > { %7449 = vmatprep.subr.bf16.mxu1 %v7933_v41 }
 0xed5   : > { %7450 = vmatpush3.bf16.msra.mxu1 %v9162_v59 }
 0xed6   : > { %7451 = vmatprep.subr.bf16.mxu1 %v7933_v41 }
 0xed9   : > { %7452 = vmatpush3.bf16.msra.mxu1 %v9152_v8 }
 0xeda   : > { %7453 = vmatprep.subr.bf16.mxu1 %v7933_v41 }
 0xedd   : > { %7454 = vmatpush3.bf16.msra.mxu1 %v9154_v52 }
 0xede   : > { %7477 = vmatprep.subr.bf16.mxu1 %v7933_v41 }
 0xee0   : > { %7456 = vmatmul.mubr.msk.bf16.vlgmr.msra.gmra.mxu1 %vm4073_vm12, %v7899_v1 }
 0xee1   : > { %7479 = vmatprep.mubr.msk.bf16.mxu1 %vm7934_vm0, %v7933_v41  ;;  %7478 = vmatpush3.bf16.msra.mxu1 %v7902_v58 }
 0xee2   : > { %7483 = vmatprep.subr.bf16.mxu1 %v7933_v41 }
 0xf90   : > { %v4589_v44 = vpop.f32.mrf.mxu1 }
 0xf91   : > { %v4596_v35 = vadd.f32 %v4589_v44, %v4489_v21 }
 0xf92   : > { %v7445_v7 = vpop.f32.mrf.mxu1 }
 0xf94   : > { %v4592_v10 = vpop.f32.mrf.mxu1 }
 0xf95   : > { %v4597_v55 = vadd.f32 %v4592_v10, %v4490_v19  ;;  %v7907_v19 = vld [vmem:[%s9513_s6 + $0x48] sm:$0xff]  }
 0xf96   : > { %v7446_v14 = vpop.f32.mrf.mxu1 }
 0xf97   : > { %v7910_v14 = vld [vmem:[%s9510_s3 + $0x50] sm:$0xff]  }
 0xfa0   : > { %v4643_v56 = vpop.f32.mrf.mxu1 }
 0xfa2   : > { %v7457_v3 = vpop.f32.mrf.mxu1 }
 0xfa4   : > { %v4646_v57 = vpop.f32.mrf.mxu1 }
 0xfa5   : > { %v4650_v11 = vpack.c.bf16 %v4646_v57, %v4643_v56 }
 0xfa6   : > { %v7458_v4 = vpop.f32.mrf.mxu1 }
 0xfa7   : > { %7462 = vmatmul.mubr.msk.bf16.vlgmr.msra.gmra.mxu0 %vm4182_vm13, %v4650_v11 }
 0xfa8   : > { %7466 = vmatpush3.bf16.msra.mxu0 %v9160_v25  ;;  %7473 = vmatprep.mubr.msk.bf16.mxu0 %vm7934_vm0, %v7933_v41 }
 0xfa9   : > { %7467 = vmatprep.subr.bf16.mxu0 %v7933_v41 }
 0xfac   : > { %7468 = vmatpush3.bf16.msra.mxu0 %v9162_v59 }
 0xfad   : > { %7469 = vmatprep.subr.bf16.mxu0 %v7933_v41 }
 0xfb0   : > { %7470 = vmatpush3.bf16.msra.mxu0 %v9152_v8 }
 0xfb1   : > { %7471 = vmatprep.subr.bf16.mxu0 %v7933_v41 }
 0xfb4   : > { %7472 = vmatpush3.bf16.msra.mxu0 %v9154_v52 }
 0xfb5   : > { %7495 = vmatprep.subr.bf16.mxu0 %v7933_v41 }
 0xfb7   : > { %7474 = vmatmul.mubr.msk.bf16.vlgmr.msra.gmra.mxu0 %vm4073_vm12, %v7901_v28 }
 0xfb8   : > { %7497 = vmatprep.mubr.msk.bf16.mxu0 %vm7934_vm0, %v7933_v41  ;;  %7496 = vmatpush3.bf16.msra.mxu0 %v7904_v36 }
 0xfb9   : > { %7501 = vmatprep.subr.bf16.mxu0 %v7933_v41 }
0x1067   : > { %v4696_v34 = vpop.f32.mrf.mxu0 }
0x1068   : > { %v4703_v12 = vadd.f32 %v4696_v34, %v4596_v35 }
0x1069   : > { %v7463_v13 = vpop.f32.mrf.mxu0 }
0x106b   : > { %v4699_v51 = vpop.f32.mrf.mxu0 }
0x106c   : > { %v4704_v54 = vadd.f32 %v4699_v51, %v4597_v55  ;;  %v7909_v55 = vld [vmem:[%s9513_s6 + $0x50] sm:$0xff]  }
0x106d   : > { %v7464_v20 = vpop.f32.mrf.mxu0 }
0x106e   : > { %v7912_v20 = vld [vmem:[%s9510_s3 + $0x58] sm:$0xff]  }
0x1077   : > { %v4750_v6 = vpop.f32.mrf.mxu0 }
0x1079   : > { %v7475_v45 = vpop.f32.mrf.mxu0 }
0x107b   : > { %v4753_v26 = vpop.f32.mrf.mxu0 }
0x107c   : > { %v4757_v37 = vpack.c.bf16 %v4753_v26, %v4750_v6 }
0x107d   : > { %v7476_v23 = vpop.f32.mrf.mxu0 }
0x107e   : > { %7480 = vmatmul.mubr.msk.bf16.vlgmr.msra.gmra.mxu1 %vm4182_vm13, %v4757_v37 }
0x107f   : > { %7484 = vmatpush3.bf16.msra.mxu1 %v9160_v25  ;;  %7491 = vmatprep.mubr.msk.bf16.mxu1 %vm7934_vm0, %v7933_v41 }
0x1080   : > { %7485 = vmatprep.subr.bf16.mxu1 %v7933_v41 }
0x1083   : > { %7486 = vmatpush3.bf16.msra.mxu1 %v9162_v59 }
0x1084   : > { %7487 = vmatprep.subr.bf16.mxu1 %v7933_v41 }
0x1087   : > { %7488 = vmatpush3.bf16.msra.mxu1 %v9152_v8 }
0x1088   : > { %7489 = vmatprep.subr.bf16.mxu1 %v7933_v41 }
0x108b   : > { %7490 = vmatpush3.bf16.msra.mxu1 %v9154_v52 }
0x108c   : > { %7513 = vmatprep.subr.bf16.mxu1 %v7933_v41 }
0x108e   : > { %7492 = vmatmul.mubr.msk.bf16.vlgmr.msra.gmra.mxu1 %vm4073_vm12, %v7903_v22 }
0x108f   : > { %7515 = vmatprep.mubr.msk.bf16.mxu1 %vm7934_vm0, %v7933_v41  ;;  %7514 = vmatpush3.bf16.msra.mxu1 %v7906_v0 }
0x1090   : > { %7519 = vmatprep.subr.bf16.mxu1 %v7933_v41 }
0x113e   : > { %v4803_v24 = vpop.f32.mrf.mxu1 }
0x113f   : > { %v4810_v48 = vadd.f32 %v4803_v24, %v4703_v12 }
0x1140   : > { %v7481_v42 = vpop.f32.mrf.mxu1 }
0x1142   : > { %v4806_v16 = vpop.f32.mrf.mxu1 }
0x1143   : > { %v4811_v15 = vadd.f32 %v4806_v16, %v4704_v54  ;;  %v7911_v54 = vld [vmem:[%s9513_s6 + $0x58] sm:$0xff]  }
0x1144   : > { %v7482_v53 = vpop.f32.mrf.mxu1 }
0x1145   : > { %v7914_v53 = vld [vmem:[%s9510_s3 + $0x60] sm:$0xff]  }
0x114e   : > { %v4857_v38 = vpop.f32.mrf.mxu1 }
0x1150   : > { %v7493_v50 = vpop.f32.mrf.mxu1 }
0x1152   : > { %v4860_v27 = vpop.f32.mrf.mxu1 }
0x1153   : > { %v4864_v49 = vpack.c.bf16 %v4860_v27, %v4857_v38 }
0x1154   : > { %v7494_v63 = vpop.f32.mrf.mxu1 }
0x1155   : > { %7498 = vmatmul.mubr.msk.bf16.vlgmr.msra.gmra.mxu0 %vm4182_vm13, %v4864_v49 }
0x1156   : > { %7502 = vmatpush3.bf16.msra.mxu0 %v9160_v25  ;;  %7509 = vmatprep.mubr.msk.bf16.mxu0 %vm7934_vm0, %v7933_v41 }
0x1157   : > { %7503 = vmatprep.subr.bf16.mxu0 %v7933_v41 }
0x115a   : > { %7504 = vmatpush3.bf16.msra.mxu0 %v9162_v59 }
0x115b   : > { %7505 = vmatprep.subr.bf16.mxu0 %v7933_v41 }
0x115e   : > { %7506 = vmatpush3.bf16.msra.mxu0 %v9152_v8 }
0x115f   : > { %7507 = vmatprep.subr.bf16.mxu0 %v7933_v41 }
0x1162   : > { %7508 = vmatpush3.bf16.msra.mxu0 %v9154_v52 }
0x1163   : > { %7531 = vmatprep.subr.bf16.mxu0 %v7933_v41 }
0x1165   : > { %7510 = vmatmul.mubr.msk.bf16.vlgmr.msra.gmra.mxu0 %vm4073_vm12, %v7905_v46 }
0x1166   : > { %7533 = vmatprep.mubr.msk.bf16.mxu0 %vm7934_vm0, %v7933_v41  ;;  %7532 = vmatpush3.bf16.msra.mxu0 %v7908_v62 }
0x1167   : > { %7537 = vmatprep.subr.bf16.mxu0 %v7933_v41 }
0x1215   : > { %v4910_v40 = vpop.f32.mrf.mxu0 }
0x1216   : > { %v4917_v17 = vadd.f32 %v4910_v40, %v4810_v48 }
0x1217   : > { %v7499_v30 = vpop.f32.mrf.mxu0 }
0x1219   : > { %v4913_v29 = vpop.f32.mrf.mxu0 }
0x121a   : > { %v4918_v33 = vadd.f32 %v4913_v29, %v4811_v15  ;;  %v7913_v15 = vld [vmem:[%s9513_s6 + $0x60] sm:$0xff]  }
0x121b   : > { %v7500_v5 = vpop.f32.mrf.mxu0 }
0x121c   : > { %v7916_v5 = vld [vmem:[%s9510_s3 + $0x68] sm:$0xff]  }
0x1225   : > { %v4964_v32 = vpop.f32.mrf.mxu0 }
0x1227   : > { %v7511_v43 = vpop.f32.mrf.mxu0 }
0x1229   : > { %v4967_v21 = vpop.f32.mrf.mxu0 }
0x122a   : > { %v4971_v18 = vpack.c.bf16 %v4967_v21, %v4964_v32 }
0x122b   : > { %v7512_v9 = vpop.f32.mrf.mxu0 }
0x122c   : > { %7516 = vmatmul.mubr.msk.bf16.vlgmr.msra.gmra.mxu1 %vm4182_vm13, %v4971_v18 }
0x122d   : > { %7520 = vmatpush3.bf16.msra.mxu1 %v9160_v25  ;;  %7527 = vmatprep.mubr.msk.bf16.mxu1 %vm7934_vm0, %v7933_v41 }
0x122e   : > { %7521 = vmatprep.subr.bf16.mxu1 %v7933_v41 }
0x1231   : > { %7522 = vmatpush3.bf16.msra.mxu1 %v9162_v59 }
0x1232   : > { %7523 = vmatprep.subr.bf16.mxu1 %v7933_v41 }
0x1235   : > { %7524 = vmatpush3.bf16.msra.mxu1 %v9152_v8 }
0x1236   : > { %7525 = vmatprep.subr.bf16.mxu1 %v7933_v41 }
0x1239   : > { %7526 = vmatpush3.bf16.msra.mxu1 %v9154_v52 }
0x123a   : > { %7549 = vmatprep.subr.bf16.mxu1 %v7933_v41 }
0x123c   : > { %7528 = vmatmul.mubr.msk.bf16.vlgmr.msra.gmra.mxu1 %vm4073_vm12, %v7907_v19 }
0x123d   : > { %7551 = vmatprep.mubr.msk.bf16.mxu1 %vm7934_vm0, %v7933_v41  ;;  %7550 = vmatpush3.bf16.msra.mxu1 %v7910_v14 }
0x123e   : > { %7555 = vmatprep.subr.bf16.mxu1 %v7933_v41 }
0x12ec   : > { %v5017_v60 = vpop.f32.mrf.mxu1 }
0x12ed   : > { %v5024_v2 = vadd.f32 %v5017_v60, %v4917_v17 }
0x12ee   : > { %v7517_v39 = vpop.f32.mrf.mxu1 }
0x12f0   : > { %v5020_v47 = vpop.f32.mrf.mxu1 }
0x12f1   : > { %v5025_v61 = vadd.f32 %v5020_v47, %v4918_v33  ;;  %v7915_v33 = vld [vmem:[%s9513_s6 + $0x68] sm:$0xff]  }
0x12f2   : > { %v7518_v1 = vpop.f32.mrf.mxu1 }
0x12f3   : > { %v7918_v1 = vld [vmem:[%s9510_s3 + $0x70] sm:$0xff]  }
0x12fc   : > { %v5071_v31 = vpop.f32.mrf.mxu1 }
0x12fe   : > { %v7529_v44 = vpop.f32.mrf.mxu1 }
0x1300   : > { %v5074_v35 = vpop.f32.mrf.mxu1 }
0x1301   : > { %v5078_v7 = vpack.c.bf16 %v5074_v35, %v5071_v31 }
0x1302   : > { %v7530_v10 = vpop.f32.mrf.mxu1 }
0x1303   : > { %7534 = vmatmul.mubr.msk.bf16.vlgmr.msra.gmra.mxu0 %vm4182_vm13, %v5078_v7 }
0x1304   : > { %7538 = vmatpush3.bf16.msra.mxu0 %v9160_v25  ;;  %7545 = vmatprep.mubr.msk.bf16.mxu0 %vm7934_vm0, %v7933_v41 }
0x1305   : > { %7539 = vmatprep.subr.bf16.mxu0 %v7933_v41 }
0x1308   : > { %7540 = vmatpush3.bf16.msra.mxu0 %v9162_v59 }
0x1309   : > { %7541 = vmatprep.subr.bf16.mxu0 %v7933_v41 }
0x130c   : > { %7542 = vmatpush3.bf16.msra.mxu0 %v9152_v8 }
0x130d   : > { %7543 = vmatprep.subr.bf16.mxu0 %v7933_v41 }
0x1310   : > { %7544 = vmatpush3.bf16.msra.mxu0 %v9154_v52 }
0x1311   : > { %7567 = vmatprep.subr.bf16.mxu0 %v7933_v41 }
0x1313   : > { %7546 = vmatmul.mubr.msk.bf16.vlgmr.msra.gmra.mxu0 %vm4073_vm12, %v7909_v55 }
0x1314   : > { %7569 = vmatprep.mubr.msk.bf16.mxu0 %vm7934_vm0, %v7933_v41  ;;  %7568 = vmatpush3.bf16.msra.mxu0 %v7912_v20 }
0x1315   : > { %7573 = vmatprep.subr.bf16.mxu0 %v7933_v41 }
0x13c3   : > { %v5124_v56 = vpop.f32.mrf.mxu0 }
0x13c4   : > { %v5131_v3 = vadd.f32 %v5124_v56, %v5024_v2 }
0x13c5   : > { %v7535_v57 = vpop.f32.mrf.mxu0 }
0x13c7   : > { %v5127_v11 = vpop.f32.mrf.mxu0 }
0x13c8   : > { %v5132_v4 = vadd.f32 %v5127_v11, %v5025_v61  ;;  %v7917_v61 = vld [vmem:[%s9513_s6 + $0x70] sm:$0xff]  }
0x13c9   : > { %v7536_v28 = vpop.f32.mrf.mxu0 }
0x13d3   : > { %v5178_v58 = vpop.f32.mrf.mxu0 }
0x13d5   : > { %v7547_v34 = vpop.f32.mrf.mxu0 }
0x13d7   : > { %v5181_v12 = vpop.f32.mrf.mxu0 }
0x13d8   : > { %v5185_v13 = vpack.c.bf16 %v5181_v12, %v5178_v58 }
0x13d9   : > { %v7548_v51 = vpop.f32.mrf.mxu0 }
0x13da   : > { %7552 = vmatmul.mubr.msk.bf16.vlgmr.msra.gmra.mxu1 %vm4182_vm13, %v5185_v13 }
0x13db   : > { %7556 = vmatpush3.bf16.msra.mxu1 %v9160_v25  ;;  %7563 = vmatprep.mubr.msk.bf16.mxu1 %vm7934_vm0, %v7933_v41 }
0x13dc   : > { %7557 = vmatprep.subr.bf16.mxu1 %v7933_v41 }
0x13df   : > { %7558 = vmatpush3.bf16.msra.mxu1 %v9162_v59 }
0x13e0   : > { %7559 = vmatprep.subr.bf16.mxu1 %v7933_v41 }
0x13e3   : > { %7560 = vmatpush3.bf16.msra.mxu1 %v9152_v8 }
0x13e4   : > { %7561 = vmatprep.subr.bf16.mxu1 %v7933_v41 }
0x13e7   : > { %7562 = vmatpush3.bf16.msra.mxu1 %v9154_v52 }
0x13e8   : > { %7585 = vmatprep.subr.bf16.mxu1 %v7933_v41 }
0x13ea   : > { %7564 = vmatmul.mubr.msk.bf16.vlgmr.msra.gmra.mxu1 %vm4073_vm12, %v7911_v54 }
0x13eb   : > { %7587 = vmatprep.mubr.msk.bf16.mxu1 %vm7934_vm0, %v7933_v41  ;;  %7586 = vmatpush3.bf16.msra.mxu1 %v7914_v53 }
0x13ec   : > { %7591 = vmatprep.subr.bf16.mxu1 %v7933_v41 }
0x149a   : > { %v5231_v6 = vpop.f32.mrf.mxu1 }
0x149b   : > { %v5238_v45 = vadd.f32 %v5231_v6, %v5131_v3 }
0x149c   : > { %v7553_v26 = vpop.f32.mrf.mxu1 }
0x149e   : > { %v5234_v37 = vpop.f32.mrf.mxu1 }
0x149f   : > { %v5239_v23 = vadd.f32 %v5234_v37, %v5132_v4  ;;  %v7919_v4 = vld [vmem:[%s9513_s6 + $0x78] sm:$0xff]  }
0x14a0   : > { %v7554_v22 = vpop.f32.mrf.mxu1 }
0x14aa   : > { %v5285_v36 = vpop.f32.mrf.mxu1 }
0x14ac   : > { %v7565_v24 = vpop.f32.mrf.mxu1 }
0x14ae   : > { %v5288_v48 = vpop.f32.mrf.mxu1 }
0x14af   : > { %v5292_v42 = vpack.c.bf16 %v5288_v48, %v5285_v36  ;;  %v5781_v36 = vld [vmem:[%s9511_s4] sm:$0xff] }
0x14b0   : > { %v7566_v16 = vpop.f32.mrf.mxu1 }
0x14b1   : > { %7570 = vmatmul.mubr.msk.bf16.vlgmr.msra.gmra.mxu0 %vm4182_vm13, %v5292_v42  ;;  %v5782_v42 = vld [vmem:[%s9511_s4 + $0x8] sm:$0xff] }
0x14b2   : > { %7574 = vmatpush3.bf16.msra.mxu0 %v9160_v25  ;;  %7581 = vmatprep.mubr.msk.bf16.mxu0 %vm7934_vm0, %v7933_v41 }
0x14b3   : > { %7575 = vmatprep.subr.bf16.mxu0 %v7933_v41 }
0x14b6   : > { %7576 = vmatpush3.bf16.msra.mxu0 %v9162_v59 }
0x14b7   : > { %7577 = vmatprep.subr.bf16.mxu0 %v7933_v41 }
0x14ba   : > { %7578 = vmatpush3.bf16.msra.mxu0 %v9152_v8 }
0x14bb   : > { %7579 = vmatprep.subr.bf16.mxu0 %v7933_v41 }
0x14be   : > { %7580 = vmatpush3.bf16.msra.mxu0 %v9154_v52 }
0x14bf   : > { %7603 = vmatprep.subr.bf16.mxu0 %v7933_v41 }
0x14c1   : > { %7582 = vmatmul.mubr.msk.bf16.vlgmr.msra.gmra.mxu0 %vm4073_vm12, %v7913_v15 }
0x14c2   : > { %7605 = vmatprep.mubr.msk.bf16.mxu0 %vm7934_vm0, %v7933_v41  ;;  %7604 = vmatpush3.bf16.msra.mxu0 %v7916_v5 }
0x14c3   : > { %7609 = vmatprep.subr.bf16.mxu0 %v7933_v41 }
0x1571   : > { %v5338_v38 = vpop.f32.mrf.mxu0 }
0x1572   : > { %v5345_v50 = vadd.f32 %v5338_v38, %v5238_v45 }
0x1573   : > { %v7571_v27 = vpop.f32.mrf.mxu0 }
0x1575   : > { %v5341_v49 = vpop.f32.mrf.mxu0 }
0x1576   : > { %v5346_v63 = vadd.f32 %v5341_v49, %v5239_v23 }
0x1577   : > { %v7572_v46 = vpop.f32.mrf.mxu0 }
0x1581   : > { %v5392_v0 = vpop.f32.mrf.mxu0 }
0x1583   : > { %v7583_v40 = vpop.f32.mrf.mxu0 }
0x1585   : > { %v5395_v17 = vpop.f32.mrf.mxu0 }
0x1586   : > { %v5399_v30 = vpack.c.bf16 %v5395_v17, %v5392_v0 }
0x1587   : > { %v7584_v29 = vpop.f32.mrf.mxu0 }
0x1588   : > { %7588 = vmatmul.mubr.msk.bf16.vlgmr.msra.gmra.mxu1 %vm4182_vm13, %v5399_v30 }
0x1589   : > { %7592 = vmatpush3.bf16.msra.mxu1 %v9160_v25  ;;  %7599 = vmatprep.mubr.msk.bf16.mxu1 %vm7934_vm0, %v7933_v41 }
0x158a   : > { %7593 = vmatprep.subr.bf16.mxu1 %v7933_v41 }
0x158d   : > { %7594 = vmatpush3.bf16.msra.mxu1 %v9162_v59 }
0x158e   : > { %7595 = vmatprep.subr.bf16.mxu1 %v7933_v41 }
0x1591   : > { %7596 = vmatpush3.bf16.msra.mxu1 %v9152_v8 }
0x1592   : > { %7597 = vmatprep.subr.bf16.mxu1 %v7933_v41 }
0x1595   : > { %7598 = vmatpush3.bf16.msra.mxu1 %v9154_v52 }
0x1596   : > { %7621 = vmatprep.subr.bf16.mxu1 %v7933_v41 }
0x1598   : > { %7600 = vmatmul.mubr.msk.bf16.vlgmr.msra.gmra.mxu1 %vm4073_vm12, %v7915_v33 }
0x1599   : > { %7623 = vmatprep.mubr.msk.bf16.mxu1 %vm7934_vm0, %v7933_v41  ;;  %7622 = vmatpush3.bf16.msra.mxu1 %v7918_v1 }
0x159a   : > { %7627 = vmatprep.subr.bf16.mxu1 %v7933_v41 }
0x1648   : > { %v5445_v32 = vpop.f32.mrf.mxu1 }
0x1649   : > { %v5452_v43 = vadd.f32 %v5445_v32, %v5345_v50 }
0x164a   : > { %v7589_v21 = vpop.f32.mrf.mxu1 }
0x164c   : > { %v5448_v18 = vpop.f32.mrf.mxu1 }
0x164d   : > { %v5453_v9 = vadd.f32 %v5448_v18, %v5346_v63 }
0x164e   : > { %v7590_v19 = vpop.f32.mrf.mxu1 }
0x1658   : > { %v5499_v62 = vpop.f32.mrf.mxu1 }
0x165a   : > { %v7601_v60 = vpop.f32.mrf.mxu1 }
0x165c   : > { %v5502_v2 = vpop.f32.mrf.mxu1 }
0x165d   : > { %v5506_v39 = vpack.c.bf16 %v5502_v2, %v5499_v62 }
0x165e   : > { %v7602_v47 = vpop.f32.mrf.mxu1 }
0x165f   : > { %7606 = vmatmul.mubr.msk.bf16.vlgmr.msra.gmra.mxu0 %vm4182_vm13, %v5506_v39 }
0x1660   : > { %7610 = vmatpush3.bf16.msra.mxu0 %v9160_v25  ;;  %7617 = vmatprep.mubr.msk.bf16.mxu0 %vm7934_vm0, %v7933_v41 }
0x1661   : > { %7611 = vmatprep.subr.bf16.mxu0 %v7933_v41 }
0x1664   : > { %7612 = vmatpush3.bf16.msra.mxu0 %v9162_v59 }
0x1665   : > { %7613 = vmatprep.subr.bf16.mxu0 %v7933_v41 }
0x1668   : > { %7614 = vmatpush3.bf16.msra.mxu0 %v9152_v8 }
0x1669   : > { %7615 = vmatprep.subr.bf16.mxu0 %v7933_v41 }
0x166c   : > { %7616 = vmatpush3.bf16.msra.mxu0 %v9154_v52 }
0x166d   : > { %7639 = vmatprep.subr.bf16.mxu0 %v7933_v41 }
0x166f   : > { %7618 = vmatmul.mubr.msk.bf16.vlgmr.msra.gmra.mxu0 %vm4073_vm12, %v7917_v61 }
0x1670   : > { %7641 = vmatprep.mubr.msk.bf16.mxu0 %vm7934_vm0, %v7933_v41 }
0x171f   : > { %v5552_v31 = vpop.f32.mrf.mxu0 }
0x1720   : > { %v5559_v44 = vadd.f32 %v5552_v31, %v5452_v43 }
0x1721   : > { %v7607_v35 = vpop.f32.mrf.mxu0 }
0x1723   : > { %v5555_v7 = vpop.f32.mrf.mxu0 }
0x1724   : > { %v5560_v10 = vadd.f32 %v5555_v7, %v5453_v9 }
0x1725   : > { %v7608_v55 = vpop.f32.mrf.mxu0 }
0x172f   : > { %v5606_v14 = vpop.f32.mrf.mxu0 }
0x1731   : > { %v7619_v56 = vpop.f32.mrf.mxu0 }
0x1733   : > { %v5609_v3 = vpop.f32.mrf.mxu0 }
0x1734   : > { %v5613_v57 = vpack.c.bf16 %v5609_v3, %v5606_v14 }
0x1735   : > { %v7620_v11 = vpop.f32.mrf.mxu0 }
0x1736   : > { %7624 = vmatmul.mubr.msk.bf16.vlgmr.msra.gmra.mxu1 %vm4182_vm13, %v5613_v57 }
0x1737   : > { %7628 = vmatpush3.bf16.msra.mxu1 %v9160_v25  ;;  %7635 = vmatprep.mubr.msk.bf16.mxu1 %vm7934_vm0, %v7933_v41  ;;  %v7920_v25 = vld [vmem:[%s9510_s3 + $0x78] sm:$0xff]  }
0x1738   : > { %7629 = vmatprep.subr.bf16.mxu1 %v7933_v41  ;;  %7640 = vmatpush3.bf16.msra.mxu0 %v7920_v25 }
0x173b   : > { %7630 = vmatpush3.bf16.msra.mxu1 %v9162_v59 }
0x173c   : > { %7631 = vmatprep.subr.bf16.mxu1 %v7933_v41 }
0x173f   : > { %7632 = vmatpush3.bf16.msra.mxu1 %v9152_v8 }
0x1740   : > { %7633 = vmatprep.subr.bf16.mxu1 %v7933_v41 }
0x1743   : > { %7634 = vmatpush3.bf16.msra.mxu1 %v9154_v52 }
0x1746   : > { %7636 = vmatmul.mubr.msk.bf16.vlgmr.msra.gmra.mxu1 %vm4073_vm12, %v7919_v4 }
0x17f6   : > { %v5659_v59 = vpop.f32.mrf.mxu1 }
0x17f7   : > { %v5666_v28 = vadd.f32 %v5659_v59, %v5559_v44 }
0x17f8   : > { %v7625_v58 = vpop.f32.mrf.mxu1 }
0x17fa   : > { %v5662_v34 = vpop.f32.mrf.mxu1 }
0x17fb   : > { %v5667_v8 = vadd.f32 %v5662_v34, %v5560_v10 }
0x17fc   : > { %v7626_v12 = vpop.f32.mrf.mxu1 }
0x1806   : > { %v5713_v41 = vpop.f32.mrf.mxu1 }
0x1808   : > { %v7637_v13 = vpop.f32.mrf.mxu1 }
0x180a   : > { %v5716_v51 = vpop.f32.mrf.mxu1 }
0x180b   : > { %v5720_v54 = vpack.c.bf16 %v5716_v51, %v5713_v41 }
0x180c   : > { %v7638_v20 = vpop.f32.mrf.mxu1 }
0x180d   : > { %7642 = vmatmul.mubr.msk.bf16.vlgmr.msra.gmra.mxu0 %vm4182_vm13, %v5720_v54 }
0x18cd   : > { %v5766_v52 = vpop.f32.mrf.mxu0 }
0x18ce   : > { %v5773_v6 = vadd.f32 %v5766_v52, %v5666_v28 }
0x18cf   : > { %v7643_v45 = vpop.f32.mrf.mxu0 }
0x18d0   : > { %vm5775_vm14 = vcmp.ge.f32.partialorder %v5773_v6, 0.0  ;;  %v5777_v26 = vmul.f32 0.2, %v5773_v6 }
0x18d1   : > { %v5769_v37 = vpop.f32.mrf.mxu0 }
0x18d2   : > { %v5774_v23 = vadd.f32 %v5769_v37, %v5667_v8  ;;  %v5779_v22 = vsel %vm5775_vm14, %v5773_v6, %v5777_v26 }
0x18d3   : > { %v7644_v24 = vpop.f32.mrf.mxu0  ;;  %v5783_v16 = vmul.f32 %v5781_v36, %v5779_v22 }
0x18d4   : > { %vm5776_vm15 = vcmp.ge.f32.partialorder %v5774_v23, 0.0  ;;  %v5778_v48 = vmul.f32 0.2, %v5774_v23 }
0x18d5   : > { %v5786_v38 = vsel %vm5785_vm1, %v5783_v16, 0.0 }
0x18d6   : > { %v5780_v15 = vsel %vm5776_vm15, %v5774_v23, %v5778_v48 }
0x18d7   : > { %v5784_v53 = vmul.f32 %v5782_v42, %v5780_v15 }
0x18d9   : > { %v5787_v50 = vsel %vm5785_vm1, %v5784_v53, 0.0 }
0x18da   : > { %v5788_v27 = vadd.f32 %v5787_v50, %v5786_v38 }
0x18dc   : > { %5789 = vadd.xlane.f32.xlu0 %v5788_v27 }
0x1965   : > { %v5790_v49 = vpop.xlane.xlu0 %5789 }
0x1966   : > { %v5791_v63 = vrot.slane %v5790_v49, 4 }
0x1968   : > { %v5792_v46 = vadd.f32 %v5791_v63, %v5790_v49 }
0x196a   : > { %v5793_v0 = vrot.slane %v5792_v46, 2 }
0x196c   : > { %v5794_v40 = vadd.f32 %v5793_v0, %v5792_v46 }
0x196e   : > { %v5795_v17 = vrot.slane %v5794_v40, 1 }
0x1970   : > { %v5796_v30 = vadd.f32 %v5795_v17, %v5794_v40 }
0x1972   : > { %7661 = vpush %v5796_v30 }
0x19a3   : > { %s7662_s22 = spop %7661 }
0x19a4   : > { %v5798_v29 = vstv %s7662_s22 }
0x19a5   : > { %v5799_v33 = vsub.f32 0.0, %v5798_v29 }
0x19a7   : > { %v5800_v5 = vmul.f32 1.442695, %v5799_v33 }
0x19a9   : > { %7921 = vpow2.f32 %v5800_v5 }
0x19b6   : > { %v7922_v32 = vpop.eup %7921 }
0x19b7   : > { %v5802_v43 = vadd.f32 1.0, %v7922_v32 }
0x19b9   : > { %7923 = vrcp.f32 %v5802_v43 }
0x19c6   : > { %v7924_v21 = vpop.eup %7923 }
0x19c7   : > { %5805 = vst.msk [vmem:[%s274_s27] sm:$0x1] %vm5804_vm2, %v7924_v21 }
0x19c8 PF: > { %s17_s24 = sadd.s32 1, %s7931_s24  }
0x19c9   : > { %p14_p4 = scmp.ge.s32.totalorder %s17_s24, 4  }
0x19cb   :  { %16 = sbr.rel (!%p14_p4) target bundleno = 1 (0x1), region = 108 }

</bundles_post_ra>
